<compile_context>
chip_gen: v7x
topology: tpu7x:2x2x1
jax: 0.10.0
libtpu: 0.0.40
codegen_flags: <defaults>
</compile_context>

<pallas_src>
import jax
import jax.numpy as jnp
from jax.experimental import pallas as pl

# ----------------------------- model dims -----------------------------------
B = 2            # batch
CIN = 4          # input channels
H = W = 16       # spatial
K = 3            # conv kernel size
COUT = 32        # conv output channels == classify in_features
HID = 32         # first Linear out_features
NCLS = 8         # final Linear out_features (the re-initialized layer)

HW = H * W                    # 256
PATCH = CIN * K * K           # 36
NPAD = 128                    # lane-dense padded classifier / slab width

# Packed-weight slab row offsets (all multiples of 8 -> sublane-aligned slices).
R_WCONV = 0                   # rows 0:36    cols 0:COUT  conv W, row=(dh*K+dw)*CIN+c
R_W1    = 40                  # rows 40:72   cols 0:HID   Linear(COUT, HID)
R_B1    = 72                  # row  72      cols 0:HID
R_W2    = 80                  # rows 80:112  cols 0:NPAD  Linear(HID, NCLS), zero-padded
R_B2    = 112                 # row  112     cols 0:NPAD
R_BCONV = 120                 # row  120     cols 0:COUT
WPACK_ROWS = 128


# ----------------------------- Pallas kernel --------------------------------
def _fused_forward_kernel(xp_ref, wp_ref, out_ref):
    # Single grid step == whole batch.
    # xp_ref : [B, H+2, W+2, CIN] bf16   (zero-padded NHWC activations)
    # wp_ref : [128, 128]         bf16   (packed weights + biases, see offsets above)
    # out_ref: [B, NPAD]          f32
    wp = wp_ref[...]                                            # [128, 128] bf16
    wconv = wp[R_WCONV:R_WCONV + PATCH, :COUT]                  # [36, 32]
    w1    = wp[R_W1:R_W1 + COUT, :HID]                          # [32, 32]
    b1    = wp[R_B1:R_B1 + 1, :HID].astype(jnp.float32)         # [1, 32]
    w2    = wp[R_W2:R_W2 + HID, :]                              # [32, 128]
    b2    = wp[R_B2:R_B2 + 1, :].astype(jnp.float32)            # [1, 128]
    bconv = wp[R_BCONV:R_BCONV + 1, :COUT].astype(jnp.float32)  # [1, 32]

    pooled_rows = []
    for b in range(B):                                          # static unroll, B=2
        xb = xp_ref[b]                                          # [H+2, W+2, CIN] bf16
        # In-kernel im2col: 9 statically-offset slices, concatenated on lanes.
        # Patch column order (dh, dw, c) matches the packed conv-weight rows.
        cols = []
        for dh in range(K):
            for dw in range(K):
                cols.append(xb[dh:dh + H, dw:dw + W, :].reshape(HW, CIN))
        patches = jnp.concatenate(cols, axis=1)                 # [256, 36] bf16

        # Conv2d(pad=1) as one MXU matmul (bf16 operands, f32 accumulation).
        feat = jnp.dot(patches, wconv,
                       preferred_element_type=jnp.float32)      # [256, 32] f32
        feat = jnp.maximum(feat + bconv, 0.0)

        # Global average pool: f32 sublane-axis sum on the (idle) XLU.
        pooled_rows.append(jnp.sum(feat, axis=0, keepdims=True) * (1.0 / HW))
    pooled = jnp.concatenate(pooled_rows, axis=0)               # [B, 32] f32

    # classify[1]: Linear(COUT, HID) + ReLU  (bf16 operands, f32 epilogue)
    h = jnp.dot(pooled.astype(jnp.bfloat16), w1,
                preferred_element_type=jnp.float32)
    h = jnp.maximum(h + b1, 0.0)                                # [B, 32] f32

    # classify[-1]: re-initialized Linear(HID, NCLS), padded to 128 lanes so the
    # store is a single unmasked lane-dense vst over B sublanes.
    out = jnp.dot(h.astype(jnp.bfloat16), w2,
                  preferred_element_type=jnp.float32)
    out_ref[...] = out + b2                                     # [B, 128] f32


# ----------------------------- host wrapper ---------------------------------
_FLOPS = (2 * B * HW * PATCH * COUT      # conv matmul
          + B * HW * COUT                # pooling sum
          + 2 * B * COUT * HID           # Linear 1
          + 2 * B * HID * NPAD)          # Linear 2 (padded)
_BYTES = (B * (H + 2) * (W + 2) * CIN * 2   # bf16 padded activations
          + WPACK_ROWS * NPAD * 2           # bf16 packed weights
          + B * NPAD * 4)                   # f32 output


@jax.jit
def domain_adaption_forward(x, wpack):
    # Only wrapper-side prep: NCHW -> padded NHWC bf16 (im2col is in-kernel).
    x_nhwc = jnp.transpose(x, (0, 2, 3, 1))
    xp = jnp.pad(x_nhwc, ((0, 0), (1, 1), (1, 1), (0, 0))).astype(jnp.bfloat16)

    out_padded = pl.pallas_call(
        _fused_forward_kernel,
        out_shape=jax.ShapeDtypeStruct((B, NPAD), jnp.float32),
        grid=(1,),                                  # single step: whole batch
        in_specs=[
            pl.BlockSpec((B, H + 2, W + 2, CIN), lambda i: (0, 0, 0, 0)),
            pl.BlockSpec((WPACK_ROWS, NPAD), lambda i: (0, 0)),
        ],
        out_specs=pl.BlockSpec((B, NPAD), lambda i: (0, 0)),
        cost_estimate=pl.CostEstimate(
            flops=_FLOPS, transcendentals=0, bytes_accessed=_BYTES),
    )(xp, wpack)

    return out_padded[:, :NCLS]                     # [B, NCLS]


# ----------------------------- param packing ---------------------------------
def pack_params(params):
    """One-time (outside the jitted forward) packing of all weights/biases into
    a single bf16 [128, 128] slab with sublane-aligned sections."""
    wp = jnp.zeros((WPACK_ROWS, NPAD), jnp.float32)
    wp = wp.at[R_WCONV:R_WCONV + PATCH, :COUT].set(params["wconv"])
    wp = wp.at[R_W1:R_W1 + COUT, :HID].set(params["w1"])
    wp = wp.at[R_B1, :HID].set(params["b1"][0])
    wp = wp.at[R_W2:R_W2 + HID, :NCLS].set(params["w2"])
    wp = wp.at[R_B2, :NCLS].set(params["b2"][0])
    wp = wp.at[R_BCONV, :COUT].set(params["bconv"][0])
    return wp.astype(jnp.bfloat16)


# --------------------------- reference (pure JAX, f32) ------------------------
def _reference_forward(x, params):
    # conv weight rows are ordered (dh, dw, c) -> OIHW for lax.conv.
    w = params["wconv"].reshape(K, K, CIN, COUT).transpose(3, 2, 0, 1)
    feat = jax.lax.conv_general_dilated(
        x.astype(jnp.float32), w, window_strides=(1, 1), padding="SAME",
        dimension_numbers=("NCHW", "OIHW", "NCHW"))
    feat = jnp.maximum(feat + params["bconv"].reshape(1, COUT, 1, 1), 0.0)
    pooled = jnp.mean(feat, axis=(2, 3))                                 # [B, COUT]
    h = jnp.maximum(pooled @ params["w1"] + params["b1"], 0.0)
    return h @ params["w2"] + params["b2"]


# ----------------------------- param init -----------------------------------
def init_params(key):
    ks = jax.random.split(key, 6)
    # Conv weight stored pre-flattened as [CIN*K*K, COUT], row order (dh, dw, c).
    wconv = jax.random.normal(ks[0], (PATCH, COUT), jnp.float32) * (1.0 / PATCH ** 0.5)
    bconv = jax.random.normal(ks[1], (1, COUT), jnp.float32) * 0.01
    w1 = jax.random.normal(ks[2], (COUT, HID), jnp.float32) * (1.0 / COUT ** 0.5)
    b1 = jax.random.normal(ks[3], (1, HID), jnp.float32) * 0.01
    # classify[-1] is the layer DomainAdaptionModel re-initializes (fresh init).
    w2 = jax.random.normal(ks[4], (HID, NCLS), jnp.float32) * (1.0 / HID ** 0.5)
    b2 = jax.random.normal(ks[5], (1, NCLS), jnp.float32) * 0.01
    return {"wconv": wconv, "bconv": bconv, "w1": w1, "b1": b1, "w2": w2, "b2": b2}


# --------------------------------- main --------------------------------------
if __name__ == "__main__":
    key = jax.random.PRNGKey(0)
    kx, kp = jax.random.split(key)
    x = jax.random.normal(kx, (B, CIN, H, W), jnp.float32)   # NCHW like PyTorch
    params = init_params(kp)
    wpack = pack_params(params)      # hoisted one-time weight prep (not per call)

    out = jax.block_until_ready(domain_adaption_forward(x, wpack))
    ref = jax.block_until_ready(_reference_forward(x, params))

    assert out.shape == (B, NCLS), out.shape
    # bf16 matmul operands / packed bf16 biases (f32 accumulation) => relaxed tol.
    assert jnp.allclose(out, ref, atol=5e-2, rtol=5e-2), (
        float(jnp.max(jnp.abs(out - ref))))
    print("KERNEL_OK")
</pallas_src>

<mosaic_0001>
module attributes {stable_mosaic.version = 11 : i64} {
  func.func @_fused_forward_kernel(%arg0: i32, %arg1: memref<2x18x18x4xbf16, #tpu.memory_space<vmem>>, %arg2: memref<128x128xbf16, #tpu.memory_space<vmem>>, %arg3: memref<2x128xf32, #tpu.memory_space<vmem>>) attributes {dimension_semantics = [#tpu.dimension_semantics<arbitrary>], iteration_bounds = array<i64: 1>, scalar_prefetch = 0 : i64, scratch_operands = 0 : i64, tpu.core_type = #tpu.core_type<tc>, window_params = [{pipeline_mode = #tpu.pipeline_mode<synchronous>, transform_indices = @transform_0, window_bounds = array<i64: 2, 18, 18, 4>}, {pipeline_mode = #tpu.pipeline_mode<synchronous>, transform_indices = @transform_1, window_bounds = array<i64: 128, 128>}, {pipeline_mode = #tpu.pipeline_mode<synchronous>, transform_indices = @transform_2, window_bounds = array<i64: 2, 128>}]} {
    %c0 = arith.constant 0 : index
    %c0_0 = arith.constant 0 : index
    %0 = vector.load %arg2[%c0, %c0_0] : memref<128x128xbf16, #tpu.memory_space<vmem>>, vector<128x128xbf16>
    %1 = vector.extract_strided_slice %0 {offsets = [0, 0], sizes = [36, 32], strides = [1, 1]} : vector<128x128xbf16> to vector<36x32xbf16>
    %2 = vector.extract_strided_slice %0 {offsets = [40, 0], sizes = [32, 32], strides = [1, 1]} : vector<128x128xbf16> to vector<32x32xbf16>
    %3 = vector.extract_strided_slice %0 {offsets = [72, 0], sizes = [1, 32], strides = [1, 1]} : vector<128x128xbf16> to vector<1x32xbf16>
    %4 = arith.extf %3 : vector<1x32xbf16> to vector<1x32xf32>
    %5 = vector.extract_strided_slice %0 {offsets = [80, 0], sizes = [32, 128], strides = [1, 1]} : vector<128x128xbf16> to vector<32x128xbf16>
    %6 = vector.extract_strided_slice %0 {offsets = [112, 0], sizes = [1, 128], strides = [1, 1]} : vector<128x128xbf16> to vector<1x128xbf16>
    %7 = arith.extf %6 : vector<1x128xbf16> to vector<1x128xf32>
    %8 = vector.extract_strided_slice %0 {offsets = [120, 0], sizes = [1, 32], strides = [1, 1]} : vector<128x128xbf16> to vector<1x32xbf16>
    %9 = arith.extf %8 : vector<1x32xbf16> to vector<1x32xf32>
    %c0_1 = arith.constant 0 : index
    %c0_2 = arith.constant 0 : index
    %c0_3 = arith.constant 0 : index
    %c0_4 = arith.constant 0 : index
    %10 = vector.load %arg1[%c0_1, %c0_2, %c0_3, %c0_4] : memref<2x18x18x4xbf16, #tpu.memory_space<vmem>>, vector<1x18x18x4xbf16>
    %11 = vector.shape_cast %10 : vector<1x18x18x4xbf16> to vector<18x18x4xbf16>
    %12 = vector.extract_strided_slice %11 {offsets = [0, 0, 0], sizes = [16, 16, 4], strides = [1, 1, 1]} : vector<18x18x4xbf16> to vector<16x16x4xbf16>
    %13 = vector.shape_cast %12 : vector<16x16x4xbf16> to vector<256x4xbf16>
    %14 = vector.extract_strided_slice %11 {offsets = [0, 1, 0], sizes = [16, 16, 4], strides = [1, 1, 1]} : vector<18x18x4xbf16> to vector<16x16x4xbf16>
    %15 = vector.shape_cast %14 : vector<16x16x4xbf16> to vector<256x4xbf16>
    %16 = vector.extract_strided_slice %11 {offsets = [0, 2, 0], sizes = [16, 16, 4], strides = [1, 1, 1]} : vector<18x18x4xbf16> to vector<16x16x4xbf16>
    %17 = vector.shape_cast %16 : vector<16x16x4xbf16> to vector<256x4xbf16>
    %18 = vector.extract_strided_slice %11 {offsets = [1, 0, 0], sizes = [16, 16, 4], strides = [1, 1, 1]} : vector<18x18x4xbf16> to vector<16x16x4xbf16>
    %19 = vector.shape_cast %18 : vector<16x16x4xbf16> to vector<256x4xbf16>
    %20 = vector.extract_strided_slice %11 {offsets = [1, 1, 0], sizes = [16, 16, 4], strides = [1, 1, 1]} : vector<18x18x4xbf16> to vector<16x16x4xbf16>
    %21 = vector.shape_cast %20 : vector<16x16x4xbf16> to vector<256x4xbf16>
    %22 = vector.extract_strided_slice %11 {offsets = [1, 2, 0], sizes = [16, 16, 4], strides = [1, 1, 1]} : vector<18x18x4xbf16> to vector<16x16x4xbf16>
    %23 = vector.shape_cast %22 : vector<16x16x4xbf16> to vector<256x4xbf16>
    %24 = vector.extract_strided_slice %11 {offsets = [2, 0, 0], sizes = [16, 16, 4], strides = [1, 1, 1]} : vector<18x18x4xbf16> to vector<16x16x4xbf16>
    %25 = vector.shape_cast %24 : vector<16x16x4xbf16> to vector<256x4xbf16>
    %26 = vector.extract_strided_slice %11 {offsets = [2, 1, 0], sizes = [16, 16, 4], strides = [1, 1, 1]} : vector<18x18x4xbf16> to vector<16x16x4xbf16>
    %27 = vector.shape_cast %26 : vector<16x16x4xbf16> to vector<256x4xbf16>
    %28 = vector.extract_strided_slice %11 {offsets = [2, 2, 0], sizes = [16, 16, 4], strides = [1, 1, 1]} : vector<18x18x4xbf16> to vector<16x16x4xbf16>
    %29 = vector.shape_cast %28 : vector<16x16x4xbf16> to vector<256x4xbf16>
    %30 = tpu.concatenate %13, %15, %17, %19, %21, %23, %25, %27, %29 in 1 : vector<256x4xbf16>, vector<256x4xbf16>, vector<256x4xbf16>, vector<256x4xbf16>, vector<256x4xbf16>, vector<256x4xbf16>, vector<256x4xbf16>, vector<256x4xbf16>, vector<256x4xbf16> -> vector<256x36xbf16>
    %cst = arith.constant dense<0.000000e+00> : vector<256x32xf32>
    %31 = tpu.matmul %30, %1, %cst {dimension_numbers = #tpu.dot_dimension_numbers<[1], [0], [0], [1], [0, 0, 1, 1], [], []>} : vector<256x36xbf16>, vector<36x32xbf16>, vector<256x32xf32> -> vector<256x32xf32>
    %32 = vector.broadcast %9 : vector<1x32xf32> to vector<256x32xf32>
    %33 = arith.addf %31, %32 : vector<256x32xf32>
    %cst_5 = arith.constant 0.000000e+00 : f32
    %34 = vector.broadcast %cst_5 : f32 to vector<256x32xf32>
    %35 = arith.maximumf %33, %34 : vector<256x32xf32>
    %cst_6 = arith.constant dense<0.000000e+00> : vector<32xf32>
    %36 = vector.multi_reduction <add>, %35, %cst_6 [0] : vector<256x32xf32> to vector<32xf32>
    %37 = vector.shape_cast %36 : vector<32xf32> to vector<1x32xf32>
    %cst_7 = arith.constant 3.906250e-03 : f32
    %38 = vector.broadcast %cst_7 : f32 to vector<1x32xf32>
    %39 = arith.mulf %37, %38 : vector<1x32xf32>
    %c1 = arith.constant 1 : index
    %c0_8 = arith.constant 0 : index
    %c0_9 = arith.constant 0 : index
    %c0_10 = arith.constant 0 : index
    %40 = vector.load %arg1[%c1, %c0_8, %c0_9, %c0_10] : memref<2x18x18x4xbf16, #tpu.memory_space<vmem>>, vector<1x18x18x4xbf16>
    %41 = vector.shape_cast %40 : vector<1x18x18x4xbf16> to vector<18x18x4xbf16>
    %42 = vector.extract_strided_slice %41 {offsets = [0, 0, 0], sizes = [16, 16, 4], strides = [1, 1, 1]} : vector<18x18x4xbf16> to vector<16x16x4xbf16>
    %43 = vector.shape_cast %42 : vector<16x16x4xbf16> to vector<256x4xbf16>
    %44 = vector.extract_strided_slice %41 {offsets = [0, 1, 0], sizes = [16, 16, 4], strides = [1, 1, 1]} : vector<18x18x4xbf16> to vector<16x16x4xbf16>
    %45 = vector.shape_cast %44 : vector<16x16x4xbf16> to vector<256x4xbf16>
    %46 = vector.extract_strided_slice %41 {offsets = [0, 2, 0], sizes = [16, 16, 4], strides = [1, 1, 1]} : vector<18x18x4xbf16> to vector<16x16x4xbf16>
    %47 = vector.shape_cast %46 : vector<16x16x4xbf16> to vector<256x4xbf16>
    %48 = vector.extract_strided_slice %41 {offsets = [1, 0, 0], sizes = [16, 16, 4], strides = [1, 1, 1]} : vector<18x18x4xbf16> to vector<16x16x4xbf16>
    %49 = vector.shape_cast %48 : vector<16x16x4xbf16> to vector<256x4xbf16>
    %50 = vector.extract_strided_slice %41 {offsets = [1, 1, 0], sizes = [16, 16, 4], strides = [1, 1, 1]} : vector<18x18x4xbf16> to vector<16x16x4xbf16>
    %51 = vector.shape_cast %50 : vector<16x16x4xbf16> to vector<256x4xbf16>
    %52 = vector.extract_strided_slice %41 {offsets = [1, 2, 0], sizes = [16, 16, 4], strides = [1, 1, 1]} : vector<18x18x4xbf16> to vector<16x16x4xbf16>
    %53 = vector.shape_cast %52 : vector<16x16x4xbf16> to vector<256x4xbf16>
    %54 = vector.extract_strided_slice %41 {offsets = [2, 0, 0], sizes = [16, 16, 4], strides = [1, 1, 1]} : vector<18x18x4xbf16> to vector<16x16x4xbf16>
    %55 = vector.shape_cast %54 : vector<16x16x4xbf16> to vector<256x4xbf16>
    %56 = vector.extract_strided_slice %41 {offsets = [2, 1, 0], sizes = [16, 16, 4], strides = [1, 1, 1]} : vector<18x18x4xbf16> to vector<16x16x4xbf16>
    %57 = vector.shape_cast %56 : vector<16x16x4xbf16> to vector<256x4xbf16>
    %58 = vector.extract_strided_slice %41 {offsets = [2, 2, 0], sizes = [16, 16, 4], strides = [1, 1, 1]} : vector<18x18x4xbf16> to vector<16x16x4xbf16>
    %59 = vector.shape_cast %58 : vector<16x16x4xbf16> to vector<256x4xbf16>
    %60 = tpu.concatenate %43, %45, %47, %49, %51, %53, %55, %57, %59 in 1 : vector<256x4xbf16>, vector<256x4xbf16>, vector<256x4xbf16>, vector<256x4xbf16>, vector<256x4xbf16>, vector<256x4xbf16>, vector<256x4xbf16>, vector<256x4xbf16>, vector<256x4xbf16> -> vector<256x36xbf16>
    %cst_11 = arith.constant dense<0.000000e+00> : vector<256x32xf32>
    %61 = tpu.matmul %60, %1, %cst_11 {dimension_numbers = #tpu.dot_dimension_numbers<[1], [0], [0], [1], [0, 0, 1, 1], [], []>} : vector<256x36xbf16>, vector<36x32xbf16>, vector<256x32xf32> -> vector<256x32xf32>
    %62 = vector.broadcast %9 : vector<1x32xf32> to vector<256x32xf32>
    %63 = arith.addf %61, %62 : vector<256x32xf32>
    %cst_12 = arith.constant 0.000000e+00 : f32
    %64 = vector.broadcast %cst_12 : f32 to vector<256x32xf32>
    %65 = arith.maximumf %63, %64 : vector<256x32xf32>
    %cst_13 = arith.constant dense<0.000000e+00> : vector<32xf32>
    %66 = vector.multi_reduction <add>, %65, %cst_13 [0] : vector<256x32xf32> to vector<32xf32>
    %67 = vector.shape_cast %66 : vector<32xf32> to vector<1x32xf32>
    %cst_14 = arith.constant 3.906250e-03 : f32
    %68 = vector.broadcast %cst_14 : f32 to vector<1x32xf32>
    %69 = arith.mulf %67, %68 : vector<1x32xf32>
    %70 = tpu.concatenate %39, %69 in 0 : vector<1x32xf32>, vector<1x32xf32> -> vector<2x32xf32>
    %71 = arith.truncf %70 : vector<2x32xf32> to vector<2x32xbf16>
    %cst_15 = arith.constant dense<0.000000e+00> : vector<2x32xf32>
    %72 = tpu.matmul %71, %2, %cst_15 {dimension_numbers = #tpu.dot_dimension_numbers<[1], [0], [0], [1], [0, 0, 1, 1], [], []>} : vector<2x32xbf16>, vector<32x32xbf16>, vector<2x32xf32> -> vector<2x32xf32>
    %73 = vector.broadcast %4 : vector<1x32xf32> to vector<2x32xf32>
    %74 = arith.addf %72, %73 : vector<2x32xf32>
    %cst_16 = arith.constant 0.000000e+00 : f32
    %75 = vector.broadcast %cst_16 : f32 to vector<2x32xf32>
    %76 = arith.maximumf %74, %75 : vector<2x32xf32>
    %77 = arith.truncf %76 : vector<2x32xf32> to vector<2x32xbf16>
    %cst_17 = arith.constant dense<0.000000e+00> : vector<2x128xf32>
    %78 = tpu.matmul %77, %5, %cst_17 {dimension_numbers = #tpu.dot_dimension_numbers<[1], [0], [0], [1], [0, 0, 1, 1], [], []>} : vector<2x32xbf16>, vector<32x128xbf16>, vector<2x128xf32> -> vector<2x128xf32>
    %79 = vector.broadcast %7 : vector<1x128xf32> to vector<2x128xf32>
    %80 = arith.addf %78, %79 : vector<2x128xf32>
    %c0_18 = arith.constant 0 : index
    %c0_19 = arith.constant 0 : index
    %81 = vector.load %arg3[%c0_18, %c0_19] : memref<2x128xf32, #tpu.memory_space<vmem>>, vector<2x128xf32>
    tpu.vector_store %arg3[%c0_18, %c0_19], %80 {strides = array<i32>} : memref<2x128xf32, #tpu.memory_space<vmem>>, vector<2x128xf32>,
    return
  }
  func.func @transform_0(%arg0: i32) -> (i32, i32, i32, i32) {
    %c0_i32 = arith.constant 0 : i32
    %c0_i32_0 = arith.constant 0 : i32
    %c0_i32_1 = arith.constant 0 : i32
    %c0_i32_2 = arith.constant 0 : i32
    %c0_i32_3 = arith.constant 0 : i32
    return %c0_i32, %c0_i32_0, %c0_i32_1, %c0_i32_2 : i32, i32, i32, i32
  }
  func.func @transform_1(%arg0: i32) -> (i32, i32) {
    %c0_i32 = arith.constant 0 : i32
    %c0_i32_0 = arith.constant 0 : i32
    %c0_i32_1 = arith.constant 0 : i32
    return %c0_i32, %c0_i32_0 : i32, i32
  }
  func.func @transform_2(%arg0: i32) -> (i32, i32) {
    %c0_i32 = arith.constant 0 : i32
    %c0_i32_0 = arith.constant 0 : i32
    %c0_i32_1 = arith.constant 0 : i32
    return %c0_i32, %c0_i32_0 : i32, i32
  }
}

</mosaic_0001>

<bundles_post_ra>
// kernel: domain_adaption_forward.1
= control target key start
LH: loop header
LB: loop body
LE: loop exit
PB: predicated region body
PF: predicated region fallthrough
CT: control target
= control target key end

     0   :  { %vm521_vm0 = vcmask 1042432   ;;  %vm522_vm1 = vcmask 1046532   ;;  %vm86_vm3 = vsmask.f32 3328  ;;  %vm87_vm4 = vsmask.f32 7440  ;;  %s6838_s0 = inlined_call_operand.vmem [shape: bf16[2,18,18,4], index: 0, kind: input, shape index: {}]   ;;  %s6839_s1 = inlined_call_operand.vmem [shape: bf16[128,128], index: 1, kind: input, shape index: {}]   ;;  %s6840_s2 = inlined_call_operand.hbm [shape: f32[2,128], index: 2, kind: output, shape index: {}]  }
   0x1   :  { %v4001_v0 = vld [vmem:[%s6838_s0 + $0xc] sm:$0xf]  ;;  %v4006_v1 = vld [vmem:[%s6838_s0 + $0x10] sm:$0xf]  ;;  %v4011_v2 = vld [vmem:[%s6838_s0 + $0x14] sm:$0x1] }
   0x2   :  { %v133_v3 = vshll.u32 %v4011_v2, 16  ;;  %v3512_v4 = vrot.slane %v4001_v0, 9  ;;  %vm4015_vm2 = vmor %vm521_vm0, %vm522_vm1  ;;  %v533_v6 = vrot.slane %v4006_v1, 5  ;;  %v536_v7 = vrot.slane %v4011_v2, 5  ;;  %v4024_v8 = vld [vmem:[%s6838_s0] sm:$0xf] }
   0x3   :  { %v4029_v9 = vld [vmem:[%s6838_s0 + $0x4] sm:$0xf]  ;;  %v34_v10 = vld [vmem:[%s6838_s0 + $0x8] sm:$0x1]  ;;  %v3511_v11 = vrot.slane %v4024_v8, 9  ;;  %v4043_v14 = vcombine.low %v4001_v0, %v4006_v1  ;;  %v90_v32 = vshrl.u32 %v4024_v8, 16  ;;  %vm4083_vm5 = vmor %vm86_vm3, %vm87_vm4 }
   0x4   :  { %v526_v12 = vrot.slane %v4029_v9, 5  ;;  %v4039_v13 = vld [vmem:[%s6838_s0 + $0xd8] sm:$0xf]  ;;  %v534_v15 = vsel %vm4015_vm2, %v3512_v4, %v533_v6  ;;  %v535_v16 = vrot.slane %v533_v6, 4  ;;  %v109_v17 = vshll.u32 %v34_v10, 16  ;;  %s3972_s27 = smov 8  }
   0x5   :  { %v529_v18 = vrot.slane %v34_v10, 5  ;;  %v4050_v19 = vld [vmem:[%s6838_s0 + $0xdc] sm:$0xf]  ;;  %v3604_v22 = vld [vmem:[%s6838_s0 + $0xe0] sm:$0x1]  ;;  %v3656_v23 = vrot.slane %v4039_v13, 9 }
   0x6   :  { %v527_v20 = vsel %vm4015_vm2, %v3511_v11, %v526_v12  ;;  %v528_v21 = vrot.slane %v526_v12, 4  ;;  %v2210_v24 = vrot.slane %v4050_v19, 5  ;;  %v537_v25 = vsel %vm4015_vm2, %v535_v16, %v536_v7  ;;  %v3605_v4 = vld [vmem:[%s6838_s0 + $0xe4] sm:$0xf]  ;;  %v3606_v11 = vld [vmem:[%s6838_s0 + $0xe8] sm:$0xf] }
   0x7   :  { %v2213_v26 = vrot.slane %v3604_v22, 5  ;;  %v4061_v27 = vcombine.low %v534_v15, %v537_v25  ;;  %v93_v33 = vshll.u32 %v4024_v8, 16  ;;  %v99_v34 = vshll.u32 %v4029_v9, 16  ;;  %s3973_s4 = smov 12   ;;  %s3974_s7 = smov 4  }
   0x8   :  { %v530_v28 = vsel %vm4015_vm2, %v528_v21, %v529_v18  ;;  %v2211_v29 = vsel %vm4015_vm2, %v3656_v23, %v2210_v24  ;;  %v2212_v30 = vrot.slane %v2210_v24, 4  ;;  %v103_v36 = vshrl.u32 %v4029_v9, 16  ;;  %s3975_s20 = smov 16  }
   0x9   :  { %v3561_v31 = vcombine.low %v527_v20, %v530_v28  ;;  %882 = vrot.lane.b32.xlu0 %v4061_v27, %s3972_s27  ;;  %v111_v37 = vrot.slane %v109_v17, 5  ;;  %v1777_v38 = vshrl.u32 %v4039_v13, 16  ;;  %v92_v40 = vrot.slane %v90_v32, 4 }
   0xa   :  { %v2214_v35 = vsel %vm4015_vm2, %v2212_v30, %v2213_v26  ;;  %v95_v41 = vrot.slane %v93_v33, 5  ;;  %v101_v42 = vrot.slane %v99_v34, 5  ;;  %v105_v43 = vrot.slane %v103_v36, 4 }
   0xb   :  { %880 = vrot.lane.b32.xlu1 %v3561_v31, %s3972_s27  ;;  %v3706_v39 = vcombine.low %v2211_v29, %v2214_v35  ;;  %v1779_v44 = vrot.slane %v1777_v38, 4  ;;  %v1780_v45 = vshll.u32 %v4039_v13, 16  ;;  %v1786_v46 = vshll.u32 %v4050_v19, 16 }
   0xc   :  { %v96_v47 = vor.u32 %v95_v41, %v92_v40  ;;  %v1790_v48 = vshrl.u32 %v4050_v19, 16  ;;  %v1796_v49 = vshll.u32 %v3604_v22, 16  ;;  %v114_v50 = vshrl.u32 %v4001_v0, 16  ;;  %v3607_v22 = vld [vmem:[%s6838_s0 + $0xec] sm:$0x1] }
   0xd   :  { %v106_v52 = vor.u32 %v105_v43, %v101_v42  ;;  %v1782_v53 = vrot.slane %v1780_v45, 5  ;;  %v1788_v54 = vrot.slane %v1786_v46, 5  ;;  %v117_v55 = vshll.u32 %v4001_v0, 16 }
   0xe   :  { %v97_v56 = vrot.slane %v96_v47, 4  ;;  %v1792_v57 = vrot.slane %v1790_v48, 4  ;;  %v1798_v58 = vrot.slane %v1796_v49, 5  ;;  %v116_v59 = vrot.slane %v114_v50, 4  ;;  %v4133_v47 = vld [vmem:[%s6838_s0 + $0xf0] sm:$0xf] }
   0xf   :  { %2564 = vrot.lane.b32.xlu1 %v3706_v39, %s3972_s27  ;;  %v107_v60 = vrot.slane %v106_v52, 4  ;;  %v1783_v61 = vor.u32 %v1782_v53, %v1779_v44  ;;  %v119_v62 = vrot.slane %v117_v55, 5  ;;  %v123_v63 = vshll.u32 %v4006_v1, 16  ;;  %v4139_v53 = vld [vmem:[%s6838_s0 + $0xf4] sm:$0xf] }
  0x10   :  { %v102_v6 = vsel %vm4083_vm5, %v97_v56, %v101_v42  ;;  %v1793_v7 = vor.u32 %v1792_v57, %v1788_v54  ;;  %v127_v0 = vshrl.u32 %v4006_v1, 16  ;;  %v135_v10 = vrot.slane %v133_v3, 5  ;;  %v4123_v42 = vld [vmem:[%s6838_s0 + $0x1c] sm:$0xf] }
  0x11   :  { %v112_v12 = vsel %vm4083_vm5, %v107_v60, %v111_v37  ;;  %v1784_v15 = vrot.slane %v1783_v61, 4  ;;  %v120_v16 = vor.u32 %v119_v62, %v116_v59  ;;  %v125_v17 = vrot.slane %v123_v63, 5  ;;  %v4118_v37 = vld [vmem:[%s6838_s0 + $0x18] sm:$0xf] }
  0x12   :  { %v3545_v18 = vcombine.low %v102_v6, %v112_v12  ;;  %v1794_v20 = vrot.slane %v1793_v7, 4  ;;  %v129_v1 = vrot.slane %v127_v0, 4  ;;  %v1801_v21 = vshrl.u32 %v3605_v4, 16 }
  0x13   :  { %915 = vrot.lane.b32.xlu1 %v4043_v14, %s3973_s4  ;;  %v1789_v2 = vsel %vm4083_vm5, %v1784_v15, %v1788_v54  ;;  %v121_v3 = vrot.slane %v120_v16, 4  ;;  %v1804_v23 = vshll.u32 %v3605_v4, 16  ;;  %v1810_v24 = vshll.u32 %v3606_v11, 16 }
  0x14   :  { %800 = vrot.lane.b32.xlu0 %v3545_v18, %s3974_s7  ;;  %v1799_v25 = vsel %vm4083_vm5, %v1794_v20, %v1798_v58  ;;  %v130_v26 = vor.u32 %v129_v1, %v125_v17  ;;  %v1803_v28 = vrot.slane %v1801_v21, 4  ;;  %v1814_v29 = vshrl.u32 %v3606_v11, 16  ;;  %v4148_v58 = vld [vmem:[%s6838_s0 + $0x20] sm:$0x1] }
  0x15   :  { %v3690_v30 = vcombine.low %v1789_v2, %v1799_v25  ;;  %v1806_v31 = vrot.slane %v1804_v23, 5  ;;  %v1812_v32 = vrot.slane %v1810_v24, 5  ;;  %v126_v33 = vsel %vm4083_vm5, %v121_v3, %v125_v17  ;;  %v3610_v3 = vld [vmem:[%s6838_s0 + $0xf8] sm:$0x1] }
  0x16   :  { %v131_v34 = vrot.slane %v130_v26, 4  ;;  %v1816_v35 = vrot.slane %v1814_v29, 4  ;;  %v1820_v36 = vshll.u32 %v3607_v22, 16  ;;  %v3657_v39 = vrot.slane %v3605_v4, 9 }
  0x17   :  { %v1807_v38 = vor.u32 %v1806_v31, %v1803_v28  ;;  %v2217_v40 = vrot.slane %v3606_v11, 5  ;;  %v2220_v41 = vrot.slane %v3607_v22, 5  ;;  %v4128_v46 = vcombine.low %v3605_v4, %v3606_v11 }
  0x18   :  { %2484 = vrot.lane.b32.xlu0 %v3690_v30, %s3974_s7  ;;  %v136_v43 = vsel %vm4083_vm5, %v131_v34, %v135_v10  ;;  %v1817_v44 = vor.u32 %v1816_v35, %v1812_v32  ;;  %v1822_v45 = vrot.slane %v1820_v36, 5  ;;  %v138_v52 = vshrl.u32 %v4118_v37, 16 }
  0x19   :  { %v3546_v48 = vcombine.low %v126_v33, %v136_v43  ;;  %v1808_v49 = vrot.slane %v1807_v38, 4  ;;  %v2219_v50 = vrot.slane %v2217_v40, 4  ;;  %v2218_v55 = vsel %vm4015_vm2, %v3657_v39, %v2217_v40 }
  0x1a   :  { %v1818_v54 = vrot.slane %v1817_v44, 4  ;;  %v141_v56 = vshll.u32 %v4118_v37, 16  ;;  %v151_v57 = vshrl.u32 %v4123_v42, 16  ;;  %v1825_v61 = vshrl.u32 %v4133_v47, 16 }
  0x1b   :  { %802 = vrot.lane.b32.xlu1 %v3546_v48, %s3974_s7  ;;  %v1813_v59 = vsel %vm4083_vm5, %v1808_v49, %v1812_v32  ;;  %v2221_v60 = vsel %vm4015_vm2, %v2219_v50, %v2220_v41  ;;  %v1828_v62 = vshll.u32 %v4133_v47, 16  ;;  %v1838_v4 = vshrl.u32 %v4139_v53, 16 }
  0x1c   :  { %v1823_v63 = vsel %vm4083_vm5, %v1818_v54, %v1822_v45  ;;  %v140_v7 = vrot.slane %v138_v52, 4  ;;  %v143_v0 = vrot.slane %v141_v56, 5  ;;  %v147_v10 = vshll.u32 %v4123_v42, 16 }
  0x1d   :  { %v3691_v6 = vcombine.low %v1813_v59, %v1823_v63  ;;  %v3707_v11 = vcombine.low %v2218_v55, %v2221_v60  ;;  %v153_v12 = vrot.slane %v151_v57, 4  ;;  %v157_v15 = vshll.u32 %v4148_v58, 16 }
  0x1e   :  { %v149_v16 = vrot.slane %v147_v10, 5  ;;  %v1827_v17 = vrot.slane %v1825_v61, 4  ;;  %v1830_v18 = vrot.slane %v1828_v62, 5  ;;  %v1834_v20 = vshll.u32 %v4139_v53, 16 }
  0x1f   :  { %2486 = vrot.lane.b32.xlu0 %v3691_v6, %s3974_s7  ;;  %2599 = vrot.lane.b32.xlu1 %v4128_v46, %s3973_s4  ;;  %v144_v1 = vor.u32 %v143_v0, %v140_v7  ;;  %v1840_v21 = vrot.slane %v1838_v4, 4  ;;  %v4173_v23 = vcombine.low %v4118_v37, %v4123_v42  ;;  %v159_v24 = vrot.slane %v157_v15, 5 }
  0x20   :  { %v154_v2 = vor.u32 %v153_v12, %v149_v16  ;;  %v1836_v22 = vrot.slane %v1834_v20, 5  ;;  %v1831_v25 = vor.u32 %v1830_v18, %v1827_v17  ;;  %v1844_v30 = vshll.u32 %v3610_v3, 16 }
  0x21   :  { %v145_v26 = vrot.slane %v144_v1, 4 }
  0x22   :  { %v155_v28 = vrot.slane %v154_v2, 4  ;;  %v1841_v29 = vor.u32 %v1840_v21, %v1836_v22 }
  0x23   :  { %2566 = vrot.lane.b32.xlu0 %v3707_v11, %s3972_s27  ;;  %950 = vrot.lane.b32.xlu1 %v3546_v48, %s3975_s20 }
  0x24   :  { %7 = vsyncpa [#allocation3], 0  ;;  %v4180_v31 = vcombine.low %v4133_v47, %v4139_v53  ;;  %v1832_v32 = vrot.slane %v1831_v25, 4  ;;  %v540_v33 = vrot.slane %v4123_v42, 5  ;;  %v150_v34 = vsel %vm4083_vm5, %v145_v26, %v149_v16  ;;  %s3976_s21 = smov 20   ;;  %s3977_s3 = smov 24  }
  0x25   :  { %v160_v35 = vsel %vm4083_vm5, %v155_v28, %v159_v24  ;;  %v1842_v36 = vrot.slane %v1841_v29, 4  ;;  %v1846_v38 = vrot.slane %v1844_v30, 5  ;;  %v2224_v39 = vrot.slane %v4139_v53, 5  ;;  %v4203_v48 = vld [vmem:[%s6838_s0 + $0x24] sm:$0xf]  ;;  %v3919_v25 = vld [vmem:[%s6839_s1 + $0x8] sm:$0xff]  }
  0x26   :  { %v4192_v40 = vcombine.low %v150_v34, %v160_v35  ;;  %v3513_v41 = vrot.slane %v4118_v37, 9  ;;  %v542_v42 = vrot.slane %v540_v33, 4  ;;  %v543_v43 = vrot.slane %v4148_v58, 5  ;;  %v4231_v58 = vld [vmem:[%s6838_s0 + $0x100] sm:$0xf]  ;;  %s3978_s14 = smov 28  }
  0x27   :  { %917 = vrot.lane.b32.xlu0 %v4173_v23, %s3973_s4  ;;  %2634 = vrot.lane.b32.xlu1 %v3691_v6, %s3975_s20  ;;  %v1837_v44 = vsel %vm4083_vm5, %v1832_v32, %v1836_v22  ;;  %v1847_v45 = vsel %vm4083_vm5, %v1842_v36, %v1846_v38  ;;  %v3658_v37 = vrot.slane %v4133_v47, 9  ;;  %v2226_v49 = vrot.slane %v2224_v39, 4  ;;  %v4224_v47 = vld [vmem:[%s6838_s0 + $0xfc] sm:$0xf]  ;;  %v43_v0 = vld [vmem:[%s6838_s0 + $0x2c] sm:$0x1] }
  0x28   :  { %v2227_v50 = vrot.slane %v3610_v3, 5  ;;  %v4214_v52 = vcombine.low %v1837_v44, %v1847_v45  ;;  %v541_v53 = vsel %vm4015_vm2, %v3513_v41, %v540_v33  ;;  %v544_v54 = vsel %vm4015_vm2, %v542_v42, %v543_v43  ;;  %v3918_v16 = vld [vmem:[%s6839_s1] sm:$0xff]   ;;  %s3979_s15 = smov 32   ;;  %s3982_s9 = smov [#allocation2]  }
  0x29   :  { %v162_v55 = vshrl.u32 %v4203_v48, 16  ;;  %v165_v56 = vshll.u32 %v4203_v48, 16  ;;  %v4234_v60 = vcombine.low %v541_v53, %v544_v54  ;;  %v2225_v61 = vsel %vm4015_vm2, %v3658_v37, %v2224_v39  ;;  %v3613_v3 = vld [vmem:[%s6838_s0 + $0x104] sm:$0x1]  ;;  %3799 = vmatprep.subr.bf16.mxu0 %v3918_v16  ;;  %3837 = vmatprep.subr.bf16.mxu1 %v3918_v16  ;;  %s3503_s10 = sshll.u32 %s3982_s9, 4  ;;  %s3504_s10 = int_to_ptr.vmem [resolvable:$true] %s3503_s10 }
  0x2a   :  { %v2228_v62 = vsel %vm4015_vm2, %v2226_v49, %v2227_v50  ;;  %v1849_v63 = vshrl.u32 %v4224_v47, 16  ;;  %v1852_v4 = vshll.u32 %v4224_v47, 16  ;;  %v1862_v6 = vshrl.u32 %v4231_v58, 16  ;;  %3800 = vmatpush3.bf16.msra.mxu0 %v3918_v16  ;;  %3838 = vmatpush3.bf16.msra.mxu1 %v3918_v16  ;;  %s3948_s11 = scalar_lea.vmem %s3504_s10, 32  ;;  %p3953_p1 = scmp.lt.s32.totalorder %s3504_s10, %s3504_s10 }
  0x2b   :  { %2601 = vrot.lane.b32.xlu0 %v4180_v31, %s3973_s4  ;;  %985 = vrot.lane.b32.xlu1 %v4061_v27, %s3976_s21  ;;  %v4208_v27 = vld [vmem:[%s6838_s0 + $0x28] sm:$0xf]  ;;  %v164_v7 = vrot.slane %v162_v55, 4  ;;  %v167_v10 = vrot.slane %v165_v56, 5  ;;  %v1858_v15 = vshll.u32 %v4231_v58, 16  ;;  %v4258_v17 = vcombine.low %v2225_v61, %v2228_v62  ;;  %p3949_p0 = scmp.ne.s32.totalorder %s3504_s10, %s3948_s11  ;;  %p3954_p2 = scmp.lt.s32.totalorder %s3948_s11, %s3948_s11 }
  0x2c   :  { %v175_v57 = vshrl.u32 %v4208_v27, 16  ;;  %v171_v59 = vshll.u32 %v4208_v27, 16  ;;  %v181_v18 = vshll.u32 %v43_v0, 16  ;;  %v1851_v20 = vrot.slane %v1849_v63, 4  ;;  %3801 = vmatprep.subr.bf16.mxu0 %v3919_v25  ;;  %3839 = vmatprep.subr.bf16.mxu1 %v3919_v25  ;;  %v4327_v63 = vld [vmem:[%s6838_s0 + $0x30] sm:$0xf] }
  0x2d   :  { %v1854_v1 = vrot.slane %v1852_v4, 5  ;;  %v168_v21 = vor.u32 %v167_v10, %v164_v7  ;;  %v1860_v22 = vrot.slane %v1858_v15, 5  ;;  %v1864_v24 = vrot.slane %v1862_v6, 4  ;;  %v4332_v4 = vld [vmem:[%s6838_s0 + $0x34] sm:$0xf]  ;;  %p3955_p3 = por %p3954_p2, %p3953_p1 }
  0x2e   :  { %v177_v12 = vrot.slane %v175_v57, 4  ;;  %v4272_v26 = vcombine.low %v4203_v48, %v4208_v27  ;;  %v1868_v29 = vshll.u32 %v3613_v3, 16  ;;  %v547_v30 = vrot.slane %v4208_v27, 5  ;;  %3802 = vmatpush3.bf16.msra.mxu0 %v3919_v25  ;;  %3840 = vmatpush3.bf16.msra.mxu1 %v3919_v25  ;;  %v4348_v7 = vld [vmem:[%s6838_s0 + $0x10c] sm:$0xf] }
  0x2f   :  { %952 = vrot.lane.b32.xlu0 %v4192_v40, %s3975_s20  ;;  %2669 = vrot.lane.b32.xlu1 %v3707_v11, %s3976_s21  ;;  %v173_v11 = vrot.slane %v171_v59, 5  ;;  %v1855_v28 = vor.u32 %v1854_v1, %v1851_v20  ;;  %v169_v32 = vrot.slane %v168_v21, 4  ;;  %v183_v34 = vrot.slane %v181_v18, 5  ;;  %v3921_v10 = vld [vmem:[%s6839_s1 + $0x10] ss:$0 sps:$4 sm:$0xff]   ;;  %p3956_p4 = pnand %p3955_p3, %p3949_p0 }
  0x30   :  { %v1865_v35 = vor.u32 %v1864_v24, %v1860_v22  ;;  %v4277_v36 = vcombine.low %v4224_v47, %v4231_v58  ;;  %v3514_v38 = vrot.slane %v4203_v48, 9  ;;  %v1870_v41 = vrot.slane %v1868_v29, 5 }
  0x31   :  { %v178_v2 = vor.u32 %v177_v12, %v173_v11  ;;  %v1856_v39 = vrot.slane %v1855_v28, 4  ;;  %v549_v42 = vrot.slane %v547_v30, 4  ;;  %v550_v43 = vrot.slane %v43_v0, 5 }
  0x32   :  { %v174_v44 = vsel %vm4083_vm5, %v169_v32, %v173_v11  ;;  %v1866_v27 = vrot.slane %v1865_v35, 4  ;;  %v2231_v37 = vrot.slane %v4231_v58, 5  ;;  %v548_v50 = vsel %vm4015_vm2, %v3514_v38, %v547_v30  ;;  %v3616_v32 = vld [vmem:[%s6838_s0 + $0x110] sm:$0x1] }
  0x33   :  { %2636 = vrot.lane.b32.xlu0 %v4214_v52, %s3975_s20  ;;  %1020 = vrot.lane.b32.xlu1 %v4173_v23, %s3977_s3  ;;  %v179_v33 = vrot.slane %v178_v2, 4  ;;  %v1861_v49 = vsel %vm4083_vm5, %v1856_v39, %v1860_v22  ;;  %v3659_v53 = vrot.slane %v4224_v47, 9  ;;  %v551_v55 = vsel %vm4015_vm2, %v549_v42, %v550_v43 }
  0x34   :  { %v1871_v54 = vsel %vm4083_vm5, %v1866_v27, %v1870_v41  ;;  %v2233_v56 = vrot.slane %v2231_v37, 4  ;;  %v2234_v57 = vrot.slane %v3613_v3, 5  ;;  %v4305_v59 = vcombine.low %v548_v50, %v551_v55 }
  0x35   :  { %v184_v45 = vsel %vm4083_vm5, %v179_v33, %v183_v34  ;;  %v3693_v58 = vcombine.low %v1861_v49, %v1871_v54  ;;  %v2232_v61 = vsel %vm4015_vm2, %v3659_v53, %v2231_v37  ;;  %v199_v6 = vshrl.u32 %v4332_v4, 16 }
  0x36   :  { %v3548_v48 = vcombine.low %v174_v44, %v184_v45  ;;  %v2235_v47 = vsel %vm4015_vm2, %v2233_v56, %v2234_v57  ;;  %v195_v0 = vshll.u32 %v4332_v4, 16  ;;  %v1886_v15 = vshrl.u32 %v4348_v7, 16 }
  0x37   :  { %987 = vrot.lane.b32.xlu0 %v4234_v60, %s3976_s21  ;;  %2704 = vrot.lane.b32.xlu1 %v4180_v31, %s3977_s3  ;;  %v4314_v62 = vcombine.low %v2232_v61, %v2235_v47  ;;  %v201_v1 = vrot.slane %v199_v6, 4  ;;  %v1882_v21 = vshll.u32 %v4348_v7, 16  ;;  %vm1454_vm6 = vcmask 1041408   ;;  %v4405_v61 = vld [vmem:[%s6838_s0 + $0x3c] sm:$0xf] }
  0x38   :  { %v197_v20 = vrot.slane %v195_v0, 5  ;;  %3891 = vmatprep.subr.msk.bf16.mxu0 %vm1454_vm6, %v3921_v10  ;;  %v1456_v2 = vsel %vm1454_vm6, %v3921_v10, 0  ;;  %3892 = vmatprep.subr.msk.bf16.mxu1 %vm1454_vm6, %v3921_v10  ;;  %v1888_v30 = vrot.slane %v1886_v15, 4  ;;  %v4376_v33 = vcombine.low %v4327_v63, %v4332_v4 }
  0x39   :  { %v1884_v29 = vrot.slane %v1882_v21, 5  ;;  %3804 = vmatpush3.bf16.msra.mxu0 %v1456_v2  ;;  %3842 = vmatpush3.bf16.msra.mxu1 %v1456_v2  ;;  %v1892_v42 = vshll.u32 %v3616_v32, 16  ;;  %v554_v45 = vrot.slane %v4332_v4, 5  ;;  %v3515_v53 = vrot.slane %v4327_v63, 9 }
  0x3a   :  { %v202_v28 = vor.u32 %v201_v1, %v197_v20  ;;  %v2238_v54 = vrot.slane %v4348_v7, 5  ;;  %v213_v6 = vshll.u32 %v4405_v61, 16  ;;  %vm1122_vm7 = vcmask 31744  }
  0x3b   :  { %2671 = vrot.lane.b32.xlu0 %v4258_v17, %s3976_s21  ;;  %1055 = vrot.lane.b32.xlu1 %v4192_v40, %s3978_s14  ;;  %v1889_v41 = vor.u32 %v1888_v30, %v1884_v29  ;;  %v1894_v49 = vrot.slane %v1892_v42, 5  ;;  %v556_v57 = vrot.slane %v554_v45, 4  ;;  %vm1171_vm8 = vcmask 64512  }
  0x3c   :  { %v203_v39 = vrot.slane %v202_v28, 4  ;;  %v215_v1 = vrot.slane %v213_v6, 5  ;;  %vm1204_vm9 = vcmask 97280   ;;  %vm1237_vm10 = vcmask 130048  }
  0x3d   :  { %vm1270_vm11 = vcmask 162816   ;;  %vm1303_vm12 = vcmask 195584   ;;  %vm1336_vm13 = vcmask 228352   ;;  %vm1369_vm14 = vcmask 261120  }
  0x3e   :  { %vm1421_vm15 = vcmask 293888   ;;  %vm3981_vm0 = vmmov 0   ;;  %vm3373_vm1 = vcmask 1040384  }
  0x3f   :  { %1022 = vrot.lane.b32.xlu0 %v4272_v26, %s3977_s3  ;;  %2739 = vrot.lane.b32.xlu1 %v4214_v52, %s3978_s14 }
  0x43   :  { %2706 = vrot.lane.b32.xlu0 %v4277_v36, %s3977_s3  ;;  %1090 = vrot.lane.b32.xlu1 %v4234_v60, %s3979_s15 }
  0x47   :  { %1057 = vrot.lane.b32.xlu0 %v3548_v48, %s3978_s14  ;;  %2774 = vrot.lane.b32.xlu1 %v4258_v17, %s3979_s15 }
  0x4b   :  { %2741 = vrot.lane.b32.xlu0 %v3693_v58, %s3978_s14  ;;  %1092 = vrot.lane.b32.xlu1 %v4305_v59, %s3979_s15 }
  0x4f   :  { %804 = vrot.lane.b32.xlu0 %v4192_v40, %s3974_s7  ;;  %2776 = vrot.lane.b32.xlu1 %v4314_v62, %s3979_s15  ;;  %v186_v40 = vshrl.u32 %v4327_v63, 16 }
  0x51   :  { %v188_v16 = vrot.slane %v186_v40, 4  ;;  %v2240_v40 = vrot.slane %v2238_v54, 4 }
  0x53   :  { %2488 = vrot.lane.b32.xlu0 %v4214_v52, %s3974_s7  ;;  %884 = vrot.lane.b32.xlu1 %v4234_v60, %s3972_s27  ;;  %v4341_v52 = vld [vmem:[%s6838_s0 + $0x108] sm:$0xf]  ;;  %v189_v60 = vshll.u32 %v4327_v63, 16  ;;  %v2241_v63 = vrot.slane %v3616_v32, 5 }
  0x54   :  { %v1873_v11 = vshrl.u32 %v4341_v52, 16  ;;  %v1876_v12 = vshll.u32 %v4341_v52, 16  ;;  %v4383_v43 = vcombine.low %v4341_v52, %v4348_v7  ;;  %v3660_v47 = vrot.slane %v4341_v52, 9  ;;  %v4424_v7 = vld [vmem:[%s6838_s0 + $0x114] sm:$0xf] }
  0x55   :  { %v191_v18 = vrot.slane %v189_v60, 5  ;;  %v210_v60 = vshrl.u32 %v4405_v61, 16  ;;  %v555_v52 = vsel %vm4015_vm2, %v3515_v53, %v554_v45  ;;  %v1897_v15 = vshrl.u32 %v4424_v7, 16 }
  0x56   :  { %v1875_v22 = vrot.slane %v1873_v11, 4  ;;  %v1878_v24 = vrot.slane %v1876_v12, 5  ;;  %v4435_v11 = vld [vmem:[%s6838_s0 + $0x118] sm:$0xf]  ;;  %v2239_v12 = vsel %vm4015_vm2, %v3660_v47, %v2238_v54 }
  0x57   :  { %806 = vrot.lane.b32.xlu0 %v3548_v48, %s3974_s7  ;;  %2568 = vrot.lane.b32.xlu1 %v4258_v17, %s3972_s27  ;;  %v46_v17 = vld [vmem:[%s6838_s0 + $0x38] sm:$0x1]  ;;  %v192_v25 = vor.u32 %v191_v18, %v188_v16  ;;  %v1900_v16 = vshll.u32 %v4424_v7, 16  ;;  %v2242_v18 = vsel %vm4015_vm2, %v2240_v40, %v2241_v63  ;;  %v1910_v21 = vshrl.u32 %v4435_v11, 16 }
  0x58   :  { %v205_v3 = vshll.u32 %v46_v17, 16  ;;  %v1879_v35 = vor.u32 %v1878_v24, %v1875_v22  ;;  %v1906_v22 = vshll.u32 %v4435_v11, 16  ;;  %v49_v24 = vld [vmem:[%s6838_s0 + $0x44] sm:$0x1]  ;;  %v4476_v54 = vcombine.low %v4424_v7, %v4435_v11 }
  0x59   :  { %v193_v38 = vrot.slane %v192_v25, 4  ;;  %v1899_v25 = vrot.slane %v1897_v15, 4  ;;  %v1902_v28 = vrot.slane %v1900_v16, 5  ;;  %v564_v47 = vrot.slane %v49_v24, 5 }
  0x5a   :  { %v207_v34 = vrot.slane %v205_v3, 5  ;;  %v1880_v44 = vrot.slane %v1879_v35, 4  ;;  %v3619_v35 = vld [vmem:[%s6838_s0 + $0x11c] sm:$0x1]  ;;  %v2245_v6 = vrot.slane %v4435_v11, 5 }
  0x5b   :  { %2490 = vrot.lane.b32.xlu0 %v3693_v58, %s3974_s7  ;;  %919 = vrot.lane.b32.xlu1 %v4272_v26, %s3973_s4  ;;  %v198_v27 = vsel %vm4083_vm5, %v193_v38, %v197_v20  ;;  %v212_v20 = vrot.slane %v210_v60, 4  ;;  %v1908_v38 = vrot.slane %v1906_v22, 5  ;;  %v1916_v45 = vshll.u32 %v3619_v35, 16 }
  0x5c   :  { %v208_v37 = vsel %vm4083_vm5, %v203_v39, %v207_v34  ;;  %v1885_v55 = vsel %vm4083_vm5, %v1880_v44, %v1884_v29  ;;  %v4458_v29 = vcombine.low %v2239_v12, %v2242_v18  ;;  %v229_v34 = vshll.u32 %v49_v24, 16 }
  0x5d   :  { %v4394_v50 = vcombine.low %v198_v27, %v208_v37  ;;  %v216_v30 = vor.u32 %v215_v1, %v212_v20  ;;  %v1912_v39 = vrot.slane %v1910_v21, 4  ;;  %v2247_v15 = vrot.slane %v2245_v6, 4 }
  0x5e   :  { %v2248_v16 = vrot.slane %v3619_v35, 5 }
  0x5f   :  { %886 = vrot.lane.b32.xlu0 %v4305_v59, %s3972_s27  ;;  %2603 = vrot.lane.b32.xlu1 %v4277_v36, %s3973_s4  ;;  %v217_v44 = vrot.slane %v216_v30, 4  ;;  %v4548_v30 = vld [vmem:[%s6838_s0 + $0x48] sm:$0xf] }
  0x63   :  { %2570 = vrot.lane.b32.xlu0 %v4314_v62, %s3972_s27  ;;  %954 = vrot.lane.b32.xlu1 %v3548_v48, %s3975_s20  ;;  %v1890_v48 = vrot.slane %v1889_v41, 4  ;;  %v1903_v41 = vor.u32 %v1902_v28, %v1899_v25 }
  0x65   :  { %v1895_v56 = vsel %vm4083_vm5, %v1890_v48, %v1894_v49  ;;  %v231_v48 = vrot.slane %v229_v34, 5  ;;  %v1913_v49 = vor.u32 %v1912_v39, %v1908_v38  ;;  %v4557_v34 = vld [vmem:[%s6838_s0 + $0x4c] sm:$0xf] }
  0x66   :  { %v4417_v4 = vcombine.low %v1885_v55, %v1895_v56  ;;  %v1904_v55 = vrot.slane %v1903_v41, 4  ;;  %v247_v35 = vshrl.u32 %v4557_v34, 16  ;;  %v243_v39 = vshll.u32 %v4557_v34, 16 }
  0x67   :  { %921 = vrot.lane.b32.xlu0 %v4376_v33, %s3973_s4  ;;  %2638 = vrot.lane.b32.xlu1 %v3693_v58, %s3975_s20  ;;  %v557_v58 = vrot.slane %v46_v17, 5  ;;  %v1914_v40 = vrot.slane %v1913_v49, 4 }
  0x69   :  { %v558_v0 = vsel %vm4015_vm2, %v556_v57, %v557_v58  ;;  %v1918_v57 = vrot.slane %v1916_v45, 5  ;;  %v3516_v58 = vrot.slane %v4405_v61, 9 }
  0x6a   :  { %v4445_v17 = vcombine.low %v555_v52, %v558_v0 }
  0x6b   :  { %2605 = vrot.lane.b32.xlu0 %v4383_v43, %s3973_s4  ;;  %989 = vrot.lane.b32.xlu1 %v4305_v59, %s3976_s21  ;;  %v4410_v59 = vld [vmem:[%s6838_s0 + $0x40] sm:$0xf]  ;;  %v1919_v11 = vsel %vm4083_vm5, %v1914_v40, %v1918_v57  ;;  %v249_v57 = vrot.slane %v247_v35, 4 }
  0x6c   :  { %v219_v10 = vshll.u32 %v4410_v59, 16  ;;  %v4469_v42 = vcombine.low %v4405_v61, %v4410_v59  ;;  %v561_v53 = vrot.slane %v4410_v59, 5  ;;  %v1909_v61 = vsel %vm4083_vm5, %v1904_v55, %v1908_v38  ;;  %v4569_v38 = vld [vmem:[%s6838_s0 + $0x120] sm:$0xf]  ;;  %v4591_v55 = vld [vmem:[%s6838_s0 + $0x50] sm:$0x1] }
  0x6d   :  { %v4513_v20 = vcombine.low %v1909_v61, %v1919_v11  ;;  %v1921_v45 = vshrl.u32 %v4569_v38, 16 }
  0x6e   :  { %v221_v2 = vrot.slane %v219_v10, 5  ;;  %v563_v60 = vrot.slane %v561_v53, 4  ;;  %v3661_v10 = vrot.slane %v4424_v7, 9 }
  0x6f   :  { %956 = vrot.lane.b32.xlu0 %v4394_v50, %s3975_s20  ;;  %2673 = vrot.lane.b32.xlu1 %v4314_v62, %s3976_s21  ;;  %v223_v62 = vshrl.u32 %v4410_v59, 16 }
  0x70   :  { %v222_v56 = vsel %vm4083_vm5, %v217_v44, %v221_v2  ;;  %v565_v12 = vsel %vm4015_vm2, %v563_v60, %v564_v47  ;;  %v2246_v21 = vsel %vm4015_vm2, %v3661_v10, %v2245_v6  ;;  %v253_v60 = vshll.u32 %v4591_v55, 16 }
  0x71   :  { %v225_v3 = vrot.slane %v223_v62, 4  ;;  %v562_v62 = vsel %vm4015_vm2, %v3516_v58, %v561_v53  ;;  %v1923_v6 = vrot.slane %v1921_v45, 4 }
  0x72   :  { %v4517_v7 = vcombine.low %v562_v62, %v565_v12  ;;  %v4606_v62 = vld [vmem:[%s6838_s0 + $0x128] sm:$0x1] }
  0x73   :  { %2640 = vrot.lane.b32.xlu0 %v4417_v4, %s3975_s20  ;;  %1024 = vrot.lane.b32.xlu1 %v4376_v33, %s3977_s3  ;;  %v226_v32 = vor.u32 %v225_v3, %v221_v2  ;;  %v2249_v2 = vsel %vm4015_vm2, %v2247_v15, %v2248_v16 }
  0x74   :  { %v4529_v22 = vcombine.low %v2246_v21, %v2249_v2  ;;  %v4618_v21 = vcombine.low %v4548_v30, %v4557_v34  ;;  %v255_v2 = vrot.slane %v253_v60, 5 }
  0x75   :  { %v227_v37 = vrot.slane %v226_v32, 4 }
  0x77   :  { %991 = vrot.lane.b32.xlu0 %v4445_v17, %s3976_s21  ;;  %2708 = vrot.lane.b32.xlu1 %v4383_v43, %s3977_s3  ;;  %v232_v59 = vsel %vm4083_vm5, %v227_v37, %v231_v48  ;;  %v1924_v37 = vshll.u32 %v4569_v38, 16 }
  0x78   :  { %v4496_v0 = vcombine.low %v222_v56, %v232_v59  ;;  %v245_v56 = vrot.slane %v243_v39, 5 }
  0x79   :  { %v1926_v10 = vrot.slane %v1924_v37, 5 }
  0x7a   :  { %v250_v61 = vor.u32 %v249_v57, %v245_v56  ;;  %v3517_v57 = vrot.slane %v4548_v30, 9 }
  0x7b   :  { %2675 = vrot.lane.b32.xlu0 %v4458_v29, %s3976_s21  ;;  %1059 = vrot.lane.b32.xlu1 %v4394_v50, %s3978_s14  ;;  %v4485_v63 = vpop.permute.xlu0 %882  ;;  %v1927_v39 = vor.u32 %v1926_v10, %v1923_v6  ;;  %v3529_v6 = vcombine.low %v4024_v8, %v4029_v9 }
  0x7c   :  { %v251_v35 = vrot.slane %v250_v61, 4 }
  0x7d   :  { %v4471_v27 = vpop.permute.xlu1 %880 }
  0x7f   :  { %1026 = vrot.lane.b32.xlu0 %v4469_v42, %s3977_s3  ;;  %2743 = vrot.lane.b32.xlu1 %v4417_v4, %s3978_s14 }
  0x81   :  { %v4490_v52 = vpop.permute.xlu1 %2564 }
  0x83   :  { %2710 = vrot.lane.b32.xlu0 %v4476_v54, %s3977_s3  ;;  %1094 = vrot.lane.b32.xlu1 %v4445_v17, %s3979_s15 }
  0x85   :  { %v4515_v1 = vpop.permute.xlu1 %915 }
  0x86   :  { %v4507_v18 = vpop.permute.xlu0 %800 }
  0x87   :  { %1061 = vrot.lane.b32.xlu0 %v4496_v0, %s3978_s14  ;;  %2778 = vrot.lane.b32.xlu1 %v4458_v29, %s3979_s15 }
  0x8a   :  { %v4525_v3 = vpop.permute.xlu0 %2484 }
  0x8b   :  { %2745 = vrot.lane.b32.xlu0 %v4513_v20, %s3978_s14  ;;  %1096 = vrot.lane.b32.xlu1 %v4517_v7, %s3979_s15 }
  0x8d   :  { %v4531_v24 = vpop.permute.xlu1 %802 }
  0x8f   :  { %808 = vrot.lane.b32.xlu0 %v4394_v50, %s3974_s7  ;;  %2780 = vrot.lane.b32.xlu1 %v4529_v22, %s3979_s15 }
  0x91   :  { %v4537_v25 = vpop.permute.xlu0 %2486  ;;  %v4539_v28 = vpop.permute.xlu1 %2599 }
  0x93   :  { %2492 = vrot.lane.b32.xlu0 %v4417_v4, %s3974_s7  ;;  %888 = vrot.lane.b32.xlu1 %v4445_v17, %s3972_s27  ;;  %v234_v4 = vshrl.u32 %v4548_v30, 16  ;;  %v237_v17 = vshll.u32 %v4548_v30, 16 }
  0x95   :  { %v4550_v32 = vpop.permute.xlu0 %2566  ;;  %v4552_v50 = vpop.permute.xlu1 %950  ;;  %v236_v48 = vrot.slane %v234_v4, 4  ;;  %v239_v49 = vrot.slane %v237_v17, 5  ;;  %v1940_v4 = vshll.u32 %v4606_v62, 16 }
  0x97   :  { %810 = vrot.lane.b32.xlu0 %v4496_v0, %s3974_s7  ;;  %2572 = vrot.lane.b32.xlu1 %v4458_v29, %s3972_s27  ;;  %v4579_v29 = vld [vmem:[%s6838_s0 + $0x124] sm:$0xf]  ;;  %v240_v40 = vor.u32 %v239_v49, %v236_v48  ;;  %v568_v49 = vrot.slane %v4557_v34, 5  ;;  %v1928_v34 = vrot.slane %v1927_v39, 4  ;;  %v4682_v39 = vld [vmem:[%s6838_s0 + $0x12c] sm:$0xf] }
  0x98   :  { %v1934_v53 = vshrl.u32 %v4579_v29, 16  ;;  %v1930_v58 = vshll.u32 %v4579_v29, 16  ;;  %v2252_v30 = vrot.slane %v4579_v29, 5 }
  0x99   :  { %v4572_v41 = vpop.permute.xlu0 %917  ;;  %v4574_v44 = vpop.permute.xlu1 %2634  ;;  %v241_v17 = vrot.slane %v240_v40, 4  ;;  %v256_v40 = vsel %vm4083_vm5, %v251_v35, %v255_v2  ;;  %v570_v10 = vrot.slane %v568_v49, 4  ;;  %v2255_v35 = vrot.slane %v4606_v62, 5 }
  0x9a   :  { %v1932_v11 = vrot.slane %v1930_v58, 5  ;;  %v1936_v12 = vrot.slane %v1934_v53, 4  ;;  %v1942_v53 = vrot.slane %v1940_v4, 5 }
  0x9b   :  { %2494 = vrot.lane.b32.xlu0 %v4513_v20, %s3974_s7  ;;  %923 = vrot.lane.b32.xlu1 %v4469_v42, %s3973_s4  ;;  %v246_v58 = vsel %vm4083_vm5, %v241_v17, %v245_v56  ;;  %v3674_v56 = vcombine.low %v4039_v13, %v4050_v19  ;;  %v3662_v13 = vrot.slane %v4569_v38, 9  ;;  %v4665_v19 = vld [vmem:[%s6838_s0 + $0x54] sm:$0xf] }
  0x9c   :  { %v1937_v45 = vor.u32 %v1936_v12, %v1932_v11  ;;  %v571_v12 = vrot.slane %v4591_v55, 5  ;;  %v4653_v8 = vcombine.low %v246_v58, %v256_v40  ;;  %v1933_v9 = vsel %vm4083_vm5, %v1928_v34, %v1932_v11 }
  0x9d   :  { %v4594_v47 = vpop.permute.xlu0 %2601  ;;  %v4596_v59 = vpop.permute.xlu1 %985  ;;  %v569_v55 = vsel %vm4015_vm2, %v3517_v57, %v568_v49  ;;  %v1125_v11 = vsel %vm1122_vm7, %v3529_v6, %v4507_v18  ;;  %v261_v62 = vshll.u32 %v4665_v19, 16 }
  0x9e   :  { %v1938_v60 = vrot.slane %v1937_v45, 4  ;;  %v572_v17 = vsel %vm4015_vm2, %v570_v10, %v571_v12  ;;  %v258_v45 = vshrl.u32 %v4665_v19, 16  ;;  %v1173_v57 = vsel %vm1171_vm8, %v1125_v11, %v4471_v27 }
  0x9f   :  { %890 = vrot.lane.b32.xlu0 %v4517_v7, %s3972_s27  ;;  %2607 = vrot.lane.b32.xlu1 %v4476_v54, %s3973_s4  ;;  %v4700_v58 = vcombine.low %v569_v55, %v572_v17  ;;  %v1206_v34 = vsel %vm1204_vm9, %v1173_v57, %v4515_v1  ;;  %v4719_v1 = vld [vmem:[%s6838_s0 + $0x5c] sm:$0x1] }
  0xa0   :  { %v1239_v27 = vsel %vm1237_vm10, %v1206_v34, %v4552_v50  ;;  %v260_v50 = vrot.slane %v258_v45, 4 }
  0xa1   :  { %v4608_v15 = vpop.permute.xlu0 %952  ;;  %v4610_v16 = vpop.permute.xlu1 %2669 }
  0xa3   :  { %2574 = vrot.lane.b32.xlu0 %v4529_v22, %s3972_s27  ;;  %958 = vrot.lane.b32.xlu1 %v4496_v0, %s3975_s20  ;;  %v4632_v0 = vcombine.low %v4569_v38, %v4579_v29  ;;  %v1943_v29 = vsel %vm4083_vm5, %v1938_v60, %v1942_v53  ;;  %v2254_v38 = vrot.slane %v2252_v30, 4  ;;  %v4696_v53 = vld [vmem:[%s6838_s0 + $0x130] sm:$0xf]  ;;  %v2808_v60 = vsel %vm1122_vm7, %v3674_v56, %v4525_v3 }
  0xa4   :  { %v4688_v18 = vcombine.low %v1933_v9, %v1943_v29  ;;  %v1945_v9 = vshrl.u32 %v4682_v39, 16  ;;  %v1958_v29 = vshrl.u32 %v4696_v53, 16  ;;  %v1272_v3 = vsel %vm1270_vm11, %v1239_v27, %v4596_v59 }
  0xa5   :  { %v4621_v37 = vpop.permute.xlu0 %2636  ;;  %v4623_v48 = vpop.permute.xlu1 %1020  ;;  %v2256_v12 = vsel %vm4015_vm2, %v2254_v38, %v2255_v35  ;;  %v263_v56 = vrot.slane %v261_v62, 5  ;;  %v1954_v38 = vshll.u32 %v4696_v53, 16  ;;  %v1128_v59 = vsel %vm1122_vm7, %v4043_v14, %v4531_v24 }
  0xa6   :  { %v1305_v11 = vsel %vm1303_vm12, %v1272_v3, %v4623_v48  ;;  %v1947_v14 = vrot.slane %v1945_v9, 4  ;;  %v1960_v34 = vrot.slane %v1958_v29, 4 }
  0xa7   :  { %925 = vrot.lane.b32.xlu0 %v4618_v21, %s3973_s4  ;;  %2642 = vrot.lane.b32.xlu1 %v4513_v20, %s3975_s20  ;;  %v4763_v9 = vrot.slane %v1954_v38, 5 }
  0xa9   :  { %v4641_v61 = vpop.permute.xlu0 %987  ;;  %v4643_v20 = vpop.permute.xlu1 %2704 }
  0xab   :  { %2609 = vrot.lane.b32.xlu0 %v4632_v0, %s3973_s4  ;;  %993 = vrot.lane.b32.xlu1 %v4517_v7, %s3976_s21  ;;  %v4670_v7 = vld [vmem:[%s6838_s0 + $0x58] sm:$0xf] }
  0xac   :  { %v271_v49 = vshrl.u32 %v4670_v7, 16  ;;  %v267_v40 = vshll.u32 %v4670_v7, 16  ;;  %v4770_v29 = vcombine.low %v4665_v19, %v4670_v7 }
  0xad   :  { %v4674_v2 = vpop.permute.xlu0 %2671  ;;  %v1056_v4 = vpop.permute.xlu1 %1055 }
  0xae   :  { %v273_v55 = vrot.slane %v271_v49, 4  ;;  %v4731_v17 = vrot.slane %v267_v40, 5  ;;  %v1338_v45 = vsel %vm1336_vm13, %v1305_v11, %v1056_v4  ;;  %v4747_v40 = vld [vmem:[%s6838_s0 + $0x134] sm:$0x1] }
  0xaf   :  { %960 = vrot.lane.b32.xlu0 %v4653_v8, %s3975_s20  ;;  %2677 = vrot.lane.b32.xlu1 %v4529_v22, %s3976_s21  ;;  %v2253_v22 = vsel %vm4015_vm2, %v3662_v13, %v2252_v30  ;;  %v1948_v30 = vshll.u32 %v4682_v39, 16  ;;  %v2855_v13 = vsel %vm1171_vm8, %v2808_v60, %v4490_v52  ;;  %v277_v52 = vshll.u32 %v4719_v1, 16 }
  0xb0   :  { %v2887_v35 = vsel %vm1204_vm9, %v2855_v13, %v4539_v28  ;;  %v4755_v4 = vcombine.low %v2253_v22, %v2256_v12  ;;  %v1175_v60 = vsel %vm1171_vm8, %v1128_v59, %v4485_v63  ;;  %v1964_v63 = vshll.u32 %v4747_v40, 16 }
  0xb1   :  { %v1023_v6 = vpop.permute.xlu0 %1022  ;;  %v2740_v10 = vpop.permute.xlu1 %2739  ;;  %v2919_v48 = vsel %vm1237_vm10, %v2887_v35, %v4574_v44  ;;  %v1950_v24 = vrot.slane %v1948_v30, 5  ;;  %v264_v44 = vor.u32 %v263_v56, %v260_v50  ;;  %v1208_v30 = vsel %vm1204_vm9, %v1175_v60, %v4572_v41 }
  0xb2   :  { %v2951_v28 = vsel %vm1270_vm11, %v2919_v48, %v4610_v16  ;;  %v274_v16 = vor.u32 %v273_v55, %v4731_v17  ;;  %v279_v56 = vrot.slane %v277_v52, 5  ;;  %v2811_v41 = vsel %vm1122_vm7, %v4128_v46, %v4537_v25 }
  0xb3   :  { %2644 = vrot.lane.b32.xlu0 %v4688_v18, %s3975_s20  ;;  %1028 = vrot.lane.b32.xlu1 %v4618_v21, %s3977_s3  ;;  %v2983_v27 = vsel %vm1303_vm12, %v2951_v28, %v4643_v20  ;;  %v1241_v20 = vsel %vm1237_vm10, %v1208_v30, %v4608_v15  ;;  %v1951_v55 = vor.u32 %v1950_v24, %v1947_v14  ;;  %v265_v13 = vrot.slane %v264_v44, 4 }
  0xb4   :  { %v3015_v22 = vsel %vm1336_vm13, %v2983_v27, %v2740_v10  ;;  %v1274_v10 = vsel %vm1270_vm11, %v1241_v20, %v4641_v61  ;;  %v575_v15 = vrot.slane %v4670_v7, 5  ;;  %v2857_v11 = vsel %vm1171_vm8, %v2811_v41, %v4550_v32 }
  0xb5   :  { %v2707_v62 = vpop.permute.xlu0 %2706  ;;  %v1091_v49 = vpop.permute.xlu1 %1090  ;;  %v1307_v38 = vsel %vm1303_vm12, %v1274_v10, %v1023_v6  ;;  %v275_v46 = vrot.slane %v274_v16, 4  ;;  %v1961_v25 = vor.u32 %v1960_v34, %v4763_v9  ;;  %v2889_v61 = vsel %vm1204_vm9, %v2857_v11, %v4594_v47  ;;  %v4884_v11 = vld [vmem:[%s6838_s0 + $0x60] sm:$0xf] }
  0xb6   :  { %v1371_v57 = vsel %vm1369_vm14, %v1338_v45, %v1091_v49  ;;  %v4796_v7 = vcombine.low %v4682_v39, %v4696_v53  ;;  %v3518_v32 = vrot.slane %v4665_v19, 9  ;;  %v2921_v6 = vsel %vm1237_vm10, %v2889_v61, %v4621_v37  ;;  %v4905_v61 = vld [vmem:[%s6838_s0 + $0x138] sm:$0xf] }
  0xb7   :  { %995 = vrot.lane.b32.xlu0 %v4700_v58, %s3976_s21  ;;  %2712 = vrot.lane.b32.xlu1 %v4632_v0, %s3977_s3  ;;  %v1952_v52 = vrot.slane %v1951_v55, 4  ;;  %v1966_v48 = vrot.slane %v1964_v63, 5  ;;  %v2953_v47 = vsel %vm1270_vm11, %v2921_v6, %v4674_v2  ;;  %v270_v19 = vsel %vm4083_vm5, %v265_v13, %v4731_v17 }
  0xb8   :  { %3805 = vmatprep.mubr.msk.bf16.mxu0 %vm1421_vm15, %v1371_v57  ;;  %v577_v57 = vrot.slane %v575_v15, 4  ;;  %v578_v37 = vrot.slane %v4719_v1, 5  ;;  %v2985_v14 = vsel %vm1303_vm12, %v2953_v47, %v2707_v62  ;;  %v280_v2 = vsel %vm4083_vm5, %v275_v46, %v279_v56  ;;  %v4893_v46 = vld [vmem:[%s6838_s0 + $0x64] sm:$0xf] }
  0xb9   :  { %v1058_v12 = vpop.permute.xlu0 %1057  ;;  %v2775_v3 = vpop.permute.xlu1 %2774  ;;  %v1962_v24 = vrot.slane %v1961_v25, 4  ;;  %v2259_v28 = vrot.slane %v4696_v53, 5  ;;  %v4825_v1 = vcombine.low %v270_v19, %v280_v2  ;;  %v1957_v62 = vsel %vm4083_vm5, %v1952_v52, %v4763_v9 }
  0xba   :  { %v3047_v50 = vsel %vm1369_vm14, %v3015_v22, %v2775_v3  ;;  %v1340_v59 = vsel %vm1336_vm13, %v1307_v38, %v1058_v12  ;;  %v576_v53 = vsel %vm4015_vm2, %v3518_v32, %v575_v15  ;;  %v3663_v27 = vrot.slane %v4682_v39, 9 }
  0xbb   :  { %2679 = vrot.lane.b32.xlu0 %v4755_v4, %s3976_s21  ;;  %1063 = vrot.lane.b32.xlu1 %v4653_v8, %s3978_s14  ;;  %v1967_v16 = vsel %vm4083_vm5, %v1962_v24, %v1966_v48  ;;  %v579_v30 = vsel %vm4015_vm2, %v577_v57, %v578_v37  ;;  %v2261_v22 = vrot.slane %v2259_v28, 4  ;;  %v2262_v12 = vrot.slane %v4747_v40, 5  ;;  %v4927_v48 = vld [vmem:[%s6838_s0 + $0x68] sm:$0x1] }
  0xbc   :  { %3843 = vmatprep.mubr.msk.bf16.mxu1 %vm1421_vm15, %v3047_v50  ;;  %v4847_v39 = vcombine.low %v1957_v62, %v1967_v16  ;;  %v4849_v9 = vcombine.low %v576_v53, %v579_v30  ;;  %v2260_v20 = vsel %vm4015_vm2, %v3663_v27, %v2259_v28  ;;  %v295_v25 = vshrl.u32 %v4893_v46, 16  ;;  %v3628_v30 = vld [vmem:[%s6838_s0 + $0x140] sm:$0x1] }
  0xbd   :  { %v2742_v35 = vpop.permute.xlu0 %2741  ;;  %v1093_v45 = vpop.permute.xlu1 %1092  ;;  %v2263_v40 = vsel %vm4015_vm2, %v2261_v22, %v2262_v12  ;;  %v1969_v32 = vshrl.u32 %v4905_v61, 16  ;;  %v1972_v6 = vshll.u32 %v4905_v61, 16  ;;  %v301_v24 = vshll.u32 %v4927_v48, 16 }
  0xbe   :  { %v1373_v49 = vsel %vm1369_vm14, %v1340_v59, %v1093_v45  ;;  %v3017_v44 = vsel %vm1336_vm13, %v2985_v14, %v2742_v35  ;;  %v4863_v55 = vcombine.low %v2260_v20, %v2263_v40  ;;  %v4910_v59 = vld [vmem:[%s6838_s0 + $0x13c] sm:$0xf]  ;;  %v291_v35 = vshll.u32 %v4893_v46, 16 }
  0xbf   :  { %1030 = vrot.lane.b32.xlu0 %v4770_v29, %s3977_s3  ;;  %2747 = vrot.lane.b32.xlu1 %v4688_v18, %s3978_s14  ;;  %v297_v57 = vrot.slane %v295_v25, 4  ;;  %v1978_v37 = vshll.u32 %v4910_v59, 16  ;;  %v1971_v28 = vrot.slane %v1969_v32, 4  ;;  %v4952_v22 = vcombine.low %v4884_v11, %v4893_v46 }
  0xc0   :  { %3806 = vmatmul.mubr.msk.bf16.vlgmr.msra.gmra.mrb[0].mxu0 %vm1421_vm15, %v1373_v49  ;;  %v1982_v49 = vshrl.u32 %v4910_v59, 16  ;;  %v293_v19 = vrot.slane %v291_v35, 5  ;;  %v303_v12 = vrot.slane %v301_v24, 5  ;;  %v1988_v25 = vshll.u32 %v3628_v30, 16 }
  0xc1   :  { %v4818_v34 = vpop.permute.xlu0 %804  ;;  %v2777_v60 = vpop.permute.xlu1 %2776  ;;  %v1980_v62 = vrot.slane %v1978_v37, 5 }
  0xc2   :  { %v3049_v17 = vsel %vm1369_vm14, %v3017_v44, %v2777_v60  ;;  %v1974_v44 = vrot.slane %v1972_v6, 5  ;;  %v1984_v53 = vrot.slane %v1982_v49, 4  ;;  %v582_v49 = vrot.slane %v4893_v46, 5 }
  0xc3   :  { %2714 = vrot.lane.b32.xlu0 %v4796_v7, %s3977_s3  ;;  %1098 = vrot.lane.b32.xlu1 %v4700_v58, %s3979_s15  ;;  %v1990_v37 = vrot.slane %v1988_v25, 5  ;;  %v3519_v46 = vrot.slane %v4884_v11, 9  ;;  %v2269_v25 = vrot.slane %v3628_v30, 5 }
  0xc4   :  { %3844 = vmatmul.mubr.msk.bf16.vlgmr.msra.gmra.mrb[0].mxu1 %vm1421_vm15, %v3049_v17  ;;  %v298_v17 = vor.u32 %v297_v57, %v293_v19  ;;  %v1975_v20 = vor.u32 %v1974_v44, %v1971_v28  ;;  %v4979_v44 = vld [vmem:[%s6838_s0 + $0x6c] sm:$0xf] }
  0xc5   :  { %v4839_v3 = vpop.permute.xlu0 %2488  ;;  %v4841_v63 = vpop.permute.xlu1 %884 }
  0xc6   :  { %v1976_v6 = vrot.slane %v1975_v20, 4  ;;  %v306_v20 = vshrl.u32 %v4979_v44, 16 }
  0xc7   :  { %1065 = vrot.lane.b32.xlu0 %v4825_v1, %s3978_s14  ;;  %2782 = vrot.lane.b32.xlu1 %v4755_v4, %s3979_s15 }
  0xc9   :  { %v4855_v50 = vpop.permute.xlu0 %806  ;;  %v4857_v56 = vpop.permute.xlu1 %2568 }
  0xcb   :  { %2749 = vrot.lane.b32.xlu0 %v4847_v39, %s3978_s14  ;;  %1100 = vrot.lane.b32.xlu1 %v4849_v9, %s3979_s15 }
  0xcd   :  { %v4865_v41 = vpop.permute.xlu0 %2490  ;;  %v4867_v10 = vpop.permute.xlu1 %919 }
  0xcf   :  { %812 = vrot.lane.b32.xlu0 %v4653_v8, %s3974_s7  ;;  %2784 = vrot.lane.b32.xlu1 %v4863_v55, %s3979_s15 }
  0xd1   :  { %v4873_v13 = vpop.permute.xlu0 %886  ;;  %v4875_v15 = vpop.permute.xlu1 %2603 }
  0xd3   :  { %2496 = vrot.lane.b32.xlu0 %v4688_v18, %s3974_s7  ;;  %892 = vrot.lane.b32.xlu1 %v4700_v58, %s3972_s27  ;;  %v282_v18 = vshrl.u32 %v4884_v11, 16  ;;  %v285_v58 = vshll.u32 %v4884_v11, 16 }
  0xd5   :  { %v4886_v38 = vpop.permute.xlu0 %2570  ;;  %v4888_v8 = vpop.permute.xlu1 %954  ;;  %v284_v52 = vrot.slane %v282_v18, 4  ;;  %v287_v47 = vrot.slane %v285_v58, 5  ;;  %v299_v18 = vrot.slane %v298_v17, 4  ;;  %v1985_v58 = vor.u32 %v1984_v53, %v1980_v62 }
  0xd6   :  { %v584_v17 = vrot.slane %v582_v49, 4  ;;  %v585_v53 = vrot.slane %v4927_v48, 5  ;;  %v583_v48 = vsel %vm4015_vm2, %v3519_v46, %v582_v49 }
  0xd7   :  { %814 = vrot.lane.b32.xlu0 %v4825_v1, %s3974_s7  ;;  %2576 = vrot.lane.b32.xlu1 %v4755_v4, %s3972_s27  ;;  %v288_v60 = vor.u32 %v287_v47, %v284_v52  ;;  %v304_v47 = vsel %vm4083_vm5, %v299_v18, %v303_v12  ;;  %v1986_v57 = vrot.slane %v1985_v58, 4  ;;  %v3664_v12 = vrot.slane %v4905_v61, 9 }
  0xd8   :  { %v586_v30 = vsel %vm4015_vm2, %v584_v17, %v585_v53 }
  0xd9   :  { %v4913_v45 = vpop.permute.xlu0 %921  ;;  %v4915_v4 = vpop.permute.xlu1 %2638  ;;  %v289_v40 = vrot.slane %v288_v60, 4  ;;  %v1991_v11 = vsel %vm4083_vm5, %v1986_v57, %v1990_v37 }
  0xdb   :  { %2498 = vrot.lane.b32.xlu0 %v4847_v39, %s3974_s7  ;;  %927 = vrot.lane.b32.xlu1 %v4770_v29, %s3973_s4  ;;  %v294_v52 = vsel %vm4083_vm5, %v289_v40, %v293_v19  ;;  %v4985_v19 = vld [vmem:[%s6838_s0 + $0x70] sm:$0xf]  ;;  %v309_v40 = vshll.u32 %v4979_v44, 16 }
  0xdc   :  { %v4991_v60 = vcombine.low %v294_v52, %v304_v47  ;;  %v319_v52 = vshrl.u32 %v4985_v19, 16  ;;  %v5021_v47 = vld [vmem:[%s6838_s0 + $0x144] sm:$0xf] }
  0xdd   :  { %v4930_v14 = vpop.permute.xlu0 %2605  ;;  %v4932_v2 = vpop.permute.xlu1 %989  ;;  %v311_v57 = vrot.slane %v309_v40, 5  ;;  %v2814_v40 = vsel %vm1122_vm7, %v4180_v31, %v4839_v3 }
  0xdf   :  { %894 = vrot.lane.b32.xlu0 %v4849_v9, %s3972_s27  ;;  %2611 = vrot.lane.b32.xlu1 %v4796_v7, %s3973_s4 }
  0xe1   :  { %v4939_v27 = vpop.permute.xlu0 %956  ;;  %v4941_v16 = vpop.permute.xlu1 %2673 }
  0xe3   :  { %2578 = vrot.lane.b32.xlu0 %v4863_v55, %s3972_s27  ;;  %962 = vrot.lane.b32.xlu1 %v4825_v1, %s3975_s20  ;;  %v4964_v1 = vcombine.low %v4905_v61, %v4910_v59  ;;  %v1131_v61 = vsel %vm1122_vm7, %v4173_v23, %v4818_v34  ;;  %v5030_v34 = vld [vmem:[%s6838_s0 + $0x148] sm:$0xf] }
  0xe4   :  { %v1177_v49 = vsel %vm1171_vm8, %v1131_v61, %v4841_v63  ;;  %v321_v63 = vrot.slane %v319_v52, 4  ;;  %v2859_v52 = vsel %vm1171_vm8, %v2814_v40, %v4857_v56 }
  0xe5   :  { %v4954_v35 = vpop.permute.xlu0 %2640  ;;  %v4956_v32 = vpop.permute.xlu1 %1024  ;;  %v1210_v37 = vsel %vm1204_vm9, %v1177_v49, %v4867_v10  ;;  %v5047_v10 = vld [vmem:[%s6838_s0 + $0x74] sm:$0x1] }
  0xe7   :  { %929 = vrot.lane.b32.xlu0 %v4952_v22, %s3973_s4  ;;  %2646 = vrot.lane.b32.xlu1 %v4847_v39, %s3975_s20  ;;  %v2266_v39 = vrot.slane %v4910_v59, 5  ;;  %v1981_v59 = vsel %vm4083_vm5, %v1976_v6, %v1980_v62  ;;  %v315_v62 = vshll.u32 %v4985_v19, 16 }
  0xe8   :  { %v5014_v6 = vcombine.low %v1981_v59, %v1991_v11  ;;  %v5040_v11 = vcombine.low %v583_v48, %v586_v30 }
  0xe9   :  { %v4971_v24 = vpop.permute.xlu0 %991  ;;  %v4973_v28 = vpop.permute.xlu1 %2708  ;;  %v2268_v58 = vrot.slane %v2266_v39, 4  ;;  %v2267_v23 = vsel %vm4015_vm2, %v3664_v12, %v2266_v39  ;;  %v5036_v53 = vrot.slane %v315_v62, 5  ;;  %v1243_v39 = vsel %vm1237_vm10, %v1210_v37, %v4888_v8 }
  0xea   :  { %v1993_v12 = vshrl.u32 %v5021_v47, 16  ;;  %v2006_v8 = vshrl.u32 %v5030_v34, 16  ;;  %v325_v37 = vshll.u32 %v5047_v10, 16 }
  0xeb   :  { %2613 = vrot.lane.b32.xlu0 %v4964_v1, %s3973_s4  ;;  %997 = vrot.lane.b32.xlu1 %v4849_v9, %s3976_s21  ;;  %v2270_v17 = vsel %vm4015_vm2, %v2268_v58, %v2269_v25  ;;  %v1276_v58 = vsel %vm1270_vm11, %v1243_v39, %v4932_v2  ;;  %v2002_v25 = vshll.u32 %v5030_v34, 16  ;;  %v2891_v2 = vsel %vm1204_vm9, %v2859_v52, %v4875_v15 }
  0xec   :  { %v1309_v62 = vsel %vm1303_vm12, %v1276_v58, %v4956_v32  ;;  %v5064_v31 = vcombine.low %v2267_v23, %v2270_v17  ;;  %v322_v49 = vor.u32 %v321_v63, %v5036_v53  ;;  %v2923_v56 = vsel %vm1237_vm10, %v2891_v2, %v4915_v4 }
  0xed   :  { %v5001_v18 = vpop.permute.xlu0 %2675  ;;  %v1060_v9 = vpop.permute.xlu1 %1059  ;;  %v1995_v32 = vrot.slane %v1993_v12, 4  ;;  %v2955_v15 = vsel %vm1270_vm11, %v2923_v56, %v4941_v16  ;;  %v2008_v4 = vrot.slane %v2006_v8, 4  ;;  %v327_v8 = vrot.slane %v325_v37, 5 }
  0xee   :  { %v1342_v48 = vsel %vm1336_vm13, %v1309_v62, %v1060_v9  ;;  %v5083_v9 = vrot.slane %v2002_v25, 5  ;;  %v2987_v17 = vsel %vm1303_vm12, %v2955_v15, %v4973_v28  ;;  %v323_v28 = vrot.slane %v322_v49, 4 }
  0xef   :  { %964 = vrot.lane.b32.xlu0 %v4991_v60, %s3975_s20  ;;  %2681 = vrot.lane.b32.xlu1 %v4863_v55, %s3976_s21  ;;  %v308_v55 = vrot.slane %v306_v20, 4  ;;  %v1996_v20 = vshll.u32 %v5021_v47, 16  ;;  %v2817_v52 = vsel %vm1122_vm7, %v4277_v36, %v4865_v41  ;;  %v589_v36 = vrot.slane %v4985_v19, 5 }
  0xf0   :  { %v2861_v62 = vsel %vm1171_vm8, %v2817_v52, %v4886_v38 }
  0xf1   :  { %v1027_v46 = vpop.permute.xlu0 %1026  ;;  %v2744_v59 = vpop.permute.xlu1 %2743  ;;  %v312_v3 = vor.u32 %v311_v57, %v308_v55  ;;  %v1998_v23 = vrot.slane %v1996_v20, 5  ;;  %v1134_v55 = vsel %vm1122_vm7, %v4272_v26, %v4855_v50  ;;  %v5092_v26 = vcombine.low %v4979_v44, %v4985_v19  ;;  %v5097_v50 = vld [vmem:[%s6838_s0 + $0x14c] sm:$0x1] }
  0xf2   :  { %v1179_v57 = vsel %vm1171_vm8, %v1134_v55, %v4873_v13  ;;  %v3019_v63 = vsel %vm1336_vm13, %v2987_v17, %v2744_v59  ;;  %v2009_v59 = vor.u32 %v2008_v4, %v5083_v9  ;;  %v2893_v41 = vsel %vm1204_vm9, %v2861_v62, %v4930_v14 }
  0xf3   :  { %2648 = vrot.lane.b32.xlu0 %v5014_v6, %s3975_s20  ;;  %1032 = vrot.lane.b32.xlu1 %v4952_v22, %s3977_s3  ;;  %v1212_v16 = vsel %vm1204_vm9, %v1179_v57, %v4913_v45  ;;  %v313_v20 = vrot.slane %v312_v3, 4  ;;  %v1999_v25 = vor.u32 %v1998_v23, %v1995_v32  ;;  %v328_v14 = vsel %vm4083_vm5, %v323_v28, %v327_v8 }
  0xf4   :  { %v1245_v40 = vsel %vm1237_vm10, %v1212_v16, %v4939_v27  ;;  %v2012_v27 = vshll.u32 %v5097_v50, 16  ;;  %v2010_v56 = vrot.slane %v2009_v59, 4  ;;  %v591_v32 = vrot.slane %v589_v36, 4 }
  0xf5   :  { %v2711_v61 = vpop.permute.xlu0 %2710  ;;  %v1095_v30 = vpop.permute.xlu1 %1094  ;;  %v1278_v45 = vsel %vm1270_vm11, %v1245_v40, %v4971_v24  ;;  %v318_v38 = vsel %vm4083_vm5, %v313_v20, %v5036_v53  ;;  %v2000_v49 = vrot.slane %v1999_v25, 4  ;;  %v592_v23 = vrot.slane %v5047_v10, 5 }
  0xf6   :  { %v1375_v39 = vsel %vm1369_vm14, %v1342_v48, %v1095_v30  ;;  %v1311_v3 = vsel %vm1303_vm12, %v1278_v45, %v1027_v46  ;;  %v5126_v30 = vcombine.low %v5021_v47, %v5030_v34  ;;  %v2925_v46 = vsel %vm1237_vm10, %v2893_v41, %v4954_v35  ;;  %v5235_v41 = vld [vmem:[%s6838_s0 + $0x150] sm:$0xf] }
  0xf7   :  { %999 = vrot.lane.b32.xlu0 %v5040_v11, %s3976_s21  ;;  %2716 = vrot.lane.b32.xlu1 %v4964_v1, %s3977_s3  ;;  %v2957_v37 = vsel %vm1270_vm11, %v2925_v46, %v5001_v18  ;;  %v2014_v53 = vrot.slane %v2012_v27, 5  ;;  %v2273_v55 = vrot.slane %v5030_v34, 5  ;;  %v5151_v17 = vcombine.low %v318_v38, %v328_v14  ;;  %v5214_v27 = vld [vmem:[%s6838_s0 + $0x78] sm:$0xf] }
  0xf8   :  { %3809 = vmatprep.mubr.msk.bf16.mxu0 %vm1421_vm15, %v1375_v39  ;;  %v3520_v39 = vrot.slane %v4979_v44, 9  ;;  %v2989_v35 = vsel %vm1303_vm12, %v2957_v37, %v2711_v61  ;;  %v2005_v44 = vsel %vm4083_vm5, %v2000_v49, %v5083_v9  ;;  %v593_v61 = vsel %vm4015_vm2, %v591_v32, %v592_v23 }
  0xf9   :  { %v1062_v13 = vpop.permute.xlu0 %1061  ;;  %v2779_v12 = vpop.permute.xlu1 %2778  ;;  %v2015_v34 = vsel %vm4083_vm5, %v2010_v56, %v2014_v53  ;;  %v3665_v16 = vrot.slane %v5021_v47, 9  ;;  %v2020_v46 = vshll.u32 %v5235_v41, 16 }
  0xfa   :  { %v3051_v58 = vsel %vm1369_vm14, %v3019_v63, %v2779_v12  ;;  %v1344_v24 = vsel %vm1336_vm13, %v1311_v3, %v1062_v13  ;;  %v590_v10 = vsel %vm4015_vm2, %v3520_v39, %v589_v36  ;;  %v2275_v63 = vrot.slane %v2273_v55, 4  ;;  %v5258_v39 = vld [vmem:[%s6838_s0 + $0x80] sm:$0x1] }
  0xfb   :  { %2683 = vrot.lane.b32.xlu0 %v5064_v31, %s3976_s21  ;;  %1067 = vrot.lane.b32.xlu1 %v4991_v60, %s3978_s14  ;;  %v2276_v13 = vrot.slane %v5097_v50, 5  ;;  %v5177_v9 = vcombine.low %v2005_v44, %v2015_v34  ;;  %v5179_v28 = vcombine.low %v590_v10, %v593_v61  ;;  %v2274_v47 = vsel %vm4015_vm2, %v3665_v16, %v2273_v55  ;;  %v3634_v10 = vld [vmem:[%s6838_s0 + $0x158] sm:$0x1] }
  0xfc   :  { %3847 = vmatprep.mubr.msk.bf16.mxu1 %vm1421_vm15, %v3051_v58  ;;  %v330_v36 = vshrl.u32 %v5214_v27, 16 }
  0xfd   :  { %v2746_v2 = vpop.permute.xlu0 %2745  ;;  %v1097_v48 = vpop.permute.xlu1 %1096  ;;  %v2277_v50 = vsel %vm4015_vm2, %v2275_v63, %v2276_v13 }
  0xfe   :  { %v1377_v19 = vsel %vm1369_vm14, %v1344_v24, %v1097_v48  ;;  %v3021_v18 = vsel %vm1336_vm13, %v2989_v35, %v2746_v2  ;;  %v5193_v8 = vcombine.low %v2274_v47, %v2277_v50  ;;  %v5241_v2 = vld [vmem:[%s6838_s0 + $0x154] sm:$0xf] }
  0xff   :  { %1034 = vrot.lane.b32.xlu0 %v5092_v26, %s3977_s3  ;;  %2751 = vrot.lane.b32.xlu1 %v5014_v6, %s3978_s14  ;;  %v2030_v49 = vshrl.u32 %v5241_v2, 16  ;;  %v2026_v53 = vshll.u32 %v5241_v2, 16 }
 0x100   :  { %3810 = vmatmul.mubr.msk.bf16.gmra.mrb[4].mxu0 %vm1421_vm15, %v1377_v19  ;;  %v332_v19 = vrot.slane %v330_v36, 4 }
 0x101   :  { %v5148_v15 = vpop.permute.xlu0 %808  ;;  %v2781_v4 = vpop.permute.xlu1 %2780  ;;  %v2028_v44 = vrot.slane %v2026_v53, 5  ;;  %v2032_v34 = vrot.slane %v2030_v49, 4 }
 0x102   :  { %v3053_v57 = vsel %vm1369_vm14, %v3021_v18, %v2781_v4  ;;  %v2022_v18 = vrot.slane %v2020_v46, 5  ;;  %v5290_v46 = vcombine.low %v5235_v41, %v5241_v2 }
 0x103   :  { %2718 = vrot.lane.b32.xlu0 %v5126_v30, %s3977_s3  ;;  %1102 = vrot.lane.b32.xlu1 %v5040_v11, %s3979_s15 }
 0x104   :  { %3848 = vmatmul.mubr.msk.bf16.gmra.mrb[4].mxu1 %vm1421_vm15, %v3053_v57  ;;  %v349_v57 = vshll.u32 %v5258_v39, 16 }
 0x105   :  { %v5169_v12 = vpop.permute.xlu0 %2492  ;;  %v5171_v20 = vpop.permute.xlu1 %888 }
 0x106   :  { %v351_v36 = vrot.slane %v349_v57, 5  ;;  %v3521_v57 = vrot.slane %v5214_v27, 9 }
 0x107   :  { %1069 = vrot.lane.b32.xlu0 %v5151_v17, %s3978_s14  ;;  %2786 = vrot.lane.b32.xlu1 %v5064_v31, %s3979_s15 }
 0x109   :  { %v5185_v40 = vpop.permute.xlu0 %810  ;;  %v5187_v58 = vpop.permute.xlu1 %2572 }
 0x10b   :  { %2753 = vrot.lane.b32.xlu0 %v5177_v9, %s3978_s14  ;;  %1104 = vrot.lane.b32.xlu1 %v5179_v28, %s3979_s15 }
 0x10d   :  { %v5195_v25 = vpop.permute.xlu0 %2494  ;;  %v5197_v52 = vpop.permute.xlu1 %923 }
 0x10f   :  { %816 = vrot.lane.b32.xlu0 %v4991_v60, %s3974_s7  ;;  %2788 = vrot.lane.b32.xlu1 %v5193_v8, %s3979_s15  ;;  %v5219_v60 = vld [vmem:[%s6838_s0 + $0x7c] sm:$0xf] }
 0x110   :  { %v339_v24 = vshll.u32 %v5219_v60, 16  ;;  %v5278_v63 = vcombine.low %v5214_v27, %v5219_v60  ;;  %v596_v53 = vrot.slane %v5219_v60, 5 }
 0x111   :  { %v5203_v45 = vpop.permute.xlu0 %890  ;;  %v5205_v59 = vpop.permute.xlu1 %2607 }
 0x112   :  { %v341_v37 = vrot.slane %v339_v24, 5 }
 0x113   :  { %2500 = vrot.lane.b32.xlu0 %v5014_v6, %s3974_s7  ;;  %896 = vrot.lane.b32.xlu1 %v5040_v11, %s3972_s27  ;;  %v333_v6 = vshll.u32 %v5214_v27, 16  ;;  %v343_v11 = vshrl.u32 %v5219_v60, 16  ;;  %v5318_v60 = vld [vmem:[%s6838_s0 + $0x88] sm:$0xf]  ;;  %v1137_v27 = vsel %vm1122_vm7, %v4376_v33, %v5148_v15 }
 0x114   :  { %v1181_v33 = vsel %vm1171_vm8, %v1137_v27, %v5171_v20 }
 0x115   :  { %v5221_v62 = vpop.permute.xlu0 %2574  ;;  %v5223_v3 = vpop.permute.xlu1 %958  ;;  %v335_v14 = vrot.slane %v333_v6, 5  ;;  %v345_v56 = vrot.slane %v343_v11, 4  ;;  %v2033_v6 = vor.u32 %v2032_v34, %v2028_v44  ;;  %v2036_v11 = vshll.u32 %v3634_v10, 16 }
 0x116   :  { %v598_v34 = vrot.slane %v596_v53, 4 }
 0x117   :  { %818 = vrot.lane.b32.xlu0 %v5151_v17, %s3974_s7  ;;  %2580 = vrot.lane.b32.xlu1 %v5064_v31, %s3972_s27  ;;  %v2017_v31 = vshrl.u32 %v5235_v41, 16  ;;  %v336_v23 = vor.u32 %v335_v14, %v332_v19  ;;  %v346_v4 = vor.u32 %v345_v56, %v341_v37  ;;  %v2034_v49 = vrot.slane %v2033_v6, 4 }
 0x118   :  { %v2038_v56 = vrot.slane %v2036_v11, 5 }
 0x119   :  { %v5243_v48 = vpop.permute.xlu0 %925  ;;  %v5245_v38 = vpop.permute.xlu1 %2642  ;;  %v2019_v55 = vrot.slane %v2017_v31, 4  ;;  %v337_v13 = vrot.slane %v336_v23, 4  ;;  %v347_v50 = vrot.slane %v346_v4, 4 }
 0x11b   :  { %2502 = vrot.lane.b32.xlu0 %v5177_v9, %s3974_s7  ;;  %931 = vrot.lane.b32.xlu1 %v5092_v26, %s3973_s4  ;;  %v2023_v47 = vor.u32 %v2022_v18, %v2019_v55  ;;  %v342_v19 = vsel %vm4083_vm5, %v337_v13, %v341_v37  ;;  %v2280_v37 = vrot.slane %v5241_v2, 5  ;;  %v5309_v18 = vld [vmem:[%s6838_s0 + $0x84] sm:$0xf]  ;;  %v2039_v2 = vsel %vm4083_vm5, %v2034_v49, %v2038_v56 }
 0x11c   :  { %v599_v13 = vrot.slane %v5258_v39, 5 }
 0x11d   :  { %v5260_v35 = vpop.permute.xlu0 %2609  ;;  %v5262_v32 = vpop.permute.xlu1 %993  ;;  %v2024_v14 = vrot.slane %v2023_v47, 4  ;;  %v354_v47 = vshrl.u32 %v5309_v18, 16  ;;  %v2282_v11 = vrot.slane %v2280_v37, 4 }
 0x11e   :  { %v600_v39 = vsel %vm4015_vm2, %v598_v34, %v599_v13 }
 0x11f   :  { %898 = vrot.lane.b32.xlu0 %v5179_v28, %s3972_s27  ;;  %2615 = vrot.lane.b32.xlu1 %v5126_v30, %s3973_s4  ;;  %v356_v49 = vrot.slane %v354_v47, 4 }
 0x121   :  { %v5272_v61 = vpop.permute.xlu0 %960  ;;  %v5274_v16 = vpop.permute.xlu1 %2677 }
 0x123   :  { %2582 = vrot.lane.b32.xlu0 %v5193_v8, %s3972_s27  ;;  %966 = vrot.lane.b32.xlu1 %v5151_v17, %s3975_s20  ;;  %v352_v17 = vsel %vm4083_vm5, %v347_v50, %v351_v36  ;;  %v357_v50 = vshll.u32 %v5309_v18, 16 }
 0x124   :  { %v5311_v4 = vcombine.low %v342_v19, %v352_v17  ;;  %v2283_v19 = vrot.slane %v3634_v10, 5  ;;  %v5351_v10 = vld [vmem:[%s6838_s0 + $0x15c] sm:$0xf] }
 0x125   :  { %v5284_v24 = vpop.permute.xlu0 %2644  ;;  %v5286_v31 = vpop.permute.xlu1 %1028  ;;  %v359_v56 = vrot.slane %v357_v50, 5  ;;  %v2044_v47 = vshll.u32 %v5351_v10, 16  ;;  %v2820_v50 = vsel %vm1122_vm7, %v4383_v43, %v5169_v12 }
 0x127   :  { %933 = vrot.lane.b32.xlu0 %v5278_v63, %s3973_s4  ;;  %2650 = vrot.lane.b32.xlu1 %v5177_v9, %s3975_s20  ;;  %v2029_v9 = vsel %vm4083_vm5, %v2024_v14, %v2028_v44  ;;  %v3666_v44 = vrot.slane %v5235_v41, 9  ;;  %v363_v14 = vshll.u32 %v5318_v60, 16  ;;  %v597_v41 = vsel %vm4015_vm2, %v3521_v57, %v596_v53 }
 0x128   :  { %v5335_v17 = vcombine.low %v2029_v9, %v2039_v2  ;;  %v1214_v53 = vsel %vm1204_vm9, %v1181_v33, %v5197_v52  ;;  %v2284_v57 = vsel %vm4015_vm2, %v2282_v11, %v2283_v19  ;;  %v5370_v13 = vcombine.low %v597_v41, %v600_v39  ;;  %v5377_v52 = vld [vmem:[%s6838_s0 + $0x8c] sm:$0x1] }
 0x129   :  { %v5301_v23 = vpop.permute.xlu0 %995  ;;  %v5303_v55 = vpop.permute.xlu1 %2712  ;;  %v2281_v15 = vsel %vm4015_vm2, %v3666_v44, %v2280_v37  ;;  %v5366_v34 = vrot.slane %v363_v14, 5  ;;  %v1247_v37 = vsel %vm1237_vm10, %v1214_v53, %v5223_v3  ;;  %v2041_v44 = vshrl.u32 %v5351_v10, 16 }
 0x12a   :  { %v1280_v11 = vsel %vm1270_vm11, %v1247_v37, %v5262_v32  ;;  %v5394_v43 = vcombine.low %v2281_v15, %v2284_v57  ;;  %v360_v12 = vor.u32 %v359_v56, %v356_v49  ;;  %v373_v53 = vshll.u32 %v5377_v52, 16 }
 0x12b   :  { %2617 = vrot.lane.b32.xlu0 %v5290_v46, %s3973_s4  ;;  %1001 = vrot.lane.b32.xlu1 %v5179_v28, %s3976_s21  ;;  %v367_v28 = vshrl.u32 %v5318_v60, 16  ;;  %v1313_v14 = vsel %vm1303_vm12, %v1280_v11, %v5286_v31  ;;  %v2043_v31 = vrot.slane %v2041_v44, 4  ;;  %v2046_v15 = vrot.slane %v2044_v47, 5 }
 0x12c   :  { %v1140_v49 = vsel %vm1122_vm7, %v4469_v42, %v5185_v40  ;;  %v5422_v42 = vcombine.low %v5309_v18, %v5318_v60  ;;  %v5427_v40 = vld [vmem:[%s6838_s0 + $0x164] sm:$0x1]  ;;  %v361_v47 = vrot.slane %v360_v12, 4 }
 0x12d   :  { %v5331_v36 = vpop.permute.xlu0 %2679  ;;  %v1064_v6 = vpop.permute.xlu1 %1063  ;;  %v369_v20 = vrot.slane %v367_v28, 4  ;;  %v2863_v28 = vsel %vm1171_vm8, %v2820_v50, %v5187_v58  ;;  %v1183_v56 = vsel %vm1171_vm8, %v1140_v49, %v5203_v45 }
 0x12e   :  { %v2895_v32 = vsel %vm1204_vm9, %v2863_v28, %v5205_v59  ;;  %v1346_v27 = vsel %vm1336_vm13, %v1313_v14, %v1064_v6  ;;  %v2823_v28 = vsel %vm1122_vm7, %v4476_v54, %v5195_v25  ;;  %v603_v54 = vrot.slane %v5318_v60, 5 }
 0x12f   :  { %968 = vrot.lane.b32.xlu0 %v5311_v4, %s3975_s20  ;;  %2685 = vrot.lane.b32.xlu1 %v5193_v8, %s3976_s21  ;;  %v5360_v8 = vld [vmem:[%s6838_s0 + $0x160] sm:$0xf]  ;;  %v370_v33 = vor.u32 %v369_v20, %v5366_v34  ;;  %v2927_v58 = vsel %vm1237_vm10, %v2895_v32, %v5245_v38  ;;  %v2865_v14 = vsel %vm1171_vm8, %v2823_v28, %v5221_v62 }
 0x130   :  { %v2054_v3 = vshrl.u32 %v5360_v8, 16  ;;  %v2050_v19 = vshll.u32 %v5360_v8, 16  ;;  %v2959_v59 = vsel %vm1270_vm11, %v2927_v58, %v5274_v16  ;;  %v1216_v16 = vsel %vm1204_vm9, %v1183_v56, %v5243_v48 }
 0x131   :  { %v1031_v9 = vpop.permute.xlu0 %1030  ;;  %v2748_v2 = vpop.permute.xlu1 %2747  ;;  %v2991_v57 = vsel %vm1303_vm12, %v2959_v59, %v5303_v55  ;;  %v371_v55 = vrot.slane %v370_v33, 4  ;;  %v1249_v50 = vsel %vm1237_vm10, %v1216_v16, %v5272_v61  ;;  %v2060_v61 = vshll.u32 %v5427_v40, 16 }
 0x132   :  { %v5413_v6 = vrot.slane %v2050_v19, 5  ;;  %v2056_v38 = vrot.slane %v2054_v3, 4  ;;  %v3023_v20 = vsel %vm1336_vm13, %v2991_v57, %v2748_v2  ;;  %v375_v3 = vrot.slane %v373_v53, 5 }
 0x133   :  { %2652 = vrot.lane.b32.xlu0 %v5335_v17, %s3975_s20  ;;  %1036 = vrot.lane.b32.xlu1 %v5278_v63, %s3977_s3  ;;  %v2047_v19 = vor.u32 %v2046_v15, %v2043_v31  ;;  %v1282_v48 = vsel %vm1270_vm11, %v1249_v50, %v5301_v23  ;;  %v2897_v25 = vsel %vm1204_vm9, %v2865_v14, %v5260_v35  ;;  %v605_v31 = vrot.slane %v603_v54, 4 }
 0x134   :  { %v2057_v2 = vor.u32 %v2056_v38, %v5413_v6  ;;  %v1315_v12 = vsel %vm1303_vm12, %v1282_v48, %v1031_v9  ;;  %v366_v62 = vsel %vm4083_vm5, %v361_v47, %v5366_v34  ;;  %v2929_v9 = vsel %vm1237_vm10, %v2897_v25, %v5284_v24  ;;  %v5565_v25 = vld [vmem:[%s6838_s0 + $0x168] sm:$0xf] }
 0x135   :  { %v2715_v41 = vpop.permute.xlu0 %2714  ;;  %v1099_v39 = vpop.permute.xlu1 %1098  ;;  %v376_v35 = vsel %vm4083_vm5, %v371_v55, %v375_v3  ;;  %v2048_v33 = vrot.slane %v2047_v19, 4  ;;  %v2961_v53 = vsel %vm1270_vm11, %v2929_v9, %v5331_v36  ;;  %v2062_v34 = vrot.slane %v2060_v61, 5  ;;  %v5544_v61 = vld [vmem:[%s6838_s0 + $0x90] sm:$0xf] }
 0x136   :  { %v1379_v37 = vsel %vm1369_vm14, %v1346_v27, %v1099_v39  ;;  %v5456_v39 = vcombine.low %v5351_v10, %v5360_v8  ;;  %v2058_v58 = vrot.slane %v2057_v2, 4  ;;  %v2993_v24 = vsel %vm1303_vm12, %v2961_v53, %v2715_v41 }
 0x137   :  { %1003 = vrot.lane.b32.xlu0 %v5370_v13, %s3976_s21  ;;  %2720 = vrot.lane.b32.xlu1 %v5290_v46, %s3977_s3  ;;  %v606_v15 = vrot.slane %v5377_v52, 5  ;;  %v2287_v49 = vrot.slane %v5360_v8, 5  ;;  %v5481_v57 = vcombine.low %v366_v62, %v376_v35  ;;  %v3667_v16 = vrot.slane %v5351_v10, 9 }
 0x138   :  { %3813 = vmatprep.mubr.msk.bf16.mxu0 %vm1421_vm15, %v1379_v37  ;;  %v3522_v37 = vrot.slane %v5309_v18, 9  ;;  %v2053_v18 = vsel %vm4083_vm5, %v2048_v33, %v5413_v6  ;;  %v2063_v8 = vsel %vm4083_vm5, %v2058_v58, %v2062_v34  ;;  %v2068_v9 = vshll.u32 %v5565_v25, 16 }
 0x139   :  { %v1066_v45 = vpop.permute.xlu0 %1065  ;;  %v2783_v44 = vpop.permute.xlu1 %2782  ;;  %v607_v41 = vsel %vm4015_vm2, %v605_v31, %v606_v15  ;;  %v5507_v6 = vcombine.low %v2053_v18, %v2063_v8  ;;  %v2288_v10 = vsel %vm4015_vm2, %v3667_v16, %v2287_v49 }
 0x13a   :  { %v3055_v11 = vsel %vm1369_vm14, %v3023_v20, %v2783_v44  ;;  %v1348_v23 = vsel %vm1336_vm13, %v1315_v12, %v1066_v45  ;;  %v604_v52 = vsel %vm4015_vm2, %v3522_v37, %v603_v54  ;;  %v2289_v20 = vrot.slane %v2287_v49, 4  ;;  %v5588_v37 = vld [vmem:[%s6838_s0 + $0x98] sm:$0x1] }
 0x13b   :  { %2687 = vrot.lane.b32.xlu0 %v5394_v43, %s3976_s21  ;;  %1071 = vrot.lane.b32.xlu1 %v5311_v4, %s3978_s14  ;;  %v2290_v45 = vrot.slane %v5427_v40, 5  ;;  %v5509_v55 = vcombine.low %v604_v52, %v607_v41  ;;  %v378_v54 = vshrl.u32 %v5544_v61, 16  ;;  %v3640_v52 = vld [vmem:[%s6838_s0 + $0x170] sm:$0x1] }
 0x13c   :  { %3851 = vmatprep.mubr.msk.bf16.mxu1 %vm1421_vm15, %v3055_v11 }
 0x13d   :  { %v2750_v32 = vpop.permute.xlu0 %2749  ;;  %v1101_v27 = vpop.permute.xlu1 %1100  ;;  %v2291_v40 = vsel %vm4015_vm2, %v2289_v20, %v2290_v45 }
 0x13e   :  { %v1381_v60 = vsel %vm1369_vm14, %v1348_v23, %v1101_v27  ;;  %v3025_v36 = vsel %vm1336_vm13, %v2993_v24, %v2750_v32  ;;  %v5523_v3 = vcombine.low %v2288_v10, %v2291_v40  ;;  %v5571_v32 = vld [vmem:[%s6838_s0 + $0x16c] sm:$0xf] }
 0x13f   :  { %1038 = vrot.lane.b32.xlu0 %v5422_v42, %s3977_s3  ;;  %2755 = vrot.lane.b32.xlu1 %v5335_v17, %s3978_s14  ;;  %v2078_v33 = vshrl.u32 %v5571_v32, 16  ;;  %v2074_v34 = vshll.u32 %v5571_v32, 16 }
 0x140   :  { %3814 = vmatmul.mubr.msk.bf16.gmra.mrb[8].mxu0 %vm1421_vm15, %v1381_v60  ;;  %v380_v60 = vrot.slane %v378_v54, 4 }
 0x141   :  { %v5478_v59 = vpop.permute.xlu0 %812  ;;  %v2785_v38 = vpop.permute.xlu1 %2784  ;;  %v2076_v18 = vrot.slane %v2074_v34, 5  ;;  %v2080_v8 = vrot.slane %v2078_v33, 4 }
 0x142   :  { %v3057_v56 = vsel %vm1369_vm14, %v3025_v36, %v2785_v38  ;;  %v2070_v36 = vrot.slane %v2068_v9, 5  ;;  %v5620_v9 = vcombine.low %v5565_v25, %v5571_v32 }
 0x143   :  { %2722 = vrot.lane.b32.xlu0 %v5456_v39, %s3977_s3  ;;  %1106 = vrot.lane.b32.xlu1 %v5370_v13, %s3979_s15 }
 0x144   :  { %3852 = vmatmul.mubr.msk.bf16.gmra.mrb[8].mxu1 %vm1421_vm15, %v3057_v56  ;;  %v397_v56 = vshll.u32 %v5588_v37, 16 }
 0x145   :  { %v5499_v44 = vpop.permute.xlu0 %2496  ;;  %v5501_v47 = vpop.permute.xlu1 %892 }
 0x146   :  { %v399_v54 = vrot.slane %v397_v56, 5  ;;  %v3523_v56 = vrot.slane %v5544_v61, 9 }
 0x147   :  { %1073 = vrot.lane.b32.xlu0 %v5481_v57, %s3978_s14  ;;  %2790 = vrot.lane.b32.xlu1 %v5394_v43, %s3979_s15 }
 0x149   :  { %v5515_v50 = vpop.permute.xlu0 %814  ;;  %v5517_v11 = vpop.permute.xlu1 %2576 }
 0x14b   :  { %2757 = vrot.lane.b32.xlu0 %v5507_v6, %s3978_s14  ;;  %1108 = vrot.lane.b32.xlu1 %v5509_v55, %s3979_s15 }
 0x14d   :  { %v5525_v19 = vpop.permute.xlu0 %2498  ;;  %v5527_v28 = vpop.permute.xlu1 %927 }
 0x14f   :  { %820 = vrot.lane.b32.xlu0 %v5311_v4, %s3974_s7  ;;  %2792 = vrot.lane.b32.xlu1 %v5523_v3, %s3979_s15  ;;  %v5549_v4 = vld [vmem:[%s6838_s0 + $0x94] sm:$0xf] }
 0x150   :  { %v387_v23 = vshll.u32 %v5549_v4, 16  ;;  %v5608_v20 = vcombine.low %v5544_v61, %v5549_v4  ;;  %v610_v34 = vrot.slane %v5549_v4, 5 }
 0x151   :  { %v5533_v48 = vpop.permute.xlu0 %894  ;;  %v5535_v2 = vpop.permute.xlu1 %2611 }
 0x152   :  { %v389_v53 = vrot.slane %v387_v23, 5 }
 0x153   :  { %2504 = vrot.lane.b32.xlu0 %v5335_v17, %s3974_s7  ;;  %900 = vrot.lane.b32.xlu1 %v5370_v13, %s3972_s27  ;;  %v381_v17 = vshll.u32 %v5544_v61, 16  ;;  %v391_v13 = vshrl.u32 %v5549_v4, 16  ;;  %v5648_v4 = vld [vmem:[%s6838_s0 + $0xa0] sm:$0xf]  ;;  %v1143_v61 = vsel %vm1122_vm7, %v4618_v21, %v5478_v59 }
 0x154   :  { %v1185_v21 = vsel %vm1171_vm8, %v1143_v61, %v5501_v47 }
 0x155   :  { %v5551_v14 = vpop.permute.xlu0 %2578  ;;  %v5553_v12 = vpop.permute.xlu1 %962  ;;  %v383_v35 = vrot.slane %v381_v17, 5  ;;  %v393_v58 = vrot.slane %v391_v13, 4  ;;  %v2081_v17 = vor.u32 %v2080_v8, %v2076_v18  ;;  %v2084_v13 = vshll.u32 %v3640_v52, 16 }
 0x156   :  { %v612_v8 = vrot.slane %v610_v34, 4 }
 0x157   :  { %822 = vrot.lane.b32.xlu0 %v5481_v57, %s3974_s7  ;;  %2584 = vrot.lane.b32.xlu1 %v5394_v43, %s3972_s27  ;;  %v2065_v43 = vshrl.u32 %v5565_v25, 16  ;;  %v384_v15 = vor.u32 %v383_v35, %v380_v60  ;;  %v394_v38 = vor.u32 %v393_v58, %v389_v53  ;;  %v2082_v33 = vrot.slane %v2081_v17, 4 }
 0x158   :  { %v2086_v58 = vrot.slane %v2084_v13, 5 }
 0x159   :  { %v5573_v27 = vpop.permute.xlu0 %929  ;;  %v5575_v62 = vpop.permute.xlu1 %2646  ;;  %v2067_v49 = vrot.slane %v2065_v43, 4  ;;  %v385_v45 = vrot.slane %v384_v15, 4  ;;  %v395_v40 = vrot.slane %v394_v38, 4 }
 0x15b   :  { %2506 = vrot.lane.b32.xlu0 %v5507_v6, %s3974_s7  ;;  %935 = vrot.lane.b32.xlu1 %v5422_v42, %s3973_s4  ;;  %v2071_v10 = vor.u32 %v2070_v36, %v2067_v49  ;;  %v390_v60 = vsel %vm4083_vm5, %v385_v45, %v389_v53  ;;  %v2294_v53 = vrot.slane %v5571_v32, 5  ;;  %v5639_v36 = vld [vmem:[%s6838_s0 + $0x9c] sm:$0xf]  ;;  %v2087_v32 = vsel %vm4083_vm5, %v2082_v33, %v2086_v58 }
 0x15c   :  { %v613_v45 = vrot.slane %v5588_v37, 5 }
 0x15d   :  { %v5590_v24 = vpop.permute.xlu0 %2613  ;;  %v5592_v31 = vpop.permute.xlu1 %997  ;;  %v2072_v35 = vrot.slane %v2071_v10, 4  ;;  %v402_v10 = vshrl.u32 %v5639_v36, 16  ;;  %v2296_v13 = vrot.slane %v2294_v53, 4 }
 0x15e   :  { %v614_v37 = vsel %vm4015_vm2, %v612_v8, %v613_v45 }
 0x15f   :  { %902 = vrot.lane.b32.xlu0 %v5509_v55, %s3972_s27  ;;  %2619 = vrot.lane.b32.xlu1 %v5456_v39, %s3973_s4  ;;  %v404_v33 = vrot.slane %v402_v10, 4 }
 0x161   :  { %v5602_v41 = vpop.permute.xlu0 %964  ;;  %v5604_v16 = vpop.permute.xlu1 %2681 }
 0x163   :  { %2586 = vrot.lane.b32.xlu0 %v5523_v3, %s3972_s27  ;;  %970 = vrot.lane.b32.xlu1 %v5481_v57, %s3975_s20  ;;  %v400_v57 = vsel %vm4083_vm5, %v395_v40, %v399_v54  ;;  %v405_v40 = vshll.u32 %v5639_v36, 16 }
 0x164   :  { %v5641_v38 = vcombine.low %v390_v60, %v400_v57  ;;  %v2297_v60 = vrot.slane %v3640_v52, 5  ;;  %v5681_v52 = vld [vmem:[%s6838_s0 + $0x174] sm:$0xf] }
 0x165   :  { %v5614_v23 = vpop.permute.xlu0 %2648  ;;  %v5616_v43 = vpop.permute.xlu1 %1032  ;;  %v407_v58 = vrot.slane %v405_v40, 5  ;;  %v2092_v10 = vshll.u32 %v5681_v52, 16  ;;  %v2826_v40 = vsel %vm1122_vm7, %v4632_v0, %v5499_v44 }
 0x167   :  { %937 = vrot.lane.b32.xlu0 %v5608_v20, %s3973_s4  ;;  %2654 = vrot.lane.b32.xlu1 %v5507_v6, %s3975_s20  ;;  %v2077_v6 = vsel %vm4083_vm5, %v2072_v35, %v2076_v18  ;;  %v3668_v18 = vrot.slane %v5565_v25, 9  ;;  %v411_v35 = vshll.u32 %v5648_v4, 16  ;;  %v611_v25 = vsel %vm4015_vm2, %v3523_v56, %v610_v34 }
 0x168   :  { %v5665_v57 = vcombine.low %v2077_v6, %v2087_v32  ;;  %v1218_v34 = vsel %vm1204_vm9, %v1185_v21, %v5527_v28  ;;  %v2298_v56 = vsel %vm4015_vm2, %v2296_v13, %v2297_v60  ;;  %v5700_v45 = vcombine.low %v611_v25, %v614_v37  ;;  %v5707_v28 = vld [vmem:[%s6838_s0 + $0xa4] sm:$0x1] }
 0x169   :  { %v5631_v15 = vpop.permute.xlu0 %999  ;;  %v5633_v49 = vpop.permute.xlu1 %2716  ;;  %v2295_v59 = vsel %vm4015_vm2, %v3668_v18, %v2294_v53  ;;  %v5696_v8 = vrot.slane %v411_v35, 5  ;;  %v1251_v53 = vsel %vm1237_vm10, %v1218_v34, %v5553_v12  ;;  %v2089_v18 = vshrl.u32 %v5681_v52, 16 }
 0x16a   :  { %v1284_v13 = vsel %vm1270_vm11, %v1251_v53, %v5592_v31  ;;  %v5724_v0 = vcombine.low %v2295_v59, %v2298_v56  ;;  %v408_v44 = vor.u32 %v407_v58, %v404_v33  ;;  %v421_v34 = vshll.u32 %v5707_v28, 16 }
 0x16b   :  { %2621 = vrot.lane.b32.xlu0 %v5620_v9, %s3973_s4  ;;  %1005 = vrot.lane.b32.xlu1 %v5509_v55, %s3976_s21  ;;  %v415_v55 = vshrl.u32 %v5648_v4, 16  ;;  %v1317_v35 = vsel %vm1303_vm12, %v1284_v13, %v5616_v43  ;;  %v2091_v43 = vrot.slane %v2089_v18, 4  ;;  %v2094_v59 = vrot.slane %v2092_v10, 5 }
 0x16c   :  { %v1146_v33 = vsel %vm1122_vm7, %v4770_v29, %v5515_v50  ;;  %v5752_v29 = vcombine.low %v5639_v36, %v5648_v4  ;;  %v5757_v50 = vld [vmem:[%s6838_s0 + $0x17c] sm:$0x1]  ;;  %v409_v10 = vrot.slane %v408_v44, 4 }
 0x16d   :  { %v5661_v54 = vpop.permute.xlu0 %2683  ;;  %v1068_v17 = vpop.permute.xlu1 %1067  ;;  %v417_v47 = vrot.slane %v415_v55, 4  ;;  %v2867_v55 = vsel %vm1171_vm8, %v2826_v40, %v5517_v11  ;;  %v1187_v58 = vsel %vm1171_vm8, %v1146_v33, %v5533_v48 }
 0x16e   :  { %v2899_v31 = vsel %vm1204_vm9, %v2867_v55, %v5535_v2  ;;  %v1350_v61 = vsel %vm1336_vm13, %v1317_v35, %v1068_v17  ;;  %6850 = vst [vmem:[#allocation5_spill] sm:$0xff] %v5752_v29  ;;  %v2829_v55 = vsel %vm1122_vm7, %v4796_v7, %v5525_v19  ;;  %v617_v7 = vrot.slane %v5648_v4, 5 }
 0x16f   :  { %972 = vrot.lane.b32.xlu0 %v5641_v38, %s3975_s20  ;;  %2689 = vrot.lane.b32.xlu1 %v5523_v3, %s3976_s21  ;;  %v5690_v3 = vld [vmem:[%s6838_s0 + $0x178] sm:$0xf]  ;;  %v418_v21 = vor.u32 %v417_v47, %v5696_v8  ;;  %v2931_v11 = vsel %vm1237_vm10, %v2899_v31, %v5575_v62  ;;  %v2869_v35 = vsel %vm1171_vm8, %v2829_v55, %v5551_v14 }
 0x170   :  { %v2102_v12 = vshrl.u32 %v5690_v3, 16  ;;  %v2098_v60 = vshll.u32 %v5690_v3, 16  ;;  %v2963_v2 = vsel %vm1270_vm11, %v2931_v11, %v5604_v16  ;;  %v1220_v16 = vsel %vm1204_vm9, %v1187_v58, %v5573_v27  ;;  %v3754_v55 = vld [vmem:[%s6839_s1 + $0x38] sm:$0xff]  }
 0x171   :  { %v1035_v6 = vpop.permute.xlu0 %1034  ;;  %v2752_v32 = vpop.permute.xlu1 %2751  ;;  %v2995_v56 = vsel %vm1303_vm12, %v2963_v2, %v5633_v49  ;;  %v419_v49 = vrot.slane %v418_v21, 4  ;;  %v1253_v40 = vsel %vm1237_vm10, %v1220_v16, %v5602_v41  ;;  %v2108_v41 = vshll.u32 %v5757_v50, 16 }
 0x172   :  { %v5743_v17 = vrot.slane %v2098_v60, 5  ;;  %v2104_v62 = vrot.slane %v2102_v12, 4  ;;  %v3027_v47 = vsel %vm1336_vm13, %v2995_v56, %v2752_v32  ;;  %v423_v12 = vrot.slane %v421_v34, 5 }
 0x173   :  { %2656 = vrot.lane.b32.xlu0 %v5665_v57, %s3975_s20  ;;  %1040 = vrot.lane.b32.xlu1 %v5608_v20, %s3977_s3  ;;  %v2095_v60 = vor.u32 %v2094_v59, %v2091_v43  ;;  %v1286_v27 = vsel %vm1270_vm11, %v1253_v40, %v5631_v15  ;;  %v2901_v19 = vsel %vm1204_vm9, %v2869_v35, %v5590_v24  ;;  %v619_v43 = vrot.slane %v617_v7, 4 }
 0x174   :  { %v2105_v32 = vor.u32 %v2104_v62, %v5743_v17  ;;  %v1319_v44 = vsel %vm1303_vm12, %v1286_v27, %v1035_v6  ;;  %v414_v14 = vsel %vm4083_vm5, %v409_v10, %v5696_v8  ;;  %v2933_v6 = vsel %vm1237_vm10, %v2901_v19, %v5614_v23 }
 0x175   :  { %v2719_v25 = vpop.permute.xlu0 %2718  ;;  %v1103_v37 = vpop.permute.xlu1 %1102  ;;  %v424_v24 = vsel %vm4083_vm5, %v419_v49, %v423_v12  ;;  %v2096_v21 = vrot.slane %v2095_v60, 4  ;;  %v2965_v34 = vsel %vm1270_vm11, %v2933_v6, %v5661_v54  ;;  %v2110_v8 = vrot.slane %v2108_v41, 5 }
 0x176   :  { %v1383_v53 = vsel %vm1369_vm14, %v1350_v61, %v1103_v37  ;;  %v5786_v37 = vcombine.low %v5681_v52, %v5690_v3  ;;  %v2106_v11 = vrot.slane %v2105_v32, 4  ;;  %v2997_v23 = vsel %vm1303_vm12, %v2965_v34, %v2719_v25 }
 0x177   :  { %1007 = vrot.lane.b32.xlu0 %v5700_v45, %s3976_s21  ;;  %2724 = vrot.lane.b32.xlu1 %v5620_v9, %s3977_s3  ;;  %v620_v59 = vrot.slane %v5707_v28, 5  ;;  %v2301_v33 = vrot.slane %v5690_v3, 5  ;;  %v5811_v56 = vcombine.low %v414_v14, %v424_v24  ;;  %v3669_v16 = vrot.slane %v5681_v52, 9 }
 0x178   :  { %3817 = vmatprep.mubr.msk.bf16.mxu0 %vm1421_vm15, %v1383_v53  ;;  %6851 = vst [vmem:[#allocation6_spill] sm:$0xff] %v5786_v37  ;;  %v3524_v53 = vrot.slane %v5639_v36, 9  ;;  %v2101_v36 = vsel %vm4083_vm5, %v2096_v21, %v5743_v17  ;;  %v2111_v3 = vsel %vm4083_vm5, %v2106_v11, %v2110_v8  ;;  %v1402_v17 = vlaneseq }
 0x179   :  { %v1070_v48 = vpop.permute.xlu0 %1069  ;;  %v2787_v18 = vpop.permute.xlu1 %2786  ;;  %v621_v25 = vsel %vm4015_vm2, %v619_v43, %v620_v59  ;;  %v5837_v49 = vcombine.low %v2101_v36, %v2111_v3  ;;  %v2302_v52 = vsel %vm4015_vm2, %v3669_v16, %v2301_v33  ;;  %v3753_v35 = vunpack.c.h.bf16 %v3754_v55 }
 0x17a   :  { %v3059_v13 = vsel %vm1369_vm14, %v3027_v47, %v2787_v18  ;;  %v1352_v15 = vsel %vm1336_vm13, %v1319_v44, %v1070_v48  ;;  %v618_v28 = vsel %vm4015_vm2, %v3524_v53, %v617_v7  ;;  %v2303_v47 = vrot.slane %v2301_v33, 4 }
 0x17b   :  { %2691 = vrot.lane.b32.xlu0 %v5724_v0, %s3976_s21  ;;  %1075 = vrot.lane.b32.xlu1 %v5641_v38, %s3978_s14  ;;  %v2304_v48 = vrot.slane %v5757_v50, 5  ;;  %v5839_v40 = vcombine.low %v618_v28, %v621_v25  ;;  %v1403_v60 = vshrl.u32 %v1402_v17, 7 }
 0x17c   :  { %3855 = vmatprep.mubr.msk.bf16.mxu1 %vm1421_vm15, %v3059_v13 }
 0x17d   :  { %v2754_v31 = vpop.permute.xlu0 %2753  ;;  %v1105_v61 = vpop.permute.xlu1 %1104  ;;  %v2305_v50 = vsel %vm4015_vm2, %v2303_v47, %v2304_v48  ;;  %v5862_v44 = vsub.s32 0, %v1403_v60 }
 0x17e   :  { %v1385_v4 = vsel %vm1369_vm14, %v1352_v15, %v1105_v61  ;;  %v3029_v54 = vsel %vm1336_vm13, %v2997_v23, %v2754_v31  ;;  %v5856_v27 = vcombine.low %v2302_v52, %v2305_v50  ;;  %v5878_v31 = vld [vmem:[%s6838_s0 + $0xa8] sm:$0xf]  ;;  %v5883_v61 = vld [vmem:[%s6838_s0 + $0xac] sm:$0xf]  ;;  %v5919_v52 = vld [vmem:[%s6838_s0 + $0x184] sm:$0xf] }
 0x17f   :  { %1042 = vrot.lane.b32.xlu0 %v5752_v29, %s3977_s3  ;;  %2759 = vrot.lane.b32.xlu1 %v5665_v57, %s3978_s14  ;;  %6852 = vst [vmem:[#allocation7_spill] sm:$0xff] %v5862_v44  ;;  %v5873_v15 = vrot.slane %v3753_v35, %v5862_v44  ;;  %v426_v6 = vshrl.u32 %v5878_v31, 16  ;;  %v439_v24 = vshrl.u32 %v5883_v61, 16  ;;  %v435_v21 = vshll.u32 %v5883_v61, 16 }
 0x180   :  { %3818 = vmatmul.mubr.msk.bf16.gmra.mrb[12].mxu0 %vm1421_vm15, %v1385_v4  ;;  %v429_v4 = vshll.u32 %v5878_v31, 16 }
 0x181   :  { %v5808_v2 = vpop.permute.xlu0 %816  ;;  %v2789_v62 = vpop.permute.xlu1 %2788  ;;  %v5910_v3 = vrot.slane %v435_v21, 5  ;;  %v441_v28 = vrot.slane %v439_v24, 4 }
 0x182   :  { %v3061_v58 = vsel %vm1369_vm14, %v3029_v54, %v2789_v62  ;;  %v5908_v54 = vld [vmem:[%s6838_s0 + $0x180] sm:$0xf]  ;;  %v431_v36 = vrot.slane %v429_v4, 5 }
 0x183   :  { %2726 = vrot.lane.b32.xlu0 %v5786_v37, %s3977_s3  ;;  %1110 = vrot.lane.b32.xlu1 %v5700_v45, %s3979_s15 }
 0x184   :  { %3856 = vmatmul.mubr.msk.bf16.gmra.mrb[12].mxu1 %vm1421_vm15, %v3061_v58  ;;  %v428_v58 = vrot.slane %v426_v6, 4 }
 0x185   :  { %v5829_v18 = vpop.permute.xlu0 %2500  ;;  %v5831_v10 = vpop.permute.xlu1 %896 }
 0x187   :  { %1077 = vrot.lane.b32.xlu0 %v5811_v56, %s3978_s14  ;;  %2794 = vrot.lane.b32.xlu1 %v5724_v0, %s3979_s15 }
 0x189   :  { %v5845_v13 = vpop.permute.xlu0 %818  ;;  %v5847_v12 = vpop.permute.xlu1 %2580 }
 0x18b   :  { %2761 = vrot.lane.b32.xlu0 %v5837_v49, %s3978_s14  ;;  %1112 = vrot.lane.b32.xlu1 %v5839_v40, %s3979_s15 }
 0x18d   :  { %v5858_v32 = vpop.permute.xlu0 %2502  ;;  %v5860_v41 = vpop.permute.xlu1 %931 }
 0x18f   :  { %824 = vrot.lane.b32.xlu0 %v5641_v38, %s3974_s7  ;;  %2796 = vrot.lane.b32.xlu1 %v5856_v27, %s3979_s15 }
 0x191   :  { %v5868_v7 = vpop.permute.xlu0 %898  ;;  %v5870_v19 = vpop.permute.xlu1 %2615 }
 0x193   :  { %2508 = vrot.lane.b32.xlu0 %v5665_v57, %s3974_s7  ;;  %v3807_v38 = vpop.f32.mrb[0].mxu0  ;;  %904 = vrot.lane.b32.xlu1 %v5700_v45, %s3972_s27 }
 0x194   :  { %v1492_v14 = vpop.f32.mrb[1].mxu0  ;;  %v1501_v11 = vadd.f32 %v3807_v38, %v5873_v15  ;;  %v2113_v38 = vshrl.u32 %v5908_v54, 16 }
 0x195   :  { %v5893_v34 = vpop.permute.xlu0 %2582  ;;  %v1493_v8 = vadd.f32 %v1492_v14, %v5873_v15  ;;  %v3808_v57 = vpop.f32.mrb[2].mxu0  ;;  %v2116_v14 = vshll.u32 %v5908_v54, 16 }
 0x196   :  { %v1504_v53 = vadd.f32 %v3808_v57, %v5873_v15  ;;  %v5898_v23 = vpop.permute.xlu1 %966  ;;  %v1495_v45 = vpop.f32.mrb[3].mxu0  ;;  %v1621_v25 = vmax.f32 %v1501_v11, 0.0  ;;  %v5936_v11 = vld [vmem:[%s6838_s0 + $0xb0] sm:$0x1]  ;;  %v2126_v57 = vshrl.u32 %v5919_v52, 16  ;;  %v2115_v44 = vrot.slane %v2113_v38, 4 }
 0x197   :  { %826 = vrot.lane.b32.xlu0 %v5811_v56, %s3974_s7  ;;  %v1619_v43 = vmax.f32 %v1493_v8, 0.0  ;;  %v1496_v59 = vadd.f32 %v1495_v45, %v5873_v15  ;;  %v3845_v33 = vpop.f32.mrb[0].mxu1  ;;  %2588 = vrot.lane.b32.xlu1 %v5724_v0, %s3972_s27  ;;  %v2122_v45 = vshll.u32 %v5919_v52, 16 }
 0x198   :  { %v3144_v62 = vpop.f32.mrb[1].mxu1  ;;  %v3153_v48 = vadd.f32 %v3845_v33, %v5873_v15  ;;  %v1622_v60 = vmax.f32 %v1504_v53, 0.0  ;;  %v432_v53 = vor.u32 %v431_v36, %v428_v58 }
 0x199   :  { %v5912_v16 = vpop.permute.xlu0 %933  ;;  %v1620_v47 = vmax.f32 %v1496_v59, 0.0  ;;  %v3145_v17 = vadd.f32 %v3144_v62, %v5873_v15  ;;  %v3846_v0 = vpop.f32.mrb[2].mxu1  ;;  %v1651_v50 = vsel %vm1369_vm14, %v1619_v43, 0.0  ;;  %v1654_v43 = vsel %vm1369_vm14, %v1621_v25, 0.0 }
 0x19a   :  { %v5922_v55 = vpop.permute.xlu1 %2650  ;;  %v3147_v35 = vpop.f32.mrb[3].mxu1  ;;  %v3156_v24 = vadd.f32 %v3846_v0, %v5873_v15  ;;  %v3273_v59 = vmax.f32 %v3153_v48, 0.0  ;;  %v2124_v48 = vrot.slane %v2122_v45, 5 }
 0x19b   :  { %v1652_v6 = vsel %vm1369_vm14, %v1620_v47, 0.0  ;;  %2510 = vrot.lane.b32.xlu0 %v5837_v49, %s3974_s7  ;;  %v3271_v4 = vmax.f32 %v3145_v17, 0.0  ;;  %v3148_v21 = vadd.f32 %v3147_v35, %v5873_v15  ;;  %939 = vrot.lane.b32.xlu1 %v5752_v29, %s3973_s4  ;;  %v442_v47 = vor.u32 %v441_v28, %v5910_v3 }
 0x19c   :  { %v1653_v8 = vadd.f32 %v1652_v6, %v1651_v50  ;;  %v445_v35 = vshll.u32 %v5936_v11, 16  ;;  %v2118_v50 = vrot.slane %v2116_v14, 5  ;;  %v1656_v6 = vsel %vm1369_vm14, %v1622_v60, 0.0  ;;  %v3646_v60 = vld [vmem:[%s6838_s0 + $0x188] sm:$0x1] }
 0x19d   :  { %v5941_v33 = vpop.permute.xlu0 %2617  ;;  %v3272_v62 = vmax.f32 %v3148_v21, 0.0  ;;  %v3303_v58 = vsel %vm1369_vm14, %v3271_v4, 0.0  ;;  %v3274_v36 = vmax.f32 %v3156_v24, 0.0  ;;  %v2128_v21 = vrot.slane %v2126_v57, 4 }
 0x19e   :  { %v1655_v17 = vadd.f32 %v1654_v43, %v1653_v8  ;;  %v5944_v0 = vpop.permute.xlu1 %1001  ;;  %v3306_v38 = vsel %vm1369_vm14, %v3273_v59, 0.0  ;;  %v5966_v43 = vcombine.low %v5878_v31, %v5883_v61  ;;  %v443_v45 = vrot.slane %v442_v47, 4 }
 0x19f   :  { %v3304_v25 = vsel %vm1369_vm14, %v3272_v62, 0.0  ;;  %906 = vrot.lane.b32.xlu0 %v5839_v40, %s3972_s27  ;;  %2623 = vrot.lane.b32.xlu1 %v5786_v37, %s3973_s4  ;;  %v433_v62 = vrot.slane %v432_v53, 4  ;;  %v3308_v57 = vsel %vm1369_vm14, %v3274_v36, 0.0  ;;  %v447_v59 = vrot.slane %v445_v35, 5 }
 0x1a0   :  { %v3305_v28 = vadd.f32 %v3304_v25, %v3303_v58  ;;  %v5954_v8 = vadd.f32 %v1656_v6, %v1655_v17  ;;  %6853 = vst [vmem:[#allocation8_spill] sm:$0xff] %v5966_v43  ;;  %v2119_v17 = vor.u32 %v2118_v50, %v2115_v44  ;;  %v2129_v6 = vor.u32 %v2128_v21, %v2124_v48 }
 0x1a1   :  { %v5957_v14 = vpop.permute.xlu0 %968  ;;  %v2132_v58 = vshll.u32 %v3646_v60, 16  ;;  %v5981_v53 = vcombine.low %v5908_v54, %v5919_v52  ;;  %v448_v44 = vsel %vm4083_vm5, %v443_v45, %v447_v59  ;;  %v624_v35 = vrot.slane %v5883_v61, 5 }
 0x1a2   :  { %v3307_v4 = vadd.f32 %v3306_v38, %v3305_v28  ;;  %v5962_v24 = vpop.permute.xlu1 %2685  ;;  %v2120_v47 = vrot.slane %v2119_v17, 4  ;;  %v2130_v50 = vrot.slane %v2129_v6, 4  ;;  %v627_v59 = vrot.slane %v5936_v11, 5 }
 0x1a3   :  { %2590 = vrot.lane.b32.xlu0 %v5856_v27, %s3972_s27  ;;  %974 = vrot.lane.b32.xlu1 %v5811_v56, %s3975_s20  ;;  %v438_v56 = vsel %vm4083_vm5, %v433_v62, %v5910_v3  ;;  %v2134_v36 = vrot.slane %v2132_v58, 5  ;;  %v6008_v62 = vld [vmem:[%s6838_s0 + $0xb8] sm:$0xf]  ;;  %v626_v45 = vrot.slane %v624_v35, 4  ;;  %v3670_v6 = vrot.slane %v5908_v54, 9 }
 0x1a4   :  { %v5973_v25 = vadd.f32 %v3308_v57, %v3307_v4  ;;  %v2308_v4 = vrot.slane %v5919_v52, 5  ;;  %v6003_v3 = vcombine.low %v438_v56, %v448_v44  ;;  %v2125_v61 = vsel %vm4083_vm5, %v2120_v47, %v2124_v48 }
 0x1a5   :  { %v5975_v28 = vpop.permute.xlu0 %2652  ;;  %v3525_v52 = vrot.slane %v5878_v31, 9  ;;  %v2135_v17 = vsel %vm4083_vm5, %v2130_v50, %v2134_v36  ;;  %v2311_v37 = vrot.slane %v3646_v60, 5  ;;  %v463_v48 = vshrl.u32 %v6008_v62, 16  ;;  %v6040_v60 = vld [vmem:[%s6838_s0 + $0x18c] sm:$0xf] }
 0x1a6   :  { %v5977_v38 = vpop.permute.xlu1 %1036  ;;  %v459_v31 = vshll.u32 %v6008_v62, 16  ;;  %v6031_v54 = vcombine.low %v2125_v61, %v2135_v17  ;;  %v628_v50 = vsel %vm4015_vm2, %v626_v45, %v627_v59  ;;  %v1149_v36 = vsel %vm1122_vm7, %v4952_v22, %v5808_v2  ;;  %v6050_v61 = vld [vmem:[%s6838_s0 + $0x190] sm:$0xf] }
 0x1a7   :  { %941 = vrot.lane.b32.xlu0 %v5966_v43, %s3973_s4  ;;  %2658 = vrot.lane.b32.xlu1 %v5837_v49, %s3975_s20  ;;  %v5999_v49 = vld [vmem:[%s6838_s0 + $0xb4] sm:$0xf]  ;;  %v625_v11 = vsel %vm4015_vm2, %v3525_v52, %v624_v35  ;;  %v1189_v45 = vsel %vm1171_vm8, %v1149_v36, %v5831_v10  ;;  %v465_v22 = vrot.slane %v463_v48, 4  ;;  %v6067_v10 = vld [vmem:[%s6838_s0 + $0xbc] sm:$0x1]  ;;  %v2832_v48 = vsel %vm1122_vm7, %v4964_v1, %v5829_v18 }
 0x1a8   :  { %v450_v58 = vshrl.u32 %v5999_v49, 16  ;;  %v453_v56 = vshll.u32 %v5999_v49, 16  ;;  %v6058_v29 = vrot.slane %v459_v31, 5  ;;  %v1222_v2 = vsel %vm1204_vm9, %v1189_v45, %v5860_v41 }
 0x1a9   :  { %v5993_v21 = vpop.permute.xlu0 %1003  ;;  %v2150_v41 = vshrl.u32 %v6050_v61, 16  ;;  %v2871_v45 = vsel %vm1171_vm8, %v2832_v48, %v5847_v12 }
 0x1aa   :  { %v6001_v57 = vpop.permute.xlu1 %2720  ;;  %v452_v35 = vrot.slane %v450_v58, 4  ;;  %v455_v52 = vrot.slane %v453_v56, 5  ;;  %v2140_v58 = vshll.u32 %v6040_v60, 16  ;;  %v1255_v56 = vsel %vm1237_vm10, %v1222_v2, %v5898_v23 }
 0x1ab   :  { %2625 = vrot.lane.b32.xlu0 %v5981_v53, %s3973_s4  ;;  %1009 = vrot.lane.b32.xlu1 %v5839_v40, %s3976_s21  ;;  %v2310_v40 = vrot.slane %v2308_v4, 4  ;;  %v1288_v31 = vsel %vm1270_vm11, %v1255_v56, %v5944_v0  ;;  %v466_v2 = vor.u32 %v465_v22, %v6058_v29  ;;  %v2903_v1 = vsel %vm1204_vm9, %v2871_v45, %v5870_v19  ;;  %v6105_v19 = vld [vmem:[%s6838_s0 + $0x194] sm:$0x1] }
 0x1ac   :  { %v456_v36 = vor.u32 %v455_v52, %v452_v35  ;;  %v2935_v35 = vsel %vm1237_vm10, %v2903_v1, %v5922_v55  ;;  %v1152_v55 = vsel %vm1122_vm7, %v5092_v26, %v5845_v13  ;;  %v6117_v22 = vcombine.low %v5999_v49, %v6008_v62 }
 0x1ad   :  { %v6023_v44 = vpop.permute.xlu0 %2687  ;;  %v2312_v17 = vsel %vm4015_vm2, %v2310_v40, %v2311_v37  ;;  %v6075_v37 = vcombine.low %v625_v11, %v628_v50  ;;  %v2146_v40 = vshll.u32 %v6050_v61, 16  ;;  %v1321_v11 = vsel %vm1303_vm12, %v1288_v31, %v5977_v38 }
 0x1ae   :  { %v1072_v47 = vpop.permute.xlu1 %1071  ;;  %v2967_v52 = vsel %vm1270_vm11, %v2935_v35, %v5962_v24  ;;  %v2156_v45 = vshll.u32 %v6105_v19, 16 }
 0x1af   :  { %976 = vrot.lane.b32.xlu0 %v6003_v3, %s3975_s20  ;;  %2693 = vrot.lane.b32.xlu1 %v5856_v27, %s3976_s21  ;;  %v2309_v27 = vsel %vm4015_vm2, %v3670_v6, %v2308_v4  ;;  %v2137_v6 = vshrl.u32 %v6040_v60, 16  ;;  %v1354_v18 = vsel %vm1336_vm13, %v1321_v11, %v1072_v47  ;;  %v6107_v38 = vrot.slane %v2146_v40, 5 }
 0x1b0   :  { %v6084_v23 = vcombine.low %v2309_v27, %v2312_v17  ;;  %v2142_v17 = vrot.slane %v2140_v58, 5  ;;  %v2152_v47 = vrot.slane %v2150_v41, 4  ;;  %v1191_v58 = vsel %vm1171_vm8, %v1152_v55, %v5868_v7 }
 0x1b1   :  { %v6054_v59 = vpop.permute.xlu0 %1038  ;;  %v2139_v27 = vrot.slane %v2137_v6, 4  ;;  %v457_v6 = vrot.slane %v456_v36, 4  ;;  %v2999_v56 = vsel %vm1303_vm12, %v2967_v52, %v6001_v57  ;;  %v467_v40 = vrot.slane %v466_v2, 4 }
 0x1b2   :  { %v2756_v4 = vpop.permute.xlu1 %2755  ;;  %v1224_v26 = vsel %vm1204_vm9, %v1191_v58, %v5912_v16  ;;  %v2835_v16 = vsel %vm1122_vm7, %v5126_v30, %v5858_v32 }
 0x1b3   :  { %2660 = vrot.lane.b32.xlu0 %v6031_v54, %s3975_s20  ;;  %1044 = vrot.lane.b32.xlu1 %v5966_v43, %s3977_s3  ;;  %v469_v43 = vshll.u32 %v6067_v10, 16  ;;  %v3031_v13 = vsel %vm1336_vm13, %v2999_v56, %v2756_v4  ;;  %v2143_v31 = vor.u32 %v2142_v17, %v2139_v27  ;;  %v1257_v36 = vsel %vm1237_vm10, %v1224_v26, %v5957_v14 }
 0x1b4   :  { %v1290_v57 = vsel %vm1270_vm11, %v1257_v36, %v5993_v21  ;;  %v6143_v14 = vcombine.low %v6040_v60, %v6050_v61  ;;  %v631_v4 = vrot.slane %v6008_v62, 5  ;;  %v2873_v11 = vsel %vm1171_vm8, %v2835_v16, %v5893_v34 }
 0x1b5   :  { %v2723_v50 = vpop.permute.xlu0 %2722  ;;  %v471_v48 = vrot.slane %v469_v43, 5  ;;  %v2153_v43 = vor.u32 %v2152_v47, %v6107_v38  ;;  %v1323_v2 = vsel %vm1303_vm12, %v1290_v57, %v6054_v59  ;;  %v462_v30 = vsel %vm4083_vm5, %v457_v6, %v6058_v29  ;;  %v6238_v57 = vld [vmem:[%s6838_s0 + $0xc4] sm:$0xf] }
 0x1b6   :  { %v1107_v0 = vpop.permute.xlu1 %1106  ;;  %v2905_v21 = vsel %vm1204_vm9, %v2873_v11, %v5941_v33  ;;  %v2158_v27 = vrot.slane %v2156_v45, 5  ;;  %v3526_v17 = vrot.slane %v5999_v49, 9  ;;  %v633_v35 = vrot.slane %v631_v4, 4 }
 0x1b7   :  { %1011 = vrot.lane.b32.xlu0 %v6075_v37, %s3976_s21  ;;  %v1387_v12 = vsel %vm1369_vm14, %v1354_v18, %v1107_v0  ;;  %2728 = vrot.lane.b32.xlu1 %v5981_v53, %s3977_s3  ;;  %v472_v32 = vsel %vm4083_vm5, %v467_v40, %v471_v48  ;;  %v2144_v0 = vrot.slane %v2143_v31, 4  ;;  %v2937_v34 = vsel %vm1237_vm10, %v2905_v21, %v5975_v28 }
 0x1b8   :  { %3821 = vmatprep.mubr.msk.bf16.mxu0 %vm1421_vm15, %v1387_v12  ;;  %v2154_v29 = vrot.slane %v2153_v43, 4  ;;  %v2969_v33 = vsel %vm1270_vm11, %v2937_v34, %v6023_v44  ;;  %v634_v12 = vrot.slane %v6067_v10, 5  ;;  %v2315_v28 = vrot.slane %v6050_v61, 5  ;;  %v6231_v43 = vld [vmem:[%s6838_s0 + $0xc0] sm:$0xf] }
 0x1b9   :  { %v1074_v41 = vpop.permute.xlu0 %1073  ;;  %v3001_v47 = vsel %vm1303_vm12, %v2969_v33, %v2723_v50  ;;  %v6175_v58 = vcombine.low %v462_v30, %v472_v32  ;;  %v2149_v49 = vsel %vm4083_vm5, %v2144_v0, %v6107_v38  ;;  %v632_v10 = vsel %vm4015_vm2, %v3526_v17, %v631_v4  ;;  %v6270_v33 = vld [vmem:[%s6838_s0 + $0x19c] sm:$0xf] }
 0x1ba   :  { %v2791_v24 = vpop.permute.xlu1 %2790  ;;  %v1356_v18 = vsel %vm1336_vm13, %v1323_v2, %v1074_v41  ;;  %v2159_v61 = vsel %vm4083_vm5, %v2154_v29, %v2158_v27  ;;  %v635_v50 = vsel %vm4015_vm2, %v633_v35, %v634_v12  ;;  %v3671_v38 = vrot.slane %v6040_v60, 9 }
 0x1bb   :  { %2695 = vrot.lane.b32.xlu0 %v6084_v23, %s3976_s21  ;;  %v3063_v7 = vsel %vm1369_vm14, %v3031_v13, %v2791_v24  ;;  %1079 = vrot.lane.b32.xlu1 %v6003_v3, %s3978_s14  ;;  %v2317_v56 = vrot.slane %v2315_v28, 4  ;;  %v2318_v41 = vrot.slane %v6105_v19, 5  ;;  %v6202_v26 = vcombine.low %v2149_v49, %v2159_v61 }
 0x1bc   :  { %3859 = vmatprep.mubr.msk.bf16.mxu1 %vm1421_vm15, %v3063_v7  ;;  %v6204_v13 = vcombine.low %v632_v10, %v635_v50  ;;  %v2316_v60 = vsel %vm4015_vm2, %v3671_v38, %v2315_v28  ;;  %v637_v11 = vshrl.u32 %v6231_v43, 16  ;;  %v650_v30 = vshrl.u32 %v6238_v57, 16 }
 0x1bd   :  { %v2758_v1 = vpop.permute.xlu0 %2757  ;;  %v2319_v19 = vsel %vm4015_vm2, %v2317_v56, %v2318_v41  ;;  %v646_v32 = vshll.u32 %v6238_v57, 16 }
 0x1be   :  { %v1109_v62 = vpop.permute.xlu1 %1108  ;;  %v3033_v52 = vsel %vm1336_vm13, %v3001_v47, %v2758_v1  ;;  %v6218_v45 = vcombine.low %v2316_v60, %v2319_v19  ;;  %v640_v1 = vshll.u32 %v6231_v43, 16  ;;  %v639_v35 = vrot.slane %v637_v11, 4  ;;  %v6288_v11 = vld [vmem:[%s6838_s0 + $0xc8] sm:$0x1] }
 0x1bf   :  { %1046 = vrot.lane.b32.xlu0 %v6117_v22, %s3977_s3  ;;  %v1389_v59 = vsel %vm1369_vm14, %v1356_v18, %v1109_v62  ;;  %2763 = vrot.lane.b32.xlu1 %v6031_v54, %s3978_s14 }
 0x1c0   :  { %3822 = vmatmul.mubr.msk.bf16.gmra.mrb[16].mxu0 %vm1421_vm15, %v1389_v59  ;;  %v642_v47 = vrot.slane %v640_v1, 5 }
 0x1c1   :  { %v6172_v55 = vpop.permute.xlu0 %820 }
 0x1c2   :  { %v2793_v6 = vpop.permute.xlu1 %2792 }
 0x1c3   :  { %2730 = vrot.lane.b32.xlu0 %v6143_v14, %s3977_s3  ;;  %v3065_v44 = vsel %vm1369_vm14, %v3033_v52, %v2793_v6  ;;  %1114 = vrot.lane.b32.xlu1 %v6075_v37, %s3979_s15  ;;  %v6273_v52 = vrot.slane %v646_v32, 5  ;;  %v652_v6 = vrot.slane %v650_v30, 4  ;;  %v2330_v30 = vshll.u32 %v6270_v33, 16 }
 0x1c4   :  { %3860 = vmatmul.mubr.msk.bf16.gmra.mrb[16].mxu1 %vm1421_vm15, %v3065_v44 }
 0x1c5   :  { %v6194_v40 = vpop.permute.xlu0 %2504 }
 0x1c6   :  { %v6196_v48 = vpop.permute.xlu1 %900 }
 0x1c7   :  { %1081 = vrot.lane.b32.xlu0 %v6175_v58, %s3978_s14  ;;  %2798 = vrot.lane.b32.xlu1 %v6084_v23, %s3979_s15 }
 0x1c9   :  { %v6210_v24 = vpop.permute.xlu0 %822 }
 0x1ca   :  { %v6212_v31 = vpop.permute.xlu1 %2584 }
 0x1cb   :  { %2765 = vrot.lane.b32.xlu0 %v6202_v26, %s3978_s14  ;;  %1116 = vrot.lane.b32.xlu1 %v6204_v13, %s3979_s15 }
 0x1cd   :  { %v6220_v36 = vpop.permute.xlu0 %2506 }
 0x1ce   :  { %v6222_v7 = vpop.permute.xlu1 %935 }
 0x1cf   :  { %828 = vrot.lane.b32.xlu0 %v6003_v3, %s3974_s7  ;;  %2800 = vrot.lane.b32.xlu1 %v6218_v45, %s3979_s15 }
 0x1d1   :  { %v6233_v16 = vpop.permute.xlu0 %902 }
 0x1d2   :  { %v6240_v4 = vpop.permute.xlu1 %2619 }
 0x1d3   :  { %2512 = vrot.lane.b32.xlu0 %v6031_v54, %s3974_s7  ;;  %v3811_v3 = vpop.f32.mrb[4].mxu0  ;;  %908 = vrot.lane.b32.xlu1 %v6075_v37, %s3972_s27  ;;  %v6257_v37 = vld [vmem:[%s6838_s0 + $0x198] sm:$0xf] }
 0x1d4   :  { %v1508_v2 = vpop.f32.mrb[5].mxu0  ;;  %v1517_v18 = vadd.f32 %v3811_v3, %v5873_v15  ;;  %v2321_v28 = vshrl.u32 %v6257_v37, 16  ;;  %v2324_v19 = vshll.u32 %v6257_v37, 16  ;;  %v2334_v3 = vshrl.u32 %v6270_v33, 16 }
 0x1d5   :  { %v6250_v21 = vpop.permute.xlu0 %2586  ;;  %v1509_v62 = vadd.f32 %v1508_v2, %v5873_v15  ;;  %v3812_v54 = vpop.f32.mrb[6].mxu0 }
 0x1d6   :  { %v6259_v0 = vpop.permute.xlu1 %970  ;;  %v1511_v27 = vpop.f32.mrb[7].mxu0  ;;  %v1520_v59 = vadd.f32 %v3812_v54, %v5873_v15  ;;  %v1625_v49 = vmax.f32 %v1517_v18, 0.0  ;;  %v643_v54 = vor.u32 %v642_v47, %v639_v35  ;;  %v2323_v35 = vrot.slane %v2321_v28, 4 }
 0x1d7   :  { %830 = vrot.lane.b32.xlu0 %v6175_v58, %s3974_s7  ;;  %v1623_v34 = vmax.f32 %v1509_v62, 0.0  ;;  %v1512_v29 = vadd.f32 %v1511_v27, %v5873_v15  ;;  %v3849_v17 = vpop.f32.mrb[4].mxu1  ;;  %2592 = vrot.lane.b32.xlu1 %v6084_v23, %s3972_s27  ;;  %v2326_v47 = vrot.slane %v2324_v19, 5  ;;  %v6327_v28 = vcombine.low %v6231_v43, %v6238_v57 }
 0x1d8   :  { %v3160_v12 = vpop.f32.mrb[5].mxu1  ;;  %v3169_v56 = vadd.f32 %v3849_v17, %v5873_v15  ;;  %v1626_v2 = vmax.f32 %v1520_v59, 0.0  ;;  %v1662_v27 = vsel %vm1369_vm14, %v1625_v49, 0.0  ;;  %v656_v17 = vshll.u32 %v6288_v11, 16 }
 0x1d9   :  { %v1658_v44 = vsel %vm1369_vm14, %v1623_v34, 0.0  ;;  %v6276_v61 = vpop.permute.xlu0 %937  ;;  %v1624_v10 = vmax.f32 %v1512_v29, 0.0  ;;  %v3161_v23 = vadd.f32 %v3160_v12, %v5873_v15  ;;  %v3850_v50 = vpop.f32.mrb[6].mxu1  ;;  %v653_v29 = vor.u32 %v652_v6, %v6273_v52 }
 0x1da   :  { %v1659_v38 = vadd.f32 %v1658_v44, %v5954_v8  ;;  %v6281_v41 = vpop.permute.xlu1 %2654  ;;  %v3163_v60 = vpop.f32.mrb[7].mxu1  ;;  %v3172_v18 = vadd.f32 %v3850_v50, %v5873_v15  ;;  %v3277_v44 = vmax.f32 %v3169_v56, 0.0  ;;  %v1664_v50 = vsel %vm1369_vm14, %v1626_v2, 0.0  ;;  %v6320_v2 = vld [vmem:[%s6838_s0 + $0x1a0] sm:$0x1] }
 0x1db   :  { %v1660_v1 = vsel %vm1369_vm14, %v1624_v10, 0.0  ;;  %2514 = vrot.lane.b32.xlu0 %v6202_v26, %s3974_s7  ;;  %v3275_v8 = vmax.f32 %v3161_v23, 0.0  ;;  %943 = vrot.lane.b32.xlu1 %v6117_v22, %s3973_s4  ;;  %v3164_v62 = vadd.f32 %v3163_v60, %v5873_v15  ;;  %v2332_v6 = vrot.slane %v2330_v30, 5 }
 0x1dc   :  { %v1661_v32 = vadd.f32 %v1660_v1, %v1659_v38  ;;  %v3278_v49 = vmax.f32 %v3172_v18, 0.0  ;;  %v2336_v56 = vrot.slane %v2334_v3, 4  ;;  %v644_v19 = vrot.slane %v643_v54, 4 }
 0x1dd   :  { %v3310_v34 = vsel %vm1369_vm14, %v3275_v8, 0.0  ;;  %v6300_v59 = vpop.permute.xlu0 %2621  ;;  %v3276_v23 = vmax.f32 %v3164_v62, 0.0  ;;  %v654_v30 = vrot.slane %v653_v29, 4  ;;  %v658_v18 = vrot.slane %v656_v17, 5 }
 0x1de   :  { %v1663_v12 = vadd.f32 %v1662_v27, %v1661_v32  ;;  %v3311_v10 = vadd.f32 %v3310_v34, %v5973_v25  ;;  %v6305_v38 = vpop.permute.xlu1 %1005  ;;  %v3314_v32 = vsel %vm1369_vm14, %v3277_v44, 0.0  ;;  %v2327_v27 = vor.u32 %v2326_v47, %v2323_v35 }
 0x1df   :  { %910 = vrot.lane.b32.xlu0 %v6204_v13, %s3972_s27  ;;  %2627 = vrot.lane.b32.xlu1 %v6143_v14, %s3973_s4  ;;  %v3312_v60 = vsel %vm1369_vm14, %v3276_v23, 0.0  ;;  %v3316_v34 = vsel %vm1369_vm14, %v3278_v49, 0.0  ;;  %v2340_v44 = vshll.u32 %v6320_v2, 16  ;;  %v659_v29 = vsel %vm4083_vm5, %v654_v30, %v658_v18 }
 0x1e0   :  { %v6313_v1 = vadd.f32 %v1664_v50, %v1663_v12  ;;  %v3313_v25 = vadd.f32 %v3312_v60, %v3311_v10  ;;  %v2337_v12 = vor.u32 %v2336_v56, %v2332_v6  ;;  %v6343_v50 = vcombine.low %v6257_v37, %v6270_v33 }
 0x1e1   :  { %v6315_v8 = vpop.permute.xlu0 %972  ;;  %v2328_v17 = vrot.slane %v2327_v27, 4  ;;  %v665_v35 = vrot.slane %v6238_v57, 5  ;;  %v2342_v49 = vrot.slane %v2340_v44, 5  ;;  %v2349_v56 = vrot.slane %v6270_v33, 5 }
 0x1e2   :  { %v6323_v62 = vpop.permute.xlu1 %2689  ;;  %v3315_v3 = vadd.f32 %v3314_v32, %v3313_v25  ;;  %v2338_v47 = vrot.slane %v2337_v12, 4  ;;  %v6370_v32 = vld [vmem:[%s6838_s0 + $0xd0] sm:$0xf]  ;;  %v3527_v33 = vrot.slane %v6231_v43, 9  ;;  %v3672_v18 = vrot.slane %v6257_v37, 9 }
 0x1e3   :  { %2594 = vrot.lane.b32.xlu0 %v6218_v45, %s3972_s27  ;;  %978 = vrot.lane.b32.xlu1 %v6175_v58, %s3975_s20  ;;  %v649_v58 = vsel %vm4083_vm5, %v644_v19, %v6273_v52  ;;  %v2333_v57 = vsel %vm4083_vm5, %v2328_v17, %v2332_v6  ;;  %v667_v19 = vrot.slane %v665_v35, 4  ;;  %v2352_v44 = vrot.slane %v6320_v2, 5  ;;  %v6403_v2 = vld [vmem:[%s6838_s0 + $0x1a4] sm:$0xf] }
 0x1e4   :  { %v6337_v23 = vadd.f32 %v3316_v34, %v3315_v3  ;;  %v6365_v52 = vcombine.low %v649_v58, %v659_v29  ;;  %v668_v3 = vrot.slane %v6288_v11, 5  ;;  %v2343_v30 = vsel %vm4083_vm5, %v2338_v47, %v2342_v49  ;;  %v6413_v47 = vld [vmem:[%s6838_s0 + $0x1a8] sm:$0xf] }
 0x1e5   :  { %v6335_v10 = vpop.permute.xlu0 %2656  ;;  %v684_v6 = vshrl.u32 %v6370_v32, 16  ;;  %v680_v43 = vshll.u32 %v6370_v32, 16  ;;  %v6394_v37 = vcombine.low %v2333_v57, %v2343_v30  ;;  %v666_v11 = vsel %vm4015_vm2, %v3527_v33, %v665_v35 }
 0x1e6   :  { %v6339_v54 = vpop.permute.xlu1 %1040  ;;  %v669_v29 = vsel %vm4015_vm2, %v667_v19, %v668_v3  ;;  %v1155_v17 = vsel %vm1122_vm7, %v5278_v63, %v6172_v55  ;;  %v2355_v30 = vshrl.u32 %v6403_v2, 16 }
 0x1e7   :  { %945 = vrot.lane.b32.xlu0 %v6327_v28, %s3973_s4  ;;  %2662 = vrot.lane.b32.xlu1 %v6202_v26, %s3975_s20  ;;  %v6361_v26 = vld [vmem:[%s6838_s0 + $0xcc] sm:$0xf]  ;;  %v1193_v57 = vsel %vm1171_vm8, %v1155_v17, %v6196_v48  ;;  %v6421_v3 = vrot.slane %v680_v43, 5  ;;  %v686_v63 = vrot.slane %v684_v6, 4  ;;  %v6430_v48 = vld [vmem:[%s6838_s0 + $0xd4] sm:$0x1] }
 0x1e8   :  { %v671_v27 = vshrl.u32 %v6361_v26, 16  ;;  %v674_v34 = vshll.u32 %v6361_v26, 16  ;;  %v1226_v55 = vsel %vm1204_vm9, %v1193_v57, %v6222_v7  ;;  %v6438_v7 = vcombine.low %v666_v11, %v669_v29 }
 0x1e9   :  { %v6355_v60 = vpop.permute.xlu0 %1007  ;;  %v687_v29 = vor.u32 %v686_v63, %v6421_v3  ;;  %v690_v57 = vshll.u32 %v6430_v48, 16 }
 0x1ea   :  { %v6363_v25 = vpop.permute.xlu1 %2724  ;;  %v673_v35 = vrot.slane %v671_v27, 4  ;;  %v676_v49 = vrot.slane %v674_v34, 5  ;;  %v1259_v27 = vsel %vm1237_vm10, %v1226_v55, %v6259_v0  ;;  %v2368_v34 = vshrl.u32 %v6413_v47, 16 }
 0x1eb   :  { %2629 = vrot.lane.b32.xlu0 %v6343_v50, %s3973_s4  ;;  %1013 = vrot.lane.b32.xlu1 %v6204_v13, %s3976_s21  ;;  %v2351_v13 = vrot.slane %v2349_v56, 4  ;;  %v1292_v6 = vsel %vm1270_vm11, %v1259_v27, %v6305_v38  ;;  %v688_v27 = vrot.slane %v687_v29, 4 }
 0x1ec   :  { %v677_v43 = vor.u32 %v676_v49, %v673_v35 }
 0x1ed   :  { %v6385_v12 = vpop.permute.xlu0 %2691  ;;  %v2353_v19 = vsel %vm4015_vm2, %v2351_v13, %v2352_v44  ;;  %v2364_v13 = vshll.u32 %v6413_v47, 16  ;;  %v2838_v44 = vsel %vm1122_vm7, %v5290_v46, %v6194_v40 }
 0x1ee   :  { %v1076_v58 = vpop.permute.xlu1 %1075  ;;  %v2875_v17 = vsel %vm1171_vm8, %v2838_v44, %v6212_v31  ;;  %v678_v63 = vrot.slane %v677_v43, 4  ;;  %v2383_v43 = vrot.slane %v6413_v47, 5 }
 0x1ef   :  { %980 = vrot.lane.b32.xlu0 %v6365_v52, %s3975_s20  ;;  %2697 = vrot.lane.b32.xlu1 %v6218_v45, %s3976_s21  ;;  %v2350_v45 = vsel %vm4015_vm2, %v3672_v18, %v2349_v56  ;;  %v2358_v18 = vshll.u32 %v6403_v2, 16  ;;  %v2907_v46 = vsel %vm1204_vm9, %v2875_v17, %v6240_v4  ;;  %v6468_v4 = vld [vmem:[%s6838_s0 + $0x1ac] sm:$0x1] }
 0x1f0   :  { %v6447_v0 = vcombine.low %v2350_v45, %v2353_v19  ;;  %v2357_v45 = vrot.slane %v2355_v30, 4  ;;  %v2939_v35 = vsel %vm1237_vm10, %v2907_v46, %v6281_v41  ;;  %v1158_v41 = vsel %vm1122_vm7, %v5422_v42, %v6210_v24 }
 0x1f1   :  { %v6417_v33 = vpop.permute.xlu0 %1042  ;;  %v2360_v19 = vrot.slane %v2358_v18, 5  ;;  %v2971_v49 = vsel %vm1270_vm11, %v2939_v35, %v6323_v62  ;;  %v1195_v55 = vsel %vm1171_vm8, %v1158_v41, %v6233_v16  ;;  %v2374_v44 = vshll.u32 %v6468_v4, 16 }
 0x1f2   :  { %v2760_v56 = vpop.permute.xlu1 %2759  ;;  %v3003_v30 = vsel %vm1303_vm12, %v2971_v49, %v6363_v25  ;;  %v1228_v42 = vsel %vm1204_vm9, %v1195_v55, %v6276_v61  ;;  %v2841_v61 = vsel %vm1122_vm7, %v5456_v39, %v6220_v36  ;;  %v683_v39 = vsel %vm4083_vm5, %v678_v63, %v6421_v3 }
 0x1f3   :  { %2664 = vrot.lane.b32.xlu0 %v6394_v37, %s3975_s20  ;;  %1048 = vrot.lane.b32.xlu1 %v6327_v28, %s3977_s3  ;;  %v1325_v28 = vsel %vm1303_vm12, %v1292_v6, %v6339_v54  ;;  %v6470_v54 = vrot.slane %v2364_v13, 5  ;;  %v3035_v24 = vsel %vm1336_vm13, %v3003_v30, %v2760_v56  ;;  %v2361_v13 = vor.u32 %v2360_v19, %v2357_v45 }
 0x1f4   :  { %v1358_v40 = vsel %vm1336_vm13, %v1325_v28, %v1076_v58  ;;  %v2370_v58 = vrot.slane %v2368_v34, 4  ;;  %v692_v34 = vrot.slane %v690_v57, 5  ;;  %v1261_v6 = vsel %vm1237_vm10, %v1228_v42, %v6315_v8 }
 0x1f5   :  { %v2727_v11 = vpop.permute.xlu0 %2726  ;;  %v1294_v56 = vsel %vm1270_vm11, %v1261_v6, %v6355_v60  ;;  %v3725_v8 = vcombine.low %v6403_v2, %v6413_v47  ;;  %v2877_v17 = vsel %vm1171_vm8, %v2841_v61, %v6250_v21  ;;  %v2362_v57 = vrot.slane %v2361_v13, 4 }
 0x1f6   :  { %v1111_v38 = vpop.permute.xlu1 %1110  ;;  %v2371_v25 = vor.u32 %v2370_v58, %v6470_v54  ;;  %v693_v36 = vsel %vm4083_vm5, %v688_v27, %v692_v34  ;;  %v2909_v60 = vsel %vm1204_vm9, %v2877_v17, %v6300_v59  ;;  %v2376_v46 = vrot.slane %v2374_v44, 5 }
 0x1f7   :  { %1015 = vrot.lane.b32.xlu0 %v6438_v7, %s3976_s21  ;;  %v1391_v31 = vsel %vm1369_vm14, %v1358_v40, %v1111_v38  ;;  %2732 = vrot.lane.b32.xlu1 %v6343_v50, %s3977_s3  ;;  %v3580_v50 = vcombine.low %v6361_v26, %v6370_v32  ;;  %v2941_v21 = vsel %vm1237_vm10, %v2909_v60, %v6335_v10  ;;  %v699_v40 = vrot.slane %v6370_v32, 5 }
 0x1f8   :  { %3825 = vmatprep.mubr.msk.bf16.mxu0 %vm1421_vm15, %v1391_v31  ;;  %v2372_v3 = vrot.slane %v2371_v25, 4  ;;  %v2973_v59 = vsel %vm1270_vm11, %v2941_v21, %v6385_v12  ;;  %v3673_v38 = vrot.slane %v6403_v2, 9  ;;  %v2385_v45 = vrot.slane %v2383_v43, 4 }
 0x1f9   :  { %v1078_v18 = vpop.permute.xlu0 %1077  ;;  %v2386_v10 = vrot.slane %v6468_v4, 5  ;;  %v3005_v19 = vsel %vm1303_vm12, %v2973_v59, %v2727_v11  ;;  %v3581_v58 = vcombine.low %v683_v39, %v693_v36  ;;  %v2367_v12 = vsel %vm4083_vm5, %v2362_v57, %v6470_v54 }
 0x1fa   :  { %v2795_v62 = vpop.permute.xlu1 %2794  ;;  %v2377_v2 = vsel %vm4083_vm5, %v2372_v3, %v2376_v46  ;;  %v3528_v11 = vrot.slane %v6361_v26, 9  ;;  %v2384_v4 = vsel %vm4015_vm2, %v3673_v38, %v2383_v43  ;;  %v701_v49 = vrot.slane %v699_v40, 4 }
 0x1fb   :  { %2699 = vrot.lane.b32.xlu0 %v6447_v0, %s3976_s21  ;;  %v3067_v16 = vsel %vm1369_vm14, %v3035_v24, %v2795_v62  ;;  %1083 = vrot.lane.b32.xlu1 %v6365_v52, %s3978_s14  ;;  %v1327_v52 = vsel %vm1303_vm12, %v1294_v56, %v6417_v33  ;;  %v2387_v41 = vsel %vm4015_vm2, %v2385_v45, %v2386_v10 }
 0x1fc   :  { %3863 = vmatprep.mubr.msk.bf16.mxu1 %vm1421_vm15, %v3067_v16  ;;  %v1360_v29 = vsel %vm1336_vm13, %v1327_v52, %v1078_v18  ;;  %v3726_v51 = vcombine.low %v2367_v12, %v2377_v2  ;;  %v3727_v26 = vcombine.low %v2384_v4, %v2387_v41  ;;  %v700_v54 = vsel %vm4015_vm2, %v3528_v11, %v699_v40 }
 0x1fd   :  { %v2762_v28 = vpop.permute.xlu0 %2761 }
 0x1fe   :  { %v1113_v47 = vpop.permute.xlu1 %1112  ;;  %v3037_v31 = vsel %vm1336_vm13, %v3005_v19, %v2762_v28 }
 0x1ff   :  { %1050 = vrot.lane.b32.xlu0 %v3580_v50, %s3977_s3  ;;  %v1393_v33 = vsel %vm1369_vm14, %v1360_v29, %v1113_v47  ;;  %2767 = vrot.lane.b32.xlu1 %v6394_v37, %s3978_s14 }
 0x200   :  { %3826 = vmatmul.mubr.msk.bf16.gmra.mrb[20].mxu0 %vm1421_vm15, %v1393_v33 }
 0x201   :  { %v6530_v35 = vpop.permute.xlu0 %824 }
 0x202   :  { %v2797_v37 = vpop.permute.xlu1 %2796 }
 0x203   :  { %2734 = vrot.lane.b32.xlu0 %v3725_v8, %s3977_s3  ;;  %v3069_v32 = vsel %vm1369_vm14, %v3037_v31, %v2797_v37  ;;  %1118 = vrot.lane.b32.xlu1 %v6438_v7, %s3979_s15  ;;  %v702_v7 = vrot.slane %v6430_v48, 5 }
 0x204   :  { %3864 = vmatmul.mubr.msk.bf16.gmra.mrb[20].mxu1 %vm1421_vm15, %v3069_v32 }
 0x205   :  { %v6549_v50 = vpop.permute.xlu0 %2508  ;;  %v703_v55 = vsel %vm4015_vm2, %v701_v49, %v702_v7 }
 0x206   :  { %v6551_v63 = vpop.permute.xlu1 %904  ;;  %v3582_v18 = vcombine.low %v700_v54, %v703_v55 }
 0x207   :  { %1085 = vrot.lane.b32.xlu0 %v3581_v58, %s3978_s14  ;;  %2802 = vrot.lane.b32.xlu1 %v6447_v0, %s3979_s15 }
 0x209   :  { %v6560_v30 = vpop.permute.xlu0 %826 }
 0x20a   :  { %v6562_v48 = vpop.permute.xlu1 %2588 }
 0x20b   :  { %2769 = vrot.lane.b32.xlu0 %v3726_v51, %s3978_s14  ;;  %2804 = vrot.lane.b32.xlu1 %v3727_v26, %s3979_s15 }
 0x20d   :  { %v6566_v27 = vpop.permute.xlu0 %2510 }
 0x20e   :  { %v940_v0 = vpop.permute.xlu1 %939 }
 0x20f   :  { %1120 = vrot.lane.b32.xlu0 %v3582_v18, %s3979_s15 }
 0x211   :  { %v6569_v34 = vpop.permute.xlu0 %906 }
 0x212   :  { %v6571_v42 = vpop.permute.xlu1 %2623 }
 0x213   :  { %v3815_v5 = vpop.f32.mrb[8].mxu0 }
 0x214   :  { %v1524_v24 = vpop.f32.mrb[9].mxu0  ;;  %v1533_v13 = vadd.f32 %v3815_v5, %v5873_v15 }
 0x215   :  { %v6573_v62 = vpop.permute.xlu0 %2590  ;;  %v1525_v44 = vadd.f32 %v1524_v24, %v5873_v15  ;;  %v3816_v6 = vpop.f32.mrb[10].mxu0 }
 0x216   :  { %v975_v16 = vpop.permute.xlu1 %974  ;;  %v1527_v25 = vpop.f32.mrb[11].mxu0  ;;  %v1536_v56 = vadd.f32 %v3816_v6, %v5873_v15  ;;  %v1629_v52 = vmax.f32 %v1533_v13, 0.0 }
 0x217   :  { %v1627_v61 = vmax.f32 %v1525_v44, 0.0  ;;  %v1528_v8 = vadd.f32 %v1527_v25, %v5873_v15  ;;  %v3853_v43 = vpop.f32.mrb[8].mxu1  ;;  %v1161_v25 = vsel %vm1122_vm7, %v5608_v20, %v6530_v35 }
 0x218   :  { %v3176_v17 = vpop.f32.mrb[9].mxu1  ;;  %v3185_v57 = vadd.f32 %v3853_v43, %v5873_v15  ;;  %v1630_v33 = vmax.f32 %v1536_v56, 0.0  ;;  %v1670_v10 = vsel %vm1369_vm14, %v1629_v52, 0.0  ;;  %v2844_v52 = vsel %vm1122_vm7, %v5620_v9, %v6549_v50  ;;  %v6854_v9 = vld [vmem:[#allocation5_spill] sm:$0xff] }
 0x219   :  { %v1666_v28 = vsel %vm1369_vm14, %v1627_v61, 0.0  ;;  %v942_v39 = vpop.permute.xlu0 %941  ;;  %v1628_v36 = vmax.f32 %v1528_v8, 0.0  ;;  %v3177_v60 = vadd.f32 %v3176_v17, %v5873_v15  ;;  %v3854_v29 = vpop.f32.mrb[10].mxu1  ;;  %v1197_v61 = vsel %vm1171_vm8, %v1161_v25, %v6551_v63 }
 0x21a   :  { %v1667_v47 = vadd.f32 %v1666_v28, %v6313_v1  ;;  %v2659_v46 = vpop.permute.xlu1 %2658  ;;  %v3179_v21 = vpop.f32.mrb[11].mxu1  ;;  %v3188_v38 = vadd.f32 %v3854_v29, %v5873_v15  ;;  %v3281_v1 = vmax.f32 %v3185_v57, 0.0  ;;  %v1672_v2 = vsel %vm1369_vm14, %v1630_v33, 0.0 }
 0x21b   :  { %v1668_v3 = vsel %vm1369_vm14, %v1628_v36, 0.0  ;;  %v3279_v40 = vmax.f32 %v3177_v60, 0.0  ;;  %v3180_v45 = vadd.f32 %v3179_v21, %v5873_v15  ;;  %v1230_v8 = vsel %vm1204_vm9, %v1197_v61, %v940_v0 }
 0x21c   :  { %v1669_v59 = vadd.f32 %v1668_v3, %v1667_v47  ;;  %v3282_v11 = vmax.f32 %v3188_v38, 0.0  ;;  %v3322_v51 = vsel %vm1369_vm14, %v3281_v1, 0.0  ;;  %v1263_v17 = vsel %vm1237_vm10, %v1230_v8, %v975_v16 }
 0x21d   :  { %v3318_v19 = vsel %vm1369_vm14, %v3279_v40, 0.0  ;;  %v2626_v31 = vpop.permute.xlu0 %2625  ;;  %v3280_v32 = vmax.f32 %v3180_v45, 0.0  ;;  %v2879_v36 = vsel %vm1171_vm8, %v2844_v52, %v6562_v48  ;;  %v1164_v50 = vsel %vm1122_vm7, %v6854_v9, %v6560_v30  ;;  %v6855_v30 = vld [vmem:[#allocation6_spill] sm:$0xff] }
 0x21e   :  { %v1671_v37 = vadd.f32 %v1670_v10, %v1669_v59  ;;  %v3319_v58 = vadd.f32 %v3318_v19, %v6337_v23  ;;  %v1010_v12 = vpop.permute.xlu1 %1009  ;;  %v3324_v55 = vsel %vm1369_vm14, %v3282_v11, 0.0  ;;  %v2911_v63 = vsel %vm1204_vm9, %v2879_v36, %v6571_v42 }
 0x21f   :  { %v3320_v4 = vsel %vm1369_vm14, %v3280_v32, 0.0  ;;  %v1296_v28 = vsel %vm1270_vm11, %v1263_v17, %v1010_v12  ;;  %v2943_v16 = vsel %vm1237_vm10, %v2911_v63, %v2659_v46  ;;  %v1199_v48 = vsel %vm1171_vm8, %v1164_v50, %v6569_v34 }
 0x220   :  { %v6591_v41 = vadd.f32 %v1672_v2, %v1671_v37  ;;  %v3321_v49 = vadd.f32 %v3320_v4, %v3319_v58  ;;  %v1232_v21 = vsel %vm1204_vm9, %v1199_v48, %v942_v39  ;;  %v2847_v59 = vsel %vm1122_vm7, %v6855_v30, %v6566_v27 }
 0x221   :  { %v977_v7 = vpop.permute.xlu0 %976  ;;  %v2881_v34 = vsel %vm1171_vm8, %v2847_v59, %v6573_v62 }
 0x222   :  { %v2694_v26 = vpop.permute.xlu1 %2693  ;;  %v3323_v54 = vadd.f32 %v3322_v51, %v3321_v49  ;;  %v1265_v3 = vsel %vm1237_vm10, %v1232_v21, %v977_v7  ;;  %v2913_v10 = vsel %vm1204_vm9, %v2881_v34, %v2626_v31 }
 0x223   :  { %v2975_v47 = vsel %vm1270_vm11, %v2943_v16, %v2694_v26 }
 0x224   :  { %v6595_v5 = vadd.f32 %v3324_v55, %v3323_v54 }
 0x225   :  { %v2661_v18 = vpop.permute.xlu0 %2660 }
 0x226   :  { %v1045_v23 = vpop.permute.xlu1 %1044  ;;  %v2945_v1 = vsel %vm1237_vm10, %v2913_v10, %v2661_v18 }
 0x227   :  { %v1329_v20 = vsel %vm1303_vm12, %v1296_v28, %v1045_v23 }
 0x229   :  { %v1012_v24 = vpop.permute.xlu0 %1011 }
 0x22a   :  { %v2729_v13 = vpop.permute.xlu1 %2728  ;;  %v1298_v38 = vsel %vm1270_vm11, %v1265_v3, %v1012_v24 }
 0x22b   :  { %v3007_v42 = vsel %vm1303_vm12, %v2975_v47, %v2729_v13 }
 0x22d   :  { %v2696_v44 = vpop.permute.xlu0 %2695 }
 0x22e   :  { %v1080_v6 = vpop.permute.xlu1 %1079  ;;  %v2977_v27 = vsel %vm1270_vm11, %v2945_v1, %v2696_v44 }
 0x22f   :  { %v1362_v0 = vsel %vm1336_vm13, %v1329_v20, %v1080_v6 }
 0x231   :  { %v1047_v56 = vpop.permute.xlu0 %1046 }
 0x232   :  { %v2764_v43 = vpop.permute.xlu1 %2763  ;;  %v1331_v39 = vsel %vm1303_vm12, %v1298_v38, %v1047_v56 }
 0x233   :  { %v3039_v46 = vsel %vm1336_vm13, %v3007_v42, %v2764_v43 }
 0x235   :  { %v2731_v35 = vpop.permute.xlu0 %2730 }
 0x236   :  { %v1115_v60 = vpop.permute.xlu1 %1114  ;;  %v3009_v32 = vsel %vm1303_vm12, %v2977_v27, %v2731_v35 }
 0x237   :  { %v1395_v29 = vsel %vm1369_vm14, %v1362_v0, %v1115_v60 }
 0x238   :  { %3829 = vmatprep.mubr.msk.bf16.mxu0 %vm1421_vm15, %v1395_v29 }
 0x239   :  { %v1082_v57 = vpop.permute.xlu0 %1081 }
 0x23a   :  { %v2799_v33 = vpop.permute.xlu1 %2798  ;;  %v1364_v19 = vsel %vm1336_vm13, %v1331_v39, %v1082_v57 }
 0x23b   :  { %v3071_v40 = vsel %vm1369_vm14, %v3039_v46, %v2799_v33 }
 0x23c   :  { %3867 = vmatprep.mubr.msk.bf16.mxu1 %vm1421_vm15, %v3071_v40 }
 0x23d   :  { %v2766_v45 = vpop.permute.xlu0 %2765 }
 0x23e   :  { %v1117_v37 = vpop.permute.xlu1 %1116  ;;  %v3041_v62 = vsel %vm1336_vm13, %v3009_v32, %v2766_v45 }
 0x23f   :  { %v1397_v58 = vsel %vm1369_vm14, %v1364_v19, %v1117_v37 }
 0x240   :  { %3830 = vmatmul.mubr.msk.bf16.gmra.mrb[24].mxu0 %vm1421_vm15, %v1397_v58 }
 0x241   :  { %v6643_v12 = vpop.permute.xlu0 %828 }
 0x242   :  { %v2801_v2 = vpop.permute.xlu1 %2800 }
 0x243   :  { %v3073_v31 = vsel %vm1369_vm14, %v3041_v62, %v2801_v2 }
 0x244   :  { %3868 = vmatmul.mubr.msk.bf16.gmra.mrb[24].mxu1 %vm1421_vm15, %v3073_v31 }
 0x245   :  { %v6648_v11 = vpop.permute.xlu0 %2512 }
 0x246   :  { %v6650_v4 = vpop.permute.xlu1 %908 }
 0x249   :  { %v6652_v49 = vpop.permute.xlu0 %830 }
 0x24a   :  { %v6654_v7 = vpop.permute.xlu1 %2592 }
 0x24d   :  { %v6656_v51 = vpop.permute.xlu0 %2514 }
 0x24e   :  { %v944_v26 = vpop.permute.xlu1 %943 }
 0x251   :  { %v6658_v54 = vpop.permute.xlu0 %910 }
 0x252   :  { %v6660_v55 = vpop.permute.xlu1 %2627 }
 0x253   :  { %v3819_v18 = vpop.f32.mrb[12].mxu0 }
 0x254   :  { %v1540_v23 = vpop.f32.mrb[13].mxu0  ;;  %v1549_v13 = vadd.f32 %v3819_v18, %v5873_v15 }
 0x255   :  { %v6662_v24 = vpop.permute.xlu0 %2594  ;;  %v1541_v44 = vadd.f32 %v1540_v23, %v5873_v15  ;;  %v3820_v6 = vpop.f32.mrb[14].mxu0 }
 0x256   :  { %v979_v25 = vpop.permute.xlu1 %978  ;;  %v1543_v61 = vpop.f32.mrb[15].mxu0  ;;  %v1552_v8 = vadd.f32 %v3820_v6, %v5873_v15  ;;  %v1633_v28 = vmax.f32 %v1549_v13, 0.0 }
 0x257   :  { %v1631_v56 = vmax.f32 %v1541_v44, 0.0  ;;  %v1544_v43 = vadd.f32 %v1543_v61, %v5873_v15  ;;  %v3857_v17 = vpop.f32.mrb[12].mxu1  ;;  %v6856_v44 = vld [vmem:[#allocation8_spill] sm:$0xff] }
 0x258   :  { %v3192_v52 = vpop.f32.mrb[13].mxu1  ;;  %v3201_v16 = vadd.f32 %v3857_v17, %v5873_v15  ;;  %v1634_v50 = vmax.f32 %v1552_v8, 0.0  ;;  %v1678_v46 = vsel %vm1369_vm14, %v1633_v28, 0.0  ;;  %v1167_v6 = vsel %vm1122_vm7, %v6856_v44, %v6643_v12 }
 0x259   :  { %v1674_v36 = vsel %vm1369_vm14, %v1631_v56, 0.0  ;;  %v6669_v20 = vpop.permute.xlu0 %945  ;;  %v1632_v35 = vmax.f32 %v1544_v43, 0.0  ;;  %v3193_v63 = vadd.f32 %v3192_v52, %v5873_v15  ;;  %v3858_v0 = vpop.f32.mrb[14].mxu1  ;;  %v1201_v61 = vsel %vm1171_vm8, %v1167_v6, %v6650_v4 }
 0x25a   :  { %v1675_v60 = vadd.f32 %v1674_v36, %v6591_v41  ;;  %v2663_v29 = vpop.permute.xlu1 %2662  ;;  %v3195_v9 = vpop.f32.mrb[15].mxu1  ;;  %v3204_v57 = vadd.f32 %v3858_v0, %v5873_v15  ;;  %v3285_v41 = vmax.f32 %v3201_v16, 0.0  ;;  %v1680_v34 = vsel %vm1369_vm14, %v1634_v50, 0.0 }
 0x25b   :  { %v1676_v47 = vsel %vm1369_vm14, %v1632_v35, 0.0  ;;  %v3283_v48 = vmax.f32 %v3193_v63, 0.0  ;;  %v3196_v21 = vadd.f32 %v3195_v9, %v5873_v15  ;;  %v1234_v8 = vsel %vm1204_vm9, %v1201_v61, %v944_v26 }
 0x25c   :  { %v1677_v42 = vadd.f32 %v1676_v47, %v1675_v60  ;;  %v3286_v39 = vmax.f32 %v3204_v57, 0.0  ;;  %v3330_v1 = vsel %vm1369_vm14, %v3285_v41, 0.0  ;;  %v1267_v17 = vsel %vm1237_vm10, %v1234_v8, %v979_v25 }
 0x25d   :  { %v3326_v33 = vsel %vm1369_vm14, %v3283_v48, 0.0  ;;  %v2630_v3 = vpop.permute.xlu0 %2629  ;;  %v3284_v59 = vmax.f32 %v3196_v21, 0.0  ;;  %v2850_v52 = vsel %vm1122_vm7, %v5981_v53, %v6648_v11  ;;  %v2853_v53 = vsel %vm1122_vm7, %v6143_v14, %v6656_v51 }
 0x25e   :  { %v1679_v40 = vadd.f32 %v1678_v46, %v1677_v42  ;;  %v3327_v30 = vadd.f32 %v3326_v33, %v6595_v5  ;;  %v1014_v38 = vpop.permute.xlu1 %1013  ;;  %v3332_v32 = vsel %vm1369_vm14, %v3286_v39, 0.0  ;;  %v2883_v36 = vsel %vm1171_vm8, %v2850_v52, %v6654_v7 }
 0x25f   :  { %v3328_v45 = vsel %vm1369_vm14, %v3284_v59, 0.0  ;;  %v1300_v28 = vsel %vm1270_vm11, %v1267_v17, %v1014_v38  ;;  %v2915_v4 = vsel %vm1204_vm9, %v2883_v36, %v6660_v55  ;;  %v2885_v7 = vsel %vm1171_vm8, %v2853_v53, %v6662_v24 }
 0x260   :  { %v6682_v10 = vadd.f32 %v1680_v34, %v1679_v40  ;;  %v3329_v19 = vadd.f32 %v3328_v45, %v3327_v30  ;;  %v2947_v25 = vsel %vm1237_vm10, %v2915_v4, %v2663_v29  ;;  %v2917_v16 = vsel %vm1204_vm9, %v2885_v7, %v2630_v3 }
 0x261   :  { %v981_v37 = vpop.permute.xlu0 %980  ;;  %v1170_v50 = vsel %vm1122_vm7, %v6117_v22, %v6652_v49 }
 0x262   :  { %v2698_v58 = vpop.permute.xlu1 %2697  ;;  %v3331_v27 = vadd.f32 %v3330_v1, %v3329_v19  ;;  %v1203_v47 = vsel %vm1171_vm8, %v1170_v50, %v6658_v54 }
 0x263   :  { %v2979_v11 = vsel %vm1270_vm11, %v2947_v25, %v2698_v58  ;;  %v1236_v48 = vsel %vm1204_vm9, %v1203_v47, %v6669_v20 }
 0x264   :  { %v6686_v2 = vadd.f32 %v3332_v32, %v3331_v27  ;;  %v1269_v21 = vsel %vm1237_vm10, %v1236_v48, %v981_v37 }
 0x265   :  { %v2665_v62 = vpop.permute.xlu0 %2664 }
 0x266   :  { %v1049_v5 = vpop.permute.xlu1 %1048  ;;  %v2949_v14 = vsel %vm1237_vm10, %v2917_v16, %v2665_v62 }
 0x267   :  { %v1333_v12 = vsel %vm1303_vm12, %v1300_v28, %v1049_v5 }
 0x269   :  { %v1016_v31 = vpop.permute.xlu0 %1015 }
 0x26a   :  { %v2733_v18 = vpop.permute.xlu1 %2732  ;;  %v1302_v46 = vsel %vm1270_vm11, %v1269_v21, %v1016_v31 }
 0x26b   :  { %v3011_v55 = vsel %vm1303_vm12, %v2979_v11, %v2733_v18  ;;  %v3943_v11 = vld [vmem:[%s6839_s1 + $0x14] sm:$0xff]  }
 0x26d   :  { %v2700_v23 = vpop.permute.xlu0 %2699 }
 0x26e   :  { %v1084_v13 = vpop.permute.xlu1 %1083  ;;  %v2981_v24 = vsel %vm1270_vm11, %v2949_v14, %v2700_v23 }
 0x26f   :  { %v1366_v26 = vsel %vm1336_vm13, %v1333_v12, %v1084_v13 }
 0x271   :  { %v1051_v56 = vpop.permute.xlu0 %1050 }
 0x272   :  { %v2768_v43 = vpop.permute.xlu1 %2767  ;;  %v1335_v54 = vsel %vm1303_vm12, %v1302_v46, %v1051_v56 }
 0x273   :  { %v3043_v29 = vsel %vm1336_vm13, %v3011_v55, %v2768_v43  ;;  %v3980_v55 = vmov 0.0  }
 0x274   :  { %3875 = vmatprep.subr.bf16.mxu0 %v3980_v55  ;;  %3883 = vmatprep.subr.bf16.mxu1 %v3980_v55 }
 0x275   :  { %v2735_v35 = vpop.permute.xlu0 %2734  ;;  %3876 = vmatpush3.bf16.msra.mxu0 %v3943_v11 }
 0x276   :  { %v1119_v63 = vpop.permute.xlu1 %1118  ;;  %v3013_v42 = vsel %vm1303_vm12, %v2981_v24, %v2735_v35  ;;  %3877 = vmatprep.subr.bf16.mxu0 %v3980_v55 }
 0x277   :  { %v1399_v0 = vsel %vm1369_vm14, %v1366_v26, %v1119_v63 }
 0x278   :  { %3833 = vmatprep.mubr.msk.bf16.mxu0 %vm1421_vm15, %v1399_v0 }
 0x279   :  { %v1086_v60 = vpop.permute.xlu0 %1085 }
 0x27a   :  { %v2803_v9 = vpop.permute.xlu1 %2802  ;;  %v1368_v3 = vsel %vm1336_vm13, %v1335_v54, %v1086_v60 }
 0x27b   :  { %v3075_v51 = vsel %vm1369_vm14, %v3043_v29, %v2803_v9 }
 0x27c   :  { %3871 = vmatprep.mubr.msk.bf16.mxu1 %vm1421_vm15, %v3075_v51 }
 0x27d   :  { %v2770_v57 = vpop.permute.xlu0 %2769 }
 0x27e   :  { %v3045_v22 = vsel %vm1336_vm13, %v3013_v42, %v2770_v57  ;;  %v2805_v49 = vpop.permute.xlu1 %2804 }
 0x27f   :  { %v3077_v33 = vsel %vm1369_vm14, %v3045_v22, %v2805_v49 }
 0x280   :  { %3872 = vmatmul.mubr.msk.bf16.gmra.mrb[28].mxu1 %vm1421_vm15, %v3077_v33 }
 0x281   :  { %v1121_v40 = vpop.permute.xlu0 %1120  ;;  %3887 = vmatprep.mubr.msk.bf16.mxu1 %vm3981_vm0, %v3980_v55 }
 0x282   :  { %v1401_v20 = vsel %vm1369_vm14, %v1368_v3, %v1121_v40 }
 0x283   :  { %3834 = vmatmul.mubr.msk.bf16.gmra.mrb[28].mxu0 %vm1421_vm15, %v1401_v20 }
 0x284   :  { %3879 = vmatprep.mubr.msk.bf16.mxu0 %vm3981_vm0, %v3980_v55 }
 0x293   :  { %v3823_v41 = vpop.f32.mrb[16].mxu0 }
 0x294   :  { %v1565_v30 = vadd.f32 %v3823_v41, %v5873_v15  ;;  %v1556_v59 = vpop.f32.mrb[17].mxu0 }
 0x295   :  { %v1557_v38 = vadd.f32 %v1556_v59, %v5873_v15  ;;  %v3824_v34 = vpop.f32.mrb[18].mxu0 }
 0x296   :  { %v1568_v39 = vadd.f32 %v3824_v34, %v5873_v15  ;;  %v1559_v45 = vpop.f32.mrb[19].mxu0  ;;  %v1637_v58 = vmax.f32 %v1565_v30, 0.0 }
 0x297   :  { %v1635_v19 = vmax.f32 %v1557_v38, 0.0  ;;  %v1560_v37 = vadd.f32 %v1559_v45, %v5873_v15  ;;  %v3861_v1 = vpop.f32.mrb[16].mxu1  ;;  %v3944_v38 = vld [vmem:[%s6839_s1 + $0x1c] sm:$0xff]  }
 0x298   :  { %v3208_v27 = vpop.f32.mrb[17].mxu1  ;;  %v3217_v5 = vadd.f32 %v3861_v1, %v5873_v15  ;;  %v1638_v13 = vmax.f32 %v1568_v39, 0.0  ;;  %v1686_v17 = vsel %vm1369_vm14, %v1637_v58, 0.0  ;;  %3878 = vmatpush3.bf16.msra.mxu0 %v3944_v38 }
 0x299   :  { %v1682_v32 = vsel %vm1369_vm14, %v1635_v19, 0.0  ;;  %v1636_v62 = vmax.f32 %v1560_v37, 0.0  ;;  %v3209_v31 = vadd.f32 %v3208_v27, %v5873_v15  ;;  %v3862_v18 = vpop.f32.mrb[18].mxu1 }
 0x29a   :  { %v1683_v23 = vadd.f32 %v1682_v32, %v6682_v10  ;;  %v3211_v44 = vpop.f32.mrb[19].mxu1  ;;  %v3220_v56 = vadd.f32 %v3862_v18, %v5873_v15  ;;  %v3289_v52 = vmax.f32 %v3217_v5, 0.0  ;;  %v1688_v10 = vsel %vm1369_vm14, %v1638_v13, 0.0 }
 0x29b   :  { %v1684_v6 = vsel %vm1369_vm14, %v1636_v62, 0.0  ;;  %v3287_v61 = vmax.f32 %v3209_v31, 0.0  ;;  %v3212_v8 = vadd.f32 %v3211_v44, %v5873_v15 }
 0x29c   :  { %v1685_v43 = vadd.f32 %v1684_v6, %v1683_v23  ;;  %v3290_v4 = vmax.f32 %v3220_v56, 0.0  ;;  %v3338_v0 = vsel %vm1369_vm14, %v3289_v52, 0.0  ;;  %v3945_v6 = vld [vmem:[%s6839_s1 + $0x28] sm:$0xff]  }
 0x29d   :  { %v3334_v28 = vsel %vm1369_vm14, %v3287_v61, 0.0  ;;  %v3288_v36 = vmax.f32 %v3212_v8, 0.0  ;;  %3884 = vmatpush3.bf16.msra.mxu1 %v3945_v6  ;;  %v3946_v61 = vld [vmem:[%s6839_s1 + $0x30] sm:$0xff]  }
 0x29e   :  { %v1687_v12 = vadd.f32 %v1686_v17, %v1685_v43  ;;  %v3335_v35 = vadd.f32 %v3334_v28, %v6686_v2  ;;  %v3340_v7 = vsel %vm1369_vm14, %v3290_v4, 0.0  ;;  %3885 = vmatprep.subr.bf16.mxu1 %v3980_v55 }
 0x29f   :  { %v3336_v26 = vsel %vm1369_vm14, %v3288_v36, 0.0 }
 0x2a0   :  { %v3337_v63 = vadd.f32 %v3336_v26, %v3335_v35  ;;  %v1689_v25 = vadd.f32 %v1688_v10, %v1687_v12 }
 0x2a1   :  { %3886 = vmatpush3.bf16.msra.mxu1 %v3946_v61 }
 0x2a2   :  { %v3339_v53 = vadd.f32 %v3338_v0, %v3337_v63 }
 0x2a4   :  { %v3341_v2 = vadd.f32 %v3340_v7, %v3339_v53 }
 0x2d3   :  { %v3827_v60 = vpop.f32.mrb[20].mxu0 }
 0x2d4   :  { %v1581_v16 = vadd.f32 %v3827_v60, %v5873_v15  ;;  %v1572_v29 = vpop.f32.mrb[21].mxu0 }
 0x2d5   :  { %v1573_v9 = vadd.f32 %v1572_v29, %v5873_v15  ;;  %v3828_v50 = vpop.f32.mrb[22].mxu0 }
 0x2d6   :  { %v1584_v14 = vadd.f32 %v3828_v50, %v5873_v15  ;;  %v1575_v51 = vpop.f32.mrb[23].mxu0  ;;  %v1641_v42 = vmax.f32 %v1581_v16, 0.0 }
 0x2d7   :  { %v1639_v47 = vmax.f32 %v1573_v9, 0.0  ;;  %v1576_v24 = vadd.f32 %v1575_v51, %v5873_v15  ;;  %v3865_v48 = vpop.f32.mrb[20].mxu1 }
 0x2d8   :  { %v3224_v57 = vpop.f32.mrb[21].mxu1  ;;  %v3233_v49 = vadd.f32 %v3865_v48, %v5873_v15  ;;  %v1642_v3 = vmax.f32 %v1584_v14, 0.0  ;;  %v1694_v39 = vsel %vm1369_vm14, %v1641_v42, 0.0 }
 0x2d9   :  { %v1690_v21 = vsel %vm1369_vm14, %v1639_v47, 0.0  ;;  %v1640_v22 = vmax.f32 %v1576_v24, 0.0  ;;  %v3225_v46 = vadd.f32 %v3224_v57, %v5873_v15  ;;  %v3866_v33 = vpop.f32.mrb[22].mxu1 }
 0x2da   :  { %v1691_v54 = vadd.f32 %v1690_v21, %v1689_v25  ;;  %v3227_v40 = vpop.f32.mrb[23].mxu1  ;;  %v3236_v30 = vadd.f32 %v3866_v33, %v5873_v15  ;;  %v3293_v45 = vmax.f32 %v3233_v49, 0.0  ;;  %v1696_v27 = vsel %vm1369_vm14, %v1642_v3, 0.0 }
 0x2db   :  { %v1692_v20 = vsel %vm1369_vm14, %v1640_v22, 0.0  ;;  %v3291_v41 = vmax.f32 %v3225_v46, 0.0  ;;  %v3228_v59 = vadd.f32 %v3227_v40, %v5873_v15 }
 0x2dc   :  { %v1693_v34 = vadd.f32 %v1692_v20, %v1691_v54  ;;  %v3294_v32 = vmax.f32 %v3236_v30, 0.0  ;;  %v3346_v18 = vsel %vm1369_vm14, %v3293_v45, 0.0 }
 0x2dd   :  { %v3342_v19 = vsel %vm1369_vm14, %v3291_v41, 0.0  ;;  %v3292_v37 = vmax.f32 %v3228_v59, 0.0 }
 0x2de   :  { %v1695_v1 = vadd.f32 %v1694_v39, %v1693_v34  ;;  %v3343_v58 = vadd.f32 %v3342_v19, %v3341_v2  ;;  %v3348_v13 = vsel %vm1369_vm14, %v3294_v32, 0.0 }
 0x2df   :  { %v3344_v62 = vsel %vm1369_vm14, %v3292_v37, 0.0 }
 0x2e0   :  { %v3345_v5 = vadd.f32 %v3344_v62, %v3343_v58  ;;  %v1697_v31 = vadd.f32 %v1696_v27, %v1695_v1 }
 0x2e2   :  { %v3347_v23 = vadd.f32 %v3346_v18, %v3345_v5 }
 0x2e4   :  { %v3349_v44 = vadd.f32 %v3348_v13, %v3347_v23 }
 0x313   :  { %v3831_v56 = vpop.f32.mrb[24].mxu0 }
 0x314   :  { %v1597_v8 = vadd.f32 %v3831_v56, %v5873_v15  ;;  %v1588_v43 = vpop.f32.mrb[25].mxu0 }
 0x315   :  { %v1589_v17 = vadd.f32 %v1588_v43, %v5873_v15  ;;  %v3832_v52 = vpop.f32.mrb[26].mxu0 }
 0x316   :  { %v1600_v28 = vadd.f32 %v3832_v52, %v5873_v15  ;;  %v1591_v36 = vpop.f32.mrb[27].mxu0  ;;  %v1645_v4 = vmax.f32 %v1597_v8, 0.0 }
 0x317   :  { %v1643_v12 = vmax.f32 %v1589_v17, 0.0  ;;  %v1592_v35 = vadd.f32 %v1591_v36, %v5873_v15  ;;  %v3869_v10 = vpop.f32.mrb[24].mxu1 }
 0x318   :  { %v3240_v26 = vpop.f32.mrb[25].mxu1  ;;  %v3249_v0 = vadd.f32 %v3869_v10, %v5873_v15  ;;  %v1646_v55 = vmax.f32 %v1600_v28, 0.0  ;;  %v1702_v14 = vsel %vm1369_vm14, %v1645_v4, 0.0 }
 0x319   :  { %v1698_v63 = vsel %vm1369_vm14, %v1643_v12, 0.0  ;;  %v1644_v25 = vmax.f32 %v1592_v35, 0.0  ;;  %v3241_v53 = vadd.f32 %v3240_v26, %v5873_v15  ;;  %v3870_v11 = vpop.f32.mrb[26].mxu1 }
 0x31a   :  { %v1699_v7 = vadd.f32 %v1698_v63, %v1697_v31  ;;  %v3243_v2 = vpop.f32.mrb[27].mxu1  ;;  %v3252_v29 = vadd.f32 %v3870_v11, %v5873_v15  ;;  %v3297_v51 = vmax.f32 %v3249_v0, 0.0  ;;  %v1704_v57 = vsel %vm1369_vm14, %v1646_v55, 0.0 }
 0x31b   :  { %v1700_v60 = vsel %vm1369_vm14, %v1644_v25, 0.0  ;;  %v3295_v16 = vmax.f32 %v3241_v53, 0.0  ;;  %v3244_v9 = vadd.f32 %v3243_v2, %v5873_v15 }
 0x31c   :  { %v1701_v50 = vadd.f32 %v1700_v60, %v1699_v7  ;;  %v3298_v21 = vmax.f32 %v3252_v29, 0.0  ;;  %v3354_v33 = vsel %vm1369_vm14, %v3297_v51, 0.0 }
 0x31d   :  { %v3350_v47 = vsel %vm1369_vm14, %v3295_v16, 0.0  ;;  %v3296_v24 = vmax.f32 %v3244_v9, 0.0 }
 0x31e   :  { %v1703_v48 = vadd.f32 %v1702_v14, %v1701_v50  ;;  %v3351_v42 = vadd.f32 %v3350_v47, %v3349_v44  ;;  %v3356_v3 = vsel %vm1369_vm14, %v3298_v21, 0.0  ;;  %v22_v21 = vld [vmem:[%s6839_s1 + $0x24] sm:$0xf] }
 0x31f   :  { %v3352_v22 = vsel %vm1369_vm14, %v3296_v24, 0.0 }
 0x320   :  { %v3353_v49 = vadd.f32 %v3352_v22, %v3351_v42  ;;  %v1705_v46 = vadd.f32 %v1704_v57, %v1703_v48  ;;  %v29_v22 = vunpack.c.l.bf16 %v22_v21 }
 0x322   :  { %v3355_v54 = vadd.f32 %v3354_v33, %v3353_v49  ;;  %v6857_v49 = vld [vmem:[#allocation7_spill] sm:$0xff] }
 0x324   :  { %v3357_v40 = vadd.f32 %v3356_v3, %v3355_v54 }
 0x353   :  { %v3873_v20 = vpop.f32.mrb[28].mxu1 }
 0x354   :  { %v3256_v41 = vpop.f32.mrb[29].mxu1  ;;  %v3265_v30 = vadd.f32 %v3873_v20, %v5873_v15 }
 0x355   :  { %v3257_v59 = vadd.f32 %v3256_v41, %v5873_v15  ;;  %v3874_v38 = vpop.f32.mrb[30].mxu1 }
 0x356   :  { %v3835_v34 = vpop.f32.mrb[28].mxu0  ;;  %v3259_v39 = vpop.f32.mrb[31].mxu1  ;;  %v3268_v37 = vadd.f32 %v3874_v38, %v5873_v15  ;;  %v3301_v62 = vmax.f32 %v3265_v30, 0.0 }
 0x357   :  { %v1604_v45 = vpop.f32.mrb[29].mxu0  ;;  %v3299_v19 = vmax.f32 %v3257_v59, 0.0  ;;  %v3260_v1 = vadd.f32 %v3259_v39, %v5873_v15  ;;  %v1613_v58 = vadd.f32 %v3835_v34, %v5873_v15  ;;  %v3947_v59 = vld [vmem:[%s6839_s1 + $0x38] sm:$0xff]  }
 0x358   :  { %v1605_v27 = vadd.f32 %v1604_v45, %v5873_v15  ;;  %v3836_v32 = vpop.f32.mrb[30].mxu0  ;;  %v3302_v61 = vmax.f32 %v3268_v37, 0.0  ;;  %v3362_v28 = vsel %vm1369_vm14, %v3301_v62, 0.0  ;;  %v3752_v38 = vunpack.c.l.bf16 %v3947_v59 }
 0x359   :  { %v3358_v5 = vsel %vm1369_vm14, %v3299_v19, 0.0  ;;  %v1607_v31 = vpop.f32.mrb[31].mxu0  ;;  %v3300_v18 = vmax.f32 %v3260_v1, 0.0  ;;  %v1616_v44 = vadd.f32 %v3836_v32, %v5873_v15  ;;  %v1649_v8 = vmax.f32 %v1613_v58, 0.0 }
 0x35a   :  { %v1647_v23 = vmax.f32 %v1605_v27, 0.0  ;;  %v3359_v13 = vadd.f32 %v3358_v5, %v3357_v40  ;;  %v1608_v6 = vadd.f32 %v1607_v31, %v5873_v15  ;;  %v3364_v4 = vsel %vm1369_vm14, %v3302_v61, 0.0 }
 0x35b   :  { %v3360_v56 = vsel %vm1369_vm14, %v3300_v18, 0.0  ;;  %v1650_v12 = vmax.f32 %v1616_v44, 0.0  ;;  %v1710_v15 = vsel %vm1369_vm14, %v1649_v8, 0.0  ;;  %v3440_v34 = vrot.slane %v3752_v38, %v6857_v49 }
 0x35c   :  { %v1706_v43 = vsel %vm1369_vm14, %v1647_v23, 0.0  ;;  %v1648_v17 = vmax.f32 %v1608_v6, 0.0  ;;  %v3361_v52 = vadd.f32 %v3360_v56, %v3359_v13 }
 0x35d   :  { %v1707_v36 = vadd.f32 %v1706_v43, %v1705_v46  ;;  %v1712_v0 = vsel %vm1369_vm14, %v1650_v12, 0.0  ;;  %v3379_v46 = vrot.slane %v29_v22, %v6857_v49 }
 0x35e   :  { %v1708_v35 = vsel %vm1369_vm14, %v1648_v17, 0.0  ;;  %v3363_v10 = vadd.f32 %v3362_v28, %v3361_v52 }
 0x35f   :  { %v1709_v26 = vadd.f32 %v1708_v35, %v1707_v36 }
 0x360   :  { %v3365_v63 = vadd.f32 %v3364_v4, %v3363_v10 }
 0x361   :  { %v1711_v25 = vadd.f32 %v1710_v15, %v1709_v26 }
 0x362   :  { %v3366_v53 = vrot.slane %v3365_v63, 4 }
 0x363   :  { %v1713_v11 = vadd.f32 %v1712_v0, %v1711_v25 }
 0x364   :  { %v3367_v7 = vadd.f32 %v3366_v53, %v3365_v63 }
 0x365   :  { %v1714_v55 = vrot.slane %v1713_v11, 4 }
 0x366   :  { %v3368_v2 = vrot.slane %v3367_v7, 2 }
 0x367   :  { %v1715_v60 = vadd.f32 %v1714_v55, %v1713_v11 }
 0x368   :  { %v3369_v16 = vadd.f32 %v3368_v2, %v3367_v7 }
 0x369   :  { %v1716_v29 = vrot.slane %v1715_v60, 2 }
 0x36a   :  { %v3370_v9 = vrot.slane %v3369_v16, 1 }
 0x36b   :  { %v1717_v50 = vadd.f32 %v1716_v29, %v1715_v60 }
 0x36c   :  { %v3371_v14 = vadd.f32 %v3370_v9, %v3369_v16 }
 0x36d   :  { %v1718_v51 = vrot.slane %v1717_v50, 1 }
 0x36e   :  { %v3372_v24 = vmul.f32 0.00390625, %v3371_v14 }
 0x36f   :  { %v1719_v47 = vadd.f32 %v1718_v51, %v1717_v50 }
 0x371   :  { %v1720_v48 = vmul.f32 0.00390625, %v1719_v47 }
 0x373   :  { %v3374_v42 = vsel %vm3373_vm1, %v1720_v48, %v3372_v24 }
 0x374   :  { %v3375_v57 = vpack.c.bf16 %v3374_v42, %v3374_v42 }
 0x376   :  { %3880 = vmatmul.mubr.msk.bf16.vlgmr.msra.gmra.mrb[32].mxu0 %vm1369_vm14, %v3375_v57 }
 0x449   :  { %v3429_v33 = vpop.f32.mrb[32].mxu0 }
 0x44a   :  { %v3430_v54 = vadd.f32 %v3429_v33, %v3379_v46  ;;  %v3881_v3 = vpop.f32.mrb[33].mxu0 }
 0x44b   :  { %v3432_v40 = vpop.f32.mrb[34].mxu0 }
 0x44c   :  { %v3435_v20 = vmax.f32 %v3430_v54, 0.0  ;;  %v3882_v41 = vpop.f32.mrb[35].mxu0 }
 0x44e   :  { %v3436_v30 = vpack.c.bf16 %v3435_v20, %v3435_v20 }
 0x450   :  { %3888 = vmatmul.mubr.msk.bf16.vlgmr.msra.gmra.mrb[32].mxu1 %vm1369_vm14, %v3436_v30 }
 0x523   :  { %v3490_v39 = vpop.f32.mrb[32].mxu1 }
 0x524   :  { %v3491_v45 = vadd.f32 %v3490_v39, %v3440_v34  ;;  %v3889_v19 = vpop.f32.mrb[33].mxu1 }
 0x525   :  { %v3493_v37 = vpop.f32.mrb[34].mxu1 }
 0x526   :  { %3496 = vst [vmem:[#allocation2] sm:$0x3] %v3491_v45  ;;  %v3890_v1 = vpop.f32.mrb[35].mxu1 }
 0x527   :  { %3959 = shalt.err (!%p3956_p4)
}
 0x528   :  { %s3960_s12 = scalar_lea.hbm %s6840_s2, 32 }
 0x529   :  { %p3961_p5 = scmp.ne.s32.totalorder %s6840_s2, %s3960_s12  ;;  %p3964_p6 = scmp.lt.u32.totalorder %s3960_s12, %s6840_s2 }
 0x52b   :  { %p3966_p7 = pnand %p3964_p6, %p3961_p5 }
 0x52d   :  { %3969 = shalt.err (!%p3966_p7)
}
 0x52e   :  { %3506 = dma.vmem_to_hbm [thread:$0]  %s3504_s10, 32, %s6840_s2, [#allocation3]  }
 0x52f   :  { %3970 = dma.done.wait [#allocation3], 32  }
 0x530   :  { %3971 = vsyncadd [#allocation3], 4294967264 }
 0x531   :  { %3510 = vsyncpa [#allocation3], 1 }

</bundles_post_ra>
